<compile_context>
chip_gen: v7x
topology: tpu7x:2x2x1
jax: 0.10.0
libtpu: 0.0.40
codegen_flags: <defaults>
</compile_context>

<pallas_src>
import functools

import jax
import jax.numpy as jnp
from jax.experimental import pallas as pl
from jax.experimental.pallas import tpu as pltpu


# ----------------------------------------------------------------------------
# Pallas kernels
# ----------------------------------------------------------------------------
def _conv3x3_body(xp_ref, w_ref, b_ref, *, H, W, Cin, Cout, relu_in):
    """9-tap im2col fused in VMEM: accumulate shifted windows @ per-tap weights."""
    acc = jnp.zeros((H * W, Cout), jnp.float32)
    for dy in range(3):
        for dx in range(3):
            patch = xp_ref[0, dy:dy + H, dx:dx + W, :]          # (H, W, Cin)
            if relu_in:
                patch = jnp.maximum(patch, 0.0)                 # fused input ReLU
            patch = patch.reshape(H * W, Cin).astype(jnp.bfloat16)
            acc = acc + jnp.dot(patch, w_ref[dy * 3 + dx],      # bf16 MXU, f32 acc
                                preferred_element_type=jnp.float32)
    return (acc + b_ref[...]).reshape(H, W, Cout)


def _conv3x3_kernel(xp_ref, w_ref, b_ref, o_ref, *, H, W, Cin, Cout, relu_in):
    o_ref[0] = _conv3x3_body(xp_ref, w_ref, b_ref, H=H, W=W, Cin=Cin, Cout=Cout,
                             relu_in=relu_in)


def _conv3x3_add_kernel(xp_ref, w_ref, b_ref, add_ref, o_ref, *, H, W, Cin, Cout,
                        relu_in):
    o_ref[0] = _conv3x3_body(xp_ref, w_ref, b_ref, H=H, W=W, Cin=Cin, Cout=Cout,
                             relu_in=relu_in) + add_ref[0]


def _mm_bias_kernel(a_ref, w_ref, b_ref, o_ref):
    o_ref[...] = (jnp.dot(a_ref[...], w_ref[...],
                          preferred_element_type=jnp.float32) + b_ref[...])


def _mm_bias_add_kernel(a_ref, w_ref, b_ref, add_ref, o_ref):
    o_ref[...] = (jnp.dot(a_ref[...], w_ref[...],
                          preferred_element_type=jnp.float32)
                  + b_ref[...] + add_ref[...])


# ----------------------------------------------------------------------------
# Kernel wrappers
# ----------------------------------------------------------------------------
def pallas_conv3x3(x, w9, b, *, relu_in, add=None):
    """SNConv2d 3x3 / pad 1 in NHWC.  w9: (9, Cin, Cout), spectral norm pre-folded.

    ReLU on the input and an optional residual `add` are fused into the kernel;
    the 9x im2col expansion stays in VMEM (shifted windows of the padded tile),
    so no 9x-blown-up activation tensor ever hits HBM.
    """
    B, H, W, Cin = x.shape
    Cout = w9.shape[2]
    xp = jnp.pad(x.astype(jnp.float32), ((0, 0), (1, 1), (1, 1), (0, 0)))
    w9 = w9.astype(jnp.bfloat16)                     # bf16 operands, f32 accumulate
    b2 = b.reshape(1, Cout).astype(jnp.float32)

    x_spec = pl.BlockSpec((1, H + 2, W + 2, Cin), lambda i: (i, 0, 0, 0))
    w_spec = pl.BlockSpec((9, Cin, Cout), lambda i: (0, 0, 0))
    b_spec = pl.BlockSpec((1, Cout), lambda i: (0, 0))
    o_spec = pl.BlockSpec((1, H, W, Cout), lambda i: (i, 0, 0, 0))

    if add is None:                                  # no zero-filled residual stream
        kern = functools.partial(_conv3x3_kernel, H=H, W=W, Cin=Cin, Cout=Cout,
                                 relu_in=relu_in)
        in_specs, args = [x_spec, w_spec, b_spec], (xp, w9, b2)
    else:
        kern = functools.partial(_conv3x3_add_kernel, H=H, W=W, Cin=Cin, Cout=Cout,
                                 relu_in=relu_in)
        in_specs = [x_spec, w_spec, b_spec, o_spec]
        args = (xp, w9, b2, add.astype(jnp.float32))

    return pl.pallas_call(
        kern,
        out_shape=jax.ShapeDtypeStruct((B, H, W, Cout), jnp.float32),
        grid=(B,),
        in_specs=in_specs,
        out_specs=o_spec,
        compiler_params=pltpu.CompilerParams(dimension_semantics=("parallel",)),
    )(*args)


def _pick_row_tile(M):
    # Prefer a grid of >= 2 steps so both v7x TensorCores get work.  Tiles here
    # are tiny; at real (ch=96) sizes this is also where the row tile must be
    # re-derived against the scoped-VMEM budget (32 MiB default, 64 MiB total
    # on v7x) before falling back to the full M.
    for t in (512, 256, 128, 64, 32, 16):
        if M % t == 0 and M // t >= 2:
            return t
    return M


def pallas_mm(a, w, b, add=None):
    """out = a @ w + b (+ add).  a/w go to the MXU as bf16 with f32 accumulation;
    the residual `add` (if any) is fused in-kernel via a separate kernel variant,
    so the no-residual path never materializes an (M, N) zeros tensor."""
    M, K = a.shape
    N = w.shape[1]
    a16 = a.astype(jnp.bfloat16)
    w16 = w.astype(jnp.bfloat16)
    b2 = b.reshape(1, N).astype(jnp.float32)

    tm = _pick_row_tile(M)
    a_spec = pl.BlockSpec((tm, K), lambda i: (i, 0))
    w_spec = pl.BlockSpec((K, N), lambda i: (0, 0))
    b_spec = pl.BlockSpec((1, N), lambda i: (0, 0))
    o_spec = pl.BlockSpec((tm, N), lambda i: (i, 0))

    if add is None:
        kern, in_specs, args = _mm_bias_kernel, [a_spec, w_spec, b_spec], (a16, w16, b2)
    else:
        kern = _mm_bias_add_kernel
        in_specs = [a_spec, w_spec, b_spec, o_spec]
        args = (a16, w16, b2, add.astype(jnp.float32))

    return pl.pallas_call(
        kern,
        out_shape=jax.ShapeDtypeStruct((M, N), jnp.float32),
        grid=(M // tm,),
        in_specs=in_specs,
        out_specs=o_spec,
        compiler_params=pltpu.CompilerParams(dimension_semantics=("parallel",)),
    )(*args)


# ----------------------------------------------------------------------------
# JAX glue: data movement + eval-mode spectral norm folding
# ----------------------------------------------------------------------------
def avgpool2x(x):  # NHWC 2x2 average pool, stride 2  (== nn.AvgPool2d(2))
    B, H, W, C = x.shape
    return x.reshape(B, H // 2, 2, W // 2, 2, C).mean(axis=(2, 4))


class KeyGen:
    def __init__(self, key):
        self.key = key

    def __call__(self):
        self.key, sub = jax.random.split(self.key)
        return sub


def _normal(key, shape, scale=0.1):
    return scale * jax.random.normal(key, shape, dtype=jnp.float32)


def _sn(w2d, key, eps=1e-4):
    """Eval-mode spectral norm: one power iteration from a stored (fixed) u."""
    u = jax.random.normal(key, (1, w2d.shape[0]), dtype=jnp.float32)
    u = u / jnp.maximum(jnp.linalg.norm(u), eps)
    v = u @ w2d
    v = v / jnp.maximum(jnp.linalg.norm(v), eps)
    u2 = v @ w2d.T
    u2 = u2 / jnp.maximum(jnp.linalg.norm(u2), eps)
    sigma = (v @ w2d.T @ u2.T)[0, 0]
    return w2d / sigma


def init_dblock(key, in_ch, out_ch, *, wide=True, sn_eps=1e-4):
    """Deterministic synthetic SN-conv weights, SN sigma folded in at setup."""
    kg = KeyGen(key)
    hid = out_ch if wide else in_ch
    P = {}

    w = _normal(kg(), (hid, in_ch, 3, 3))
    w = _sn(w.reshape(hid, -1), kg(), sn_eps).reshape(hid, in_ch, 3, 3)
    P['w1'] = jnp.transpose(w, (2, 3, 1, 0)).reshape(9, in_ch, hid)   # (9, Cin, Chid)
    P['b1'] = _normal(kg(), (hid,), 0.05)

    w = _normal(kg(), (out_ch, hid, 3, 3))
    w = _sn(w.reshape(out_ch, -1), kg(), sn_eps).reshape(out_ch, hid, 3, 3)
    P['w2'] = jnp.transpose(w, (2, 3, 1, 0)).reshape(9, hid, out_ch)  # (9, Chid, Cout)
    P['b2'] = _normal(kg(), (out_ch,), 0.05)

    # 1x1 learnable shortcut (used iff in_ch != out_ch or downsample)
    w = _sn(_normal(kg(), (out_ch, in_ch)), kg(), sn_eps)             # (Cout, Cin)
    P['w_sc'] = w.T                                                   # (Cin, Cout)
    P['b_sc'] = _normal(kg(), (out_ch,), 0.05)
    return P


# ----------------------------------------------------------------------------
# DBlock forward
# ----------------------------------------------------------------------------
def dblock_forward(P, x_nchw, *, preactivation, downsample):
    """DBlock forward.  activation == ReLU, downsample == nn.AvgPool2d(2) when
    enabled (as in BigGAN's discriminator).  Input/output are NCHW to match the
    PyTorch reference; NHWC is used inside the kernels (channels on lanes)."""
    x = jnp.transpose(x_nchw, (0, 2, 3, 1)).astype(jnp.float32)       # NHWC
    B, H, W, Cin = x.shape
    Cout = P['b2'].shape[0]
    learnable_sc = (Cin != Cout) or downsample

    # h = relu(x) if preactivation else x ; h = conv1(h)   (ReLU fused in-kernel)
    h = pallas_conv3x3(x, P['w1'], P['b1'], relu_in=preactivation)

    if learnable_sc:
        # h = conv2(relu(h)) ; optional avg-pool of the main path
        h = pallas_conv3x3(h, P['w2'], P['b2'], relu_in=True)
        if downsample:
            h = avgpool2x(h)
            # Reference order for preactivation=True is conv_sc -> avg-pool; a 1x1
            # conv and 2x2 average pooling commute exactly (both linear, bias is
            # invariant under averaging), so we pool first and fuse the residual
            # add into the 1x1-conv matmul: saves a full-resolution matmul and a
            # separate elementwise-add kernel.  preactivation=False already pools
            # before conv_sc in the reference.
            xs = avgpool2x(x)
        else:
            xs = x
        Hb, Wb = h.shape[1], h.shape[2]
        out = pallas_mm(xs.reshape(B * Hb * Wb, Cin), P['w_sc'], P['b_sc'],
                        add=h.reshape(B * Hb * Wb, Cout)).reshape(B, Hb, Wb, Cout)
    else:
        # in_ch == out_ch and no downsample: shortcut is the identity ->
        # fuse the residual x straight into the conv2 kernel.
        out = pallas_conv3x3(h, P['w2'], P['b2'], relu_in=True, add=x)

    return jnp.transpose(out, (0, 3, 1, 2))                           # back to NCHW


# ----------------------------------------------------------------------------
# Main
# ----------------------------------------------------------------------------
if __name__ == "__main__":
    key = jax.random.PRNGKey(0)
    k1, k2, kx = jax.random.split(key, 3)

    B, Cin, Cout, Hs = 2, 4, 8, 16
    x = jax.random.normal(kx, (B, Cin, Hs, Hs), jnp.float32)

    # Config A: typical BigGAN-D block — preactivation, ReLU, AvgPool2d(2)
    # downsample, in != out -> learnable 1x1 shortcut (fused residual matmul).
    Pa = init_dblock(k1, Cin, Cout, wide=True)
    fwd_a = jax.jit(functools.partial(dblock_forward, Pa,
                                      preactivation=True, downsample=True))
    out_a = jax.block_until_ready(fwd_a(x))
    assert out_a.shape == (B, Cout, Hs // 2, Hs // 2), out_a.shape
    assert bool(jnp.all(jnp.isfinite(out_a)))

    # Config B: in == out, no downsample (first-block style, preactivation=False)
    # -> identity shortcut fused into the conv2 kernel's add path.
    Pb = init_dblock(k2, Cin, Cin, wide=True)
    fwd_b = jax.jit(functools.partial(dblock_forward, Pb,
                                      preactivation=False, downsample=False))
    out_b = jax.block_until_ready(fwd_b(x))
    assert out_b.shape == (B, Cin, Hs, Hs), out_b.shape
    assert bool(jnp.all(jnp.isfinite(out_b)))

    print("KERNEL_OK")
</pallas_src>

<mosaic_0001>
module attributes {stable_mosaic.version = 11 : i64} {
  func.func @_conv3x3_kernel(%arg0: i32, %arg1: memref<1x18x18x4xf32, #tpu.memory_space<vmem>>, %arg2: memref<9x4x8xbf16, #tpu.memory_space<vmem>>, %arg3: memref<1x8xf32, #tpu.memory_space<vmem>>, %arg4: memref<1x16x16x8xf32, #tpu.memory_space<vmem>>) attributes {dimension_semantics = [#tpu.dimension_semantics<parallel>], iteration_bounds = array<i64: 2>, scalar_prefetch = 0 : i64, scratch_operands = 0 : i64, tpu.core_type = #tpu.core_type<tc>, window_params = [{transform_indices = @transform_0, window_bounds = array<i64: 1, 18, 18, 4>}, {pipeline_mode = #tpu.pipeline_mode<synchronous>, transform_indices = @transform_1, window_bounds = array<i64: 9, 4, 8>}, {pipeline_mode = #tpu.pipeline_mode<synchronous>, transform_indices = @transform_2, window_bounds = array<i64: 1, 8>}, {transform_indices = @transform_3, window_bounds = array<i64: 1, 16, 16, 8>}]} {
    %cst = arith.constant 0.000000e+00 : f32
    %0 = vector.broadcast %cst : f32 to vector<256x8xf32>
    %c0 = arith.constant 0 : index
    %c0_0 = arith.constant 0 : index
    %c0_1 = arith.constant 0 : index
    %c0_2 = arith.constant 0 : index
    %1 = vector.load %arg1[%c0, %c0_0, %c0_1, %c0_2] : memref<1x18x18x4xf32, #tpu.memory_space<vmem>>, vector<1x16x16x4xf32>
    %2 = vector.shape_cast %1 : vector<1x16x16x4xf32> to vector<16x16x4xf32>
    %cst_3 = arith.constant 0.000000e+00 : f32
    %3 = vector.broadcast %cst_3 : f32 to vector<16x16x4xf32>
    %4 = arith.maximumf %2, %3 : vector<16x16x4xf32>
    %5 = vector.shape_cast %4 : vector<16x16x4xf32> to vector<256x4xf32>
    %6 = arith.truncf %5 : vector<256x4xf32> to vector<256x4xbf16>
    %c0_4 = arith.constant 0 : index
    %c0_5 = arith.constant 0 : index
    %c0_6 = arith.constant 0 : index
    %7 = vector.load %arg2[%c0_4, %c0_5, %c0_6] : memref<9x4x8xbf16, #tpu.memory_space<vmem>>, vector<1x4x8xbf16>
    %8 = vector.shape_cast %7 : vector<1x4x8xbf16> to vector<4x8xbf16>
    %cst_7 = arith.constant dense<0.000000e+00> : vector<256x8xf32>
    %9 = tpu.matmul %6, %8, %cst_7 {dimension_numbers = #tpu.dot_dimension_numbers<[1], [0], [0], [1], [0, 0, 1, 1], [], []>} : vector<256x4xbf16>, vector<4x8xbf16>, vector<256x8xf32> -> vector<256x8xf32>
    %10 = arith.addf %0, %9 : vector<256x8xf32>
    %c0_8 = arith.constant 0 : index
    %c0_9 = arith.constant 0 : index
    %c1 = arith.constant 1 : index
    %c0_10 = arith.constant 0 : index
    %11 = vector.load %arg1[%c0_8, %c0_9, %c1, %c0_10] : memref<1x18x18x4xf32, #tpu.memory_space<vmem>>, vector<1x16x16x4xf32>
    %12 = vector.shape_cast %11 : vector<1x16x16x4xf32> to vector<16x16x4xf32>
    %cst_11 = arith.constant 0.000000e+00 : f32
    %13 = vector.broadcast %cst_11 : f32 to vector<16x16x4xf32>
    %14 = arith.maximumf %12, %13 : vector<16x16x4xf32>
    %15 = vector.shape_cast %14 : vector<16x16x4xf32> to vector<256x4xf32>
    %16 = arith.truncf %15 : vector<256x4xf32> to vector<256x4xbf16>
    %c1_12 = arith.constant 1 : index
    %c0_13 = arith.constant 0 : index
    %c0_14 = arith.constant 0 : index
    %17 = vector.load %arg2[%c1_12, %c0_13, %c0_14] : memref<9x4x8xbf16, #tpu.memory_space<vmem>>, vector<1x4x8xbf16>
    %18 = vector.shape_cast %17 : vector<1x4x8xbf16> to vector<4x8xbf16>
    %cst_15 = arith.constant dense<0.000000e+00> : vector<256x8xf32>
    %19 = tpu.matmul %16, %18, %cst_15 {dimension_numbers = #tpu.dot_dimension_numbers<[1], [0], [0], [1], [0, 0, 1, 1], [], []>} : vector<256x4xbf16>, vector<4x8xbf16>, vector<256x8xf32> -> vector<256x8xf32>
    %20 = arith.addf %10, %19 : vector<256x8xf32>
    %c0_16 = arith.constant 0 : index
    %c0_17 = arith.constant 0 : index
    %c2 = arith.constant 2 : index
    %c0_18 = arith.constant 0 : index
    %21 = vector.load %arg1[%c0_16, %c0_17, %c2, %c0_18] : memref<1x18x18x4xf32, #tpu.memory_space<vmem>>, vector<1x16x16x4xf32>
    %22 = vector.shape_cast %21 : vector<1x16x16x4xf32> to vector<16x16x4xf32>
    %cst_19 = arith.constant 0.000000e+00 : f32
    %23 = vector.broadcast %cst_19 : f32 to vector<16x16x4xf32>
    %24 = arith.maximumf %22, %23 : vector<16x16x4xf32>
    %25 = vector.shape_cast %24 : vector<16x16x4xf32> to vector<256x4xf32>
    %26 = arith.truncf %25 : vector<256x4xf32> to vector<256x4xbf16>
    %c2_20 = arith.constant 2 : index
    %c0_21 = arith.constant 0 : index
    %c0_22 = arith.constant 0 : index
    %27 = vector.load %arg2[%c2_20, %c0_21, %c0_22] : memref<9x4x8xbf16, #tpu.memory_space<vmem>>, vector<1x4x8xbf16>
    %28 = vector.shape_cast %27 : vector<1x4x8xbf16> to vector<4x8xbf16>
    %cst_23 = arith.constant dense<0.000000e+00> : vector<256x8xf32>
    %29 = tpu.matmul %26, %28, %cst_23 {dimension_numbers = #tpu.dot_dimension_numbers<[1], [0], [0], [1], [0, 0, 1, 1], [], []>} : vector<256x4xbf16>, vector<4x8xbf16>, vector<256x8xf32> -> vector<256x8xf32>
    %30 = arith.addf %20, %29 : vector<256x8xf32>
    %c0_24 = arith.constant 0 : index
    %c1_25 = arith.constant 1 : index
    %c0_26 = arith.constant 0 : index
    %c0_27 = arith.constant 0 : index
    %31 = vector.load %arg1[%c0_24, %c1_25, %c0_26, %c0_27] : memref<1x18x18x4xf32, #tpu.memory_space<vmem>>, vector<1x16x16x4xf32>
    %32 = vector.shape_cast %31 : vector<1x16x16x4xf32> to vector<16x16x4xf32>
    %cst_28 = arith.constant 0.000000e+00 : f32
    %33 = vector.broadcast %cst_28 : f32 to vector<16x16x4xf32>
    %34 = arith.maximumf %32, %33 : vector<16x16x4xf32>
    %35 = vector.shape_cast %34 : vector<16x16x4xf32> to vector<256x4xf32>
    %36 = arith.truncf %35 : vector<256x4xf32> to vector<256x4xbf16>
    %c3 = arith.constant 3 : index
    %c0_29 = arith.constant 0 : index
    %c0_30 = arith.constant 0 : index
    %37 = vector.load %arg2[%c3, %c0_29, %c0_30] : memref<9x4x8xbf16, #tpu.memory_space<vmem>>, vector<1x4x8xbf16>
    %38 = vector.shape_cast %37 : vector<1x4x8xbf16> to vector<4x8xbf16>
    %cst_31 = arith.constant dense<0.000000e+00> : vector<256x8xf32>
    %39 = tpu.matmul %36, %38, %cst_31 {dimension_numbers = #tpu.dot_dimension_numbers<[1], [0], [0], [1], [0, 0, 1, 1], [], []>} : vector<256x4xbf16>, vector<4x8xbf16>, vector<256x8xf32> -> vector<256x8xf32>
    %40 = arith.addf %30, %39 : vector<256x8xf32>
    %c0_32 = arith.constant 0 : index
    %c1_33 = arith.constant 1 : index
    %c1_34 = arith.constant 1 : index
    %c0_35 = arith.constant 0 : index
    %41 = vector.load %arg1[%c0_32, %c1_33, %c1_34, %c0_35] : memref<1x18x18x4xf32, #tpu.memory_space<vmem>>, vector<1x16x16x4xf32>
    %42 = vector.shape_cast %41 : vector<1x16x16x4xf32> to vector<16x16x4xf32>
    %cst_36 = arith.constant 0.000000e+00 : f32
    %43 = vector.broadcast %cst_36 : f32 to vector<16x16x4xf32>
    %44 = arith.maximumf %42, %43 : vector<16x16x4xf32>
    %45 = vector.shape_cast %44 : vector<16x16x4xf32> to vector<256x4xf32>
    %46 = arith.truncf %45 : vector<256x4xf32> to vector<256x4xbf16>
    %c4 = arith.constant 4 : index
    %c0_37 = arith.constant 0 : index
    %c0_38 = arith.constant 0 : index
    %47 = vector.load %arg2[%c4, %c0_37, %c0_38] : memref<9x4x8xbf16, #tpu.memory_space<vmem>>, vector<1x4x8xbf16>
    %48 = vector.shape_cast %47 : vector<1x4x8xbf16> to vector<4x8xbf16>
    %cst_39 = arith.constant dense<0.000000e+00> : vector<256x8xf32>
    %49 = tpu.matmul %46, %48, %cst_39 {dimension_numbers = #tpu.dot_dimension_numbers<[1], [0], [0], [1], [0, 0, 1, 1], [], []>} : vector<256x4xbf16>, vector<4x8xbf16>, vector<256x8xf32> -> vector<256x8xf32>
    %50 = arith.addf %40, %49 : vector<256x8xf32>
    %c0_40 = arith.constant 0 : index
    %c1_41 = arith.constant 1 : index
    %c2_42 = arith.constant 2 : index
    %c0_43 = arith.constant 0 : index
    %51 = vector.load %arg1[%c0_40, %c1_41, %c2_42, %c0_43] : memref<1x18x18x4xf32, #tpu.memory_space<vmem>>, vector<1x16x16x4xf32>
    %52 = vector.shape_cast %51 : vector<1x16x16x4xf32> to vector<16x16x4xf32>
    %cst_44 = arith.constant 0.000000e+00 : f32
    %53 = vector.broadcast %cst_44 : f32 to vector<16x16x4xf32>
    %54 = arith.maximumf %52, %53 : vector<16x16x4xf32>
    %55 = vector.shape_cast %54 : vector<16x16x4xf32> to vector<256x4xf32>
    %56 = arith.truncf %55 : vector<256x4xf32> to vector<256x4xbf16>
    %c5 = arith.constant 5 : index
    %c0_45 = arith.constant 0 : index
    %c0_46 = arith.constant 0 : index
    %57 = vector.load %arg2[%c5, %c0_45, %c0_46] : memref<9x4x8xbf16, #tpu.memory_space<vmem>>, vector<1x4x8xbf16>
    %58 = vector.shape_cast %57 : vector<1x4x8xbf16> to vector<4x8xbf16>
    %cst_47 = arith.constant dense<0.000000e+00> : vector<256x8xf32>
    %59 = tpu.matmul %56, %58, %cst_47 {dimension_numbers = #tpu.dot_dimension_numbers<[1], [0], [0], [1], [0, 0, 1, 1], [], []>} : vector<256x4xbf16>, vector<4x8xbf16>, vector<256x8xf32> -> vector<256x8xf32>
    %60 = arith.addf %50, %59 : vector<256x8xf32>
    %c0_48 = arith.constant 0 : index
    %c2_49 = arith.constant 2 : index
    %c0_50 = arith.constant 0 : index
    %c0_51 = arith.constant 0 : index
    %61 = vector.load %arg1[%c0_48, %c2_49, %c0_50, %c0_51] : memref<1x18x18x4xf32, #tpu.memory_space<vmem>>, vector<1x16x16x4xf32>
    %62 = vector.shape_cast %61 : vector<1x16x16x4xf32> to vector<16x16x4xf32>
    %cst_52 = arith.constant 0.000000e+00 : f32
    %63 = vector.broadcast %cst_52 : f32 to vector<16x16x4xf32>
    %64 = arith.maximumf %62, %63 : vector<16x16x4xf32>
    %65 = vector.shape_cast %64 : vector<16x16x4xf32> to vector<256x4xf32>
    %66 = arith.truncf %65 : vector<256x4xf32> to vector<256x4xbf16>
    %c6 = arith.constant 6 : index
    %c0_53 = arith.constant 0 : index
    %c0_54 = arith.constant 0 : index
    %67 = vector.load %arg2[%c6, %c0_53, %c0_54] : memref<9x4x8xbf16, #tpu.memory_space<vmem>>, vector<1x4x8xbf16>
    %68 = vector.shape_cast %67 : vector<1x4x8xbf16> to vector<4x8xbf16>
    %cst_55 = arith.constant dense<0.000000e+00> : vector<256x8xf32>
    %69 = tpu.matmul %66, %68, %cst_55 {dimension_numbers = #tpu.dot_dimension_numbers<[1], [0], [0], [1], [0, 0, 1, 1], [], []>} : vector<256x4xbf16>, vector<4x8xbf16>, vector<256x8xf32> -> vector<256x8xf32>
    %70 = arith.addf %60, %69 : vector<256x8xf32>
    %c0_56 = arith.constant 0 : index
    %c2_57 = arith.constant 2 : index
    %c1_58 = arith.constant 1 : index
    %c0_59 = arith.constant 0 : index
    %71 = vector.load %arg1[%c0_56, %c2_57, %c1_58, %c0_59] : memref<1x18x18x4xf32, #tpu.memory_space<vmem>>, vector<1x16x16x4xf32>
    %72 = vector.shape_cast %71 : vector<1x16x16x4xf32> to vector<16x16x4xf32>
    %cst_60 = arith.constant 0.000000e+00 : f32
    %73 = vector.broadcast %cst_60 : f32 to vector<16x16x4xf32>
    %74 = arith.maximumf %72, %73 : vector<16x16x4xf32>
    %75 = vector.shape_cast %74 : vector<16x16x4xf32> to vector<256x4xf32>
    %76 = arith.truncf %75 : vector<256x4xf32> to vector<256x4xbf16>
    %c7 = arith.constant 7 : index
    %c0_61 = arith.constant 0 : index
    %c0_62 = arith.constant 0 : index
    %77 = vector.load %arg2[%c7, %c0_61, %c0_62] : memref<9x4x8xbf16, #tpu.memory_space<vmem>>, vector<1x4x8xbf16>
    %78 = vector.shape_cast %77 : vector<1x4x8xbf16> to vector<4x8xbf16>
    %cst_63 = arith.constant dense<0.000000e+00> : vector<256x8xf32>
    %79 = tpu.matmul %76, %78, %cst_63 {dimension_numbers = #tpu.dot_dimension_numbers<[1], [0], [0], [1], [0, 0, 1, 1], [], []>} : vector<256x4xbf16>, vector<4x8xbf16>, vector<256x8xf32> -> vector<256x8xf32>
    %80 = arith.addf %70, %79 : vector<256x8xf32>
    %c0_64 = arith.constant 0 : index
    %c2_65 = arith.constant 2 : index
    %c2_66 = arith.constant 2 : index
    %c0_67 = arith.constant 0 : index
    %81 = vector.load %arg1[%c0_64, %c2_65, %c2_66, %c0_67] : memref<1x18x18x4xf32, #tpu.memory_space<vmem>>, vector<1x16x16x4xf32>
    %82 = vector.shape_cast %81 : vector<1x16x16x4xf32> to vector<16x16x4xf32>
    %cst_68 = arith.constant 0.000000e+00 : f32
    %83 = vector.broadcast %cst_68 : f32 to vector<16x16x4xf32>
    %84 = arith.maximumf %82, %83 : vector<16x16x4xf32>
    %85 = vector.shape_cast %84 : vector<16x16x4xf32> to vector<256x4xf32>
    %86 = arith.truncf %85 : vector<256x4xf32> to vector<256x4xbf16>
    %c8 = arith.constant 8 : index
    %c0_69 = arith.constant 0 : index
    %c0_70 = arith.constant 0 : index
    %87 = vector.load %arg2[%c8, %c0_69, %c0_70] : memref<9x4x8xbf16, #tpu.memory_space<vmem>>, vector<1x4x8xbf16>
    %88 = vector.shape_cast %87 : vector<1x4x8xbf16> to vector<4x8xbf16>
    %cst_71 = arith.constant dense<0.000000e+00> : vector<256x8xf32>
    %89 = tpu.matmul %86, %88, %cst_71 {dimension_numbers = #tpu.dot_dimension_numbers<[1], [0], [0], [1], [0, 0, 1, 1], [], []>} : vector<256x4xbf16>, vector<4x8xbf16>, vector<256x8xf32> -> vector<256x8xf32>
    %90 = arith.addf %80, %89 : vector<256x8xf32>
    %c0_72 = arith.constant 0 : index
    %c0_73 = arith.constant 0 : index
    %91 = vector.load %arg3[%c0_72, %c0_73] : memref<1x8xf32, #tpu.memory_space<vmem>>, vector<1x8xf32>
    %92 = vector.broadcast %91 : vector<1x8xf32> to vector<256x8xf32>
    %93 = arith.addf %90, %92 : vector<256x8xf32>
    %94 = vector.shape_cast %93 : vector<256x8xf32> to vector<16x16x8xf32>
    %c0_74 = arith.constant 0 : index
    %c0_75 = arith.constant 0 : index
    %c0_76 = arith.constant 0 : index
    %c0_77 = arith.constant 0 : index
    %95 = vector.load %arg4[%c0_74, %c0_75, %c0_76, %c0_77] : memref<1x16x16x8xf32, #tpu.memory_space<vmem>>, vector<1x16x16x8xf32>
    %96 = vector.shape_cast %95 : vector<1x16x16x8xf32> to vector<16x16x8xf32>
    %97 = vector.shape_cast %94 : vector<16x16x8xf32> to vector<1x16x16x8xf32>
    tpu.vector_store %arg4[%c0_74, %c0_75, %c0_76, %c0_77], %97 {strides = array<i32>} : memref<1x16x16x8xf32, #tpu.memory_space<vmem>>, vector<1x16x16x8xf32>,
    return
  }
  func.func @transform_0(%arg0: i32) -> (i32, i32, i32, i32) {
    %c0_i32 = arith.constant 0 : i32
    %c0_i32_0 = arith.constant 0 : i32
    %c0_i32_1 = arith.constant 0 : i32
    %c0_i32_2 = arith.constant 0 : i32
    return %arg0, %c0_i32, %c0_i32_0, %c0_i32_1 : i32, i32, i32, i32
  }
  func.func @transform_1(%arg0: i32) -> (i32, i32, i32) {
    %c0_i32 = arith.constant 0 : i32
    %c0_i32_0 = arith.constant 0 : i32
    %c0_i32_1 = arith.constant 0 : i32
    %c0_i32_2 = arith.constant 0 : i32
    return %c0_i32, %c0_i32_0, %c0_i32_1 : i32, i32, i32
  }
  func.func @transform_2(%arg0: i32) -> (i32, i32) {
    %c0_i32 = arith.constant 0 : i32
    %c0_i32_0 = arith.constant 0 : i32
    %c0_i32_1 = arith.constant 0 : i32
    return %c0_i32, %c0_i32_0 : i32, i32
  }
  func.func @transform_3(%arg0: i32) -> (i32, i32, i32, i32) {
    %c0_i32 = arith.constant 0 : i32
    %c0_i32_0 = arith.constant 0 : i32
    %c0_i32_1 = arith.constant 0 : i32
    %c0_i32_2 = arith.constant 0 : i32
    return %arg0, %c0_i32, %c0_i32_0, %c0_i32_1 : i32, i32, i32, i32
  }
}

module attributes {stable_mosaic.version = 11 : i64} {
  func.func @_conv3x3_kernel(%arg0: i32, %arg1: memref<1x18x18x8xf32, #tpu.memory_space<vmem>>, %arg2: memref<9x8x8xbf16, #tpu.memory_space<vmem>>, %arg3: memref<1x8xf32, #tpu.memory_space<vmem>>, %arg4: memref<1x16x16x8xf32, #tpu.memory_space<vmem>>) attributes {dimension_semantics = [#tpu.dimension_semantics<parallel>], iteration_bounds = array<i64: 2>, scalar_prefetch = 0 : i64, scratch_operands = 0 : i64, tpu.core_type = #tpu.core_type<tc>, window_params = [{transform_indices = @transform_0, window_bounds = array<i64: 1, 18, 18, 8>}, {pipeline_mode = #tpu.pipeline_mode<synchronous>, transform_indices = @transform_1, window_bounds = array<i64: 9, 8, 8>}, {pipeline_mode = #tpu.pipeline_mode<synchronous>, transform_indices = @transform_2, window_bounds = array<i64: 1, 8>}, {transform_indices = @transform_3, window_bounds = array<i64: 1, 16, 16, 8>}]} {
    %cst = arith.constant 0.000000e+00 : f32
    %0 = vector.broadcast %cst : f32 to vector<256x8xf32>
    %c0 = arith.constant 0 : index
    %c0_0 = arith.constant 0 : index
    %c0_1 = arith.constant 0 : index
    %c0_2 = arith.constant 0 : index
    %1 = vector.load %arg1[%c0, %c0_0, %c0_1, %c0_2] : memref<1x18x18x8xf32, #tpu.memory_space<vmem>>, vector<1x16x16x8xf32>
    %2 = vector.shape_cast %1 : vector<1x16x16x8xf32> to vector<16x16x8xf32>
    %cst_3 = arith.constant 0.000000e+00 : f32
    %3 = vector.broadcast %cst_3 : f32 to vector<16x16x8xf32>
    %4 = arith.maximumf %2, %3 : vector<16x16x8xf32>
    %5 = vector.shape_cast %4 : vector<16x16x8xf32> to vector<256x8xf32>
    %6 = arith.truncf %5 : vector<256x8xf32> to vector<256x8xbf16>
    %c0_4 = arith.constant 0 : index
    %c0_5 = arith.constant 0 : index
    %c0_6 = arith.constant 0 : index
    %7 = vector.load %arg2[%c0_4, %c0_5, %c0_6] : memref<9x8x8xbf16, #tpu.memory_space<vmem>>, vector<1x8x8xbf16>
    %8 = vector.shape_cast %7 : vector<1x8x8xbf16> to vector<8x8xbf16>
    %cst_7 = arith.constant dense<0.000000e+00> : vector<256x8xf32>
    %9 = tpu.matmul %6, %8, %cst_7 {dimension_numbers = #tpu.dot_dimension_numbers<[1], [0], [0], [1], [0, 0, 1, 1], [], []>} : vector<256x8xbf16>, vector<8x8xbf16>, vector<256x8xf32> -> vector<256x8xf32>
    %10 = arith.addf %0, %9 : vector<256x8xf32>
    %c0_8 = arith.constant 0 : index
    %c0_9 = arith.constant 0 : index
    %c1 = arith.constant 1 : index
    %c0_10 = arith.constant 0 : index
    %11 = vector.load %arg1[%c0_8, %c0_9, %c1, %c0_10] : memref<1x18x18x8xf32, #tpu.memory_space<vmem>>, vector<1x16x16x8xf32>
    %12 = vector.shape_cast %11 : vector<1x16x16x8xf32> to vector<16x16x8xf32>
    %cst_11 = arith.constant 0.000000e+00 : f32
    %13 = vector.broadcast %cst_11 : f32 to vector<16x16x8xf32>
    %14 = arith.maximumf %12, %13 : vector<16x16x8xf32>
    %15 = vector.shape_cast %14 : vector<16x16x8xf32> to vector<256x8xf32>
    %16 = arith.truncf %15 : vector<256x8xf32> to vector<256x8xbf16>
    %c1_12 = arith.constant 1 : index
    %c0_13 = arith.constant 0 : index
    %c0_14 = arith.constant 0 : index
    %17 = vector.load %arg2[%c1_12, %c0_13, %c0_14] : memref<9x8x8xbf16, #tpu.memory_space<vmem>>, vector<1x8x8xbf16>
    %18 = vector.shape_cast %17 : vector<1x8x8xbf16> to vector<8x8xbf16>
    %cst_15 = arith.constant dense<0.000000e+00> : vector<256x8xf32>
    %19 = tpu.matmul %16, %18, %cst_15 {dimension_numbers = #tpu.dot_dimension_numbers<[1], [0], [0], [1], [0, 0, 1, 1], [], []>} : vector<256x8xbf16>, vector<8x8xbf16>, vector<256x8xf32> -> vector<256x8xf32>
    %20 = arith.addf %10, %19 : vector<256x8xf32>
    %c0_16 = arith.constant 0 : index
    %c0_17 = arith.constant 0 : index
    %c2 = arith.constant 2 : index
    %c0_18 = arith.constant 0 : index
    %21 = vector.load %arg1[%c0_16, %c0_17, %c2, %c0_18] : memref<1x18x18x8xf32, #tpu.memory_space<vmem>>, vector<1x16x16x8xf32>
    %22 = vector.shape_cast %21 : vector<1x16x16x8xf32> to vector<16x16x8xf32>
    %cst_19 = arith.constant 0.000000e+00 : f32
    %23 = vector.broadcast %cst_19 : f32 to vector<16x16x8xf32>
    %24 = arith.maximumf %22, %23 : vector<16x16x8xf32>
    %25 = vector.shape_cast %24 : vector<16x16x8xf32> to vector<256x8xf32>
    %26 = arith.truncf %25 : vector<256x8xf32> to vector<256x8xbf16>
    %c2_20 = arith.constant 2 : index
    %c0_21 = arith.constant 0 : index
    %c0_22 = arith.constant 0 : index
    %27 = vector.load %arg2[%c2_20, %c0_21, %c0_22] : memref<9x8x8xbf16, #tpu.memory_space<vmem>>, vector<1x8x8xbf16>
    %28 = vector.shape_cast %27 : vector<1x8x8xbf16> to vector<8x8xbf16>
    %cst_23 = arith.constant dense<0.000000e+00> : vector<256x8xf32>
    %29 = tpu.matmul %26, %28, %cst_23 {dimension_numbers = #tpu.dot_dimension_numbers<[1], [0], [0], [1], [0, 0, 1, 1], [], []>} : vector<256x8xbf16>, vector<8x8xbf16>, vector<256x8xf32> -> vector<256x8xf32>
    %30 = arith.addf %20, %29 : vector<256x8xf32>
    %c0_24 = arith.constant 0 : index
    %c1_25 = arith.constant 1 : index
    %c0_26 = arith.constant 0 : index
    %c0_27 = arith.constant 0 : index
    %31 = vector.load %arg1[%c0_24, %c1_25, %c0_26, %c0_27] : memref<1x18x18x8xf32, #tpu.memory_space<vmem>>, vector<1x16x16x8xf32>
    %32 = vector.shape_cast %31 : vector<1x16x16x8xf32> to vector<16x16x8xf32>
    %cst_28 = arith.constant 0.000000e+00 : f32
    %33 = vector.broadcast %cst_28 : f32 to vector<16x16x8xf32>
    %34 = arith.maximumf %32, %33 : vector<16x16x8xf32>
    %35 = vector.shape_cast %34 : vector<16x16x8xf32> to vector<256x8xf32>
    %36 = arith.truncf %35 : vector<256x8xf32> to vector<256x8xbf16>
    %c3 = arith.constant 3 : index
    %c0_29 = arith.constant 0 : index
    %c0_30 = arith.constant 0 : index
    %37 = vector.load %arg2[%c3, %c0_29, %c0_30] : memref<9x8x8xbf16, #tpu.memory_space<vmem>>, vector<1x8x8xbf16>
    %38 = vector.shape_cast %37 : vector<1x8x8xbf16> to vector<8x8xbf16>
    %cst_31 = arith.constant dense<0.000000e+00> : vector<256x8xf32>
    %39 = tpu.matmul %36, %38, %cst_31 {dimension_numbers = #tpu.dot_dimension_numbers<[1], [0], [0], [1], [0, 0, 1, 1], [], []>} : vector<256x8xbf16>, vector<8x8xbf16>, vector<256x8xf32> -> vector<256x8xf32>
    %40 = arith.addf %30, %39 : vector<256x8xf32>
    %c0_32 = arith.constant 0 : index
    %c1_33 = arith.constant 1 : index
    %c1_34 = arith.constant 1 : index
    %c0_35 = arith.constant 0 : index
    %41 = vector.load %arg1[%c0_32, %c1_33, %c1_34, %c0_35] : memref<1x18x18x8xf32, #tpu.memory_space<vmem>>, vector<1x16x16x8xf32>
    %42 = vector.shape_cast %41 : vector<1x16x16x8xf32> to vector<16x16x8xf32>
    %cst_36 = arith.constant 0.000000e+00 : f32
    %43 = vector.broadcast %cst_36 : f32 to vector<16x16x8xf32>
    %44 = arith.maximumf %42, %43 : vector<16x16x8xf32>
    %45 = vector.shape_cast %44 : vector<16x16x8xf32> to vector<256x8xf32>
    %46 = arith.truncf %45 : vector<256x8xf32> to vector<256x8xbf16>
    %c4 = arith.constant 4 : index
    %c0_37 = arith.constant 0 : index
    %c0_38 = arith.constant 0 : index
    %47 = vector.load %arg2[%c4, %c0_37, %c0_38] : memref<9x8x8xbf16, #tpu.memory_space<vmem>>, vector<1x8x8xbf16>
    %48 = vector.shape_cast %47 : vector<1x8x8xbf16> to vector<8x8xbf16>
    %cst_39 = arith.constant dense<0.000000e+00> : vector<256x8xf32>
    %49 = tpu.matmul %46, %48, %cst_39 {dimension_numbers = #tpu.dot_dimension_numbers<[1], [0], [0], [1], [0, 0, 1, 1], [], []>} : vector<256x8xbf16>, vector<8x8xbf16>, vector<256x8xf32> -> vector<256x8xf32>
    %50 = arith.addf %40, %49 : vector<256x8xf32>
    %c0_40 = arith.constant 0 : index
    %c1_41 = arith.constant 1 : index
    %c2_42 = arith.constant 2 : index
    %c0_43 = arith.constant 0 : index
    %51 = vector.load %arg1[%c0_40, %c1_41, %c2_42, %c0_43] : memref<1x18x18x8xf32, #tpu.memory_space<vmem>>, vector<1x16x16x8xf32>
    %52 = vector.shape_cast %51 : vector<1x16x16x8xf32> to vector<16x16x8xf32>
    %cst_44 = arith.constant 0.000000e+00 : f32
    %53 = vector.broadcast %cst_44 : f32 to vector<16x16x8xf32>
    %54 = arith.maximumf %52, %53 : vector<16x16x8xf32>
    %55 = vector.shape_cast %54 : vector<16x16x8xf32> to vector<256x8xf32>
    %56 = arith.truncf %55 : vector<256x8xf32> to vector<256x8xbf16>
    %c5 = arith.constant 5 : index
    %c0_45 = arith.constant 0 : index
    %c0_46 = arith.constant 0 : index
    %57 = vector.load %arg2[%c5, %c0_45, %c0_46] : memref<9x8x8xbf16, #tpu.memory_space<vmem>>, vector<1x8x8xbf16>
    %58 = vector.shape_cast %57 : vector<1x8x8xbf16> to vector<8x8xbf16>
    %cst_47 = arith.constant dense<0.000000e+00> : vector<256x8xf32>
    %59 = tpu.matmul %56, %58, %cst_47 {dimension_numbers = #tpu.dot_dimension_numbers<[1], [0], [0], [1], [0, 0, 1, 1], [], []>} : vector<256x8xbf16>, vector<8x8xbf16>, vector<256x8xf32> -> vector<256x8xf32>
    %60 = arith.addf %50, %59 : vector<256x8xf32>
    %c0_48 = arith.constant 0 : index
    %c2_49 = arith.constant 2 : index
    %c0_50 = arith.constant 0 : index
    %c0_51 = arith.constant 0 : index
    %61 = vector.load %arg1[%c0_48, %c2_49, %c0_50, %c0_51] : memref<1x18x18x8xf32, #tpu.memory_space<vmem>>, vector<1x16x16x8xf32>
    %62 = vector.shape_cast %61 : vector<1x16x16x8xf32> to vector<16x16x8xf32>
    %cst_52 = arith.constant 0.000000e+00 : f32
    %63 = vector.broadcast %cst_52 : f32 to vector<16x16x8xf32>
    %64 = arith.maximumf %62, %63 : vector<16x16x8xf32>
    %65 = vector.shape_cast %64 : vector<16x16x8xf32> to vector<256x8xf32>
    %66 = arith.truncf %65 : vector<256x8xf32> to vector<256x8xbf16>
    %c6 = arith.constant 6 : index
    %c0_53 = arith.constant 0 : index
    %c0_54 = arith.constant 0 : index
    %67 = vector.load %arg2[%c6, %c0_53, %c0_54] : memref<9x8x8xbf16, #tpu.memory_space<vmem>>, vector<1x8x8xbf16>
    %68 = vector.shape_cast %67 : vector<1x8x8xbf16> to vector<8x8xbf16>
    %cst_55 = arith.constant dense<0.000000e+00> : vector<256x8xf32>
    %69 = tpu.matmul %66, %68, %cst_55 {dimension_numbers = #tpu.dot_dimension_numbers<[1], [0], [0], [1], [0, 0, 1, 1], [], []>} : vector<256x8xbf16>, vector<8x8xbf16>, vector<256x8xf32> -> vector<256x8xf32>
    %70 = arith.addf %60, %69 : vector<256x8xf32>
    %c0_56 = arith.constant 0 : index
    %c2_57 = arith.constant 2 : index
    %c1_58 = arith.constant 1 : index
    %c0_59 = arith.constant 0 : index
    %71 = vector.load %arg1[%c0_56, %c2_57, %c1_58, %c0_59] : memref<1x18x18x8xf32, #tpu.memory_space<vmem>>, vector<1x16x16x8xf32>
    %72 = vector.shape_cast %71 : vector<1x16x16x8xf32> to vector<16x16x8xf32>
    %cst_60 = arith.constant 0.000000e+00 : f32
    %73 = vector.broadcast %cst_60 : f32 to vector<16x16x8xf32>
    %74 = arith.maximumf %72, %73 : vector<16x16x8xf32>
    %75 = vector.shape_cast %74 : vector<16x16x8xf32> to vector<256x8xf32>
    %76 = arith.truncf %75 : vector<256x8xf32> to vector<256x8xbf16>
    %c7 = arith.constant 7 : index
    %c0_61 = arith.constant 0 : index
    %c0_62 = arith.constant 0 : index
    %77 = vector.load %arg2[%c7, %c0_61, %c0_62] : memref<9x8x8xbf16, #tpu.memory_space<vmem>>, vector<1x8x8xbf16>
    %78 = vector.shape_cast %77 : vector<1x8x8xbf16> to vector<8x8xbf16>
    %cst_63 = arith.constant dense<0.000000e+00> : vector<256x8xf32>
    %79 = tpu.matmul %76, %78, %cst_63 {dimension_numbers = #tpu.dot_dimension_numbers<[1], [0], [0], [1], [0, 0, 1, 1], [], []>} : vector<256x8xbf16>, vector<8x8xbf16>, vector<256x8xf32> -> vector<256x8xf32>
    %80 = arith.addf %70, %79 : vector<256x8xf32>
    %c0_64 = arith.constant 0 : index
    %c2_65 = arith.constant 2 : index
    %c2_66 = arith.constant 2 : index
    %c0_67 = arith.constant 0 : index
    %81 = vector.load %arg1[%c0_64, %c2_65, %c2_66, %c0_67] : memref<1x18x18x8xf32, #tpu.memory_space<vmem>>, vector<1x16x16x8xf32>
    %82 = vector.shape_cast %81 : vector<1x16x16x8xf32> to vector<16x16x8xf32>
    %cst_68 = arith.constant 0.000000e+00 : f32
    %83 = vector.broadcast %cst_68 : f32 to vector<16x16x8xf32>
    %84 = arith.maximumf %82, %83 : vector<16x16x8xf32>
    %85 = vector.shape_cast %84 : vector<16x16x8xf32> to vector<256x8xf32>
    %86 = arith.truncf %85 : vector<256x8xf32> to vector<256x8xbf16>
    %c8 = arith.constant 8 : index
    %c0_69 = arith.constant 0 : index
    %c0_70 = arith.constant 0 : index
    %87 = vector.load %arg2[%c8, %c0_69, %c0_70] : memref<9x8x8xbf16, #tpu.memory_space<vmem>>, vector<1x8x8xbf16>
    %88 = vector.shape_cast %87 : vector<1x8x8xbf16> to vector<8x8xbf16>
    %cst_71 = arith.constant dense<0.000000e+00> : vector<256x8xf32>
    %89 = tpu.matmul %86, %88, %cst_71 {dimension_numbers = #tpu.dot_dimension_numbers<[1], [0], [0], [1], [0, 0, 1, 1], [], []>} : vector<256x8xbf16>, vector<8x8xbf16>, vector<256x8xf32> -> vector<256x8xf32>
    %90 = arith.addf %80, %89 : vector<256x8xf32>
    %c0_72 = arith.constant 0 : index
    %c0_73 = arith.constant 0 : index
    %91 = vector.load %arg3[%c0_72, %c0_73] : memref<1x8xf32, #tpu.memory_space<vmem>>, vector<1x8xf32>
    %92 = vector.broadcast %91 : vector<1x8xf32> to vector<256x8xf32>
    %93 = arith.addf %90, %92 : vector<256x8xf32>
    %94 = vector.shape_cast %93 : vector<256x8xf32> to vector<16x16x8xf32>
    %c0_74 = arith.constant 0 : index
    %c0_75 = arith.constant 0 : index
    %c0_76 = arith.constant 0 : index
    %c0_77 = arith.constant 0 : index
    %95 = vector.load %arg4[%c0_74, %c0_75, %c0_76, %c0_77] : memref<1x16x16x8xf32, #tpu.memory_space<vmem>>, vector<1x16x16x8xf32>
    %96 = vector.shape_cast %95 : vector<1x16x16x8xf32> to vector<16x16x8xf32>
    %97 = vector.shape_cast %94 : vector<16x16x8xf32> to vector<1x16x16x8xf32>
    tpu.vector_store %arg4[%c0_74, %c0_75, %c0_76, %c0_77], %97 {strides = array<i32>} : memref<1x16x16x8xf32, #tpu.memory_space<vmem>>, vector<1x16x16x8xf32>,
    return
  }
  func.func @transform_0(%arg0: i32) -> (i32, i32, i32, i32) {
    %c0_i32 = arith.constant 0 : i32
    %c0_i32_0 = arith.constant 0 : i32
    %c0_i32_1 = arith.constant 0 : i32
    %c0_i32_2 = arith.constant 0 : i32
    return %arg0, %c0_i32, %c0_i32_0, %c0_i32_1 : i32, i32, i32, i32
  }
  func.func @transform_1(%arg0: i32) -> (i32, i32, i32) {
    %c0_i32 = arith.constant 0 : i32
    %c0_i32_0 = arith.constant 0 : i32
    %c0_i32_1 = arith.constant 0 : i32
    %c0_i32_2 = arith.constant 0 : i32
    return %c0_i32, %c0_i32_0, %c0_i32_1 : i32, i32, i32
  }
  func.func @transform_2(%arg0: i32) -> (i32, i32) {
    %c0_i32 = arith.constant 0 : i32
    %c0_i32_0 = arith.constant 0 : i32
    %c0_i32_1 = arith.constant 0 : i32
    return %c0_i32, %c0_i32_0 : i32, i32
  }
  func.func @transform_3(%arg0: i32) -> (i32, i32, i32, i32) {
    %c0_i32 = arith.constant 0 : i32
    %c0_i32_0 = arith.constant 0 : i32
    %c0_i32_1 = arith.constant 0 : i32
    %c0_i32_2 = arith.constant 0 : i32
    return %arg0, %c0_i32, %c0_i32_0, %c0_i32_1 : i32, i32, i32, i32
  }
}

module attributes {stable_mosaic.version = 11 : i64} {
  func.func @_mm_bias_add_kernel(%arg0: i32, %arg1: memref<64x4xbf16, #tpu.memory_space<vmem>>, %arg2: memref<4x8xbf16, #tpu.memory_space<vmem>>, %arg3: memref<1x8xf32, #tpu.memory_space<vmem>>, %arg4: memref<64x8xf32, #tpu.memory_space<vmem>>, %arg5: memref<64x8xf32, #tpu.memory_space<vmem>>) attributes {dimension_semantics = [#tpu.dimension_semantics<parallel>], iteration_bounds = array<i64: 2>, scalar_prefetch = 0 : i64, scratch_operands = 0 : i64, tpu.core_type = #tpu.core_type<tc>, window_params = [{transform_indices = @transform_0, window_bounds = array<i64: 64, 4>}, {pipeline_mode = #tpu.pipeline_mode<synchronous>, transform_indices = @transform_1, window_bounds = array<i64: 4, 8>}, {pipeline_mode = #tpu.pipeline_mode<synchronous>, transform_indices = @transform_2, window_bounds = array<i64: 1, 8>}, {transform_indices = @transform_3, window_bounds = array<i64: 64, 8>}, {transform_indices = @transform_4, window_bounds = array<i64: 64, 8>}]} {
    %c0 = arith.constant 0 : index
    %c0_0 = arith.constant 0 : index
    %0 = vector.load %arg1[%c0, %c0_0] : memref<64x4xbf16, #tpu.memory_space<vmem>>, vector<64x4xbf16>
    %c0_1 = arith.constant 0 : index
    %c0_2 = arith.constant 0 : index
    %1 = vector.load %arg2[%c0_1, %c0_2] : memref<4x8xbf16, #tpu.memory_space<vmem>>, vector<4x8xbf16>
    %cst = arith.constant dense<0.000000e+00> : vector<64x8xf32>
    %2 = tpu.matmul %0, %1, %cst {dimension_numbers = #tpu.dot_dimension_numbers<[1], [0], [0], [1], [0, 0, 1, 1], [], []>} : vector<64x4xbf16>, vector<4x8xbf16>, vector<64x8xf32> -> vector<64x8xf32>
    %c0_3 = arith.constant 0 : index
    %c0_4 = arith.constant 0 : index
    %3 = vector.load %arg3[%c0_3, %c0_4] : memref<1x8xf32, #tpu.memory_space<vmem>>, vector<1x8xf32>
    %4 = vector.broadcast %3 : vector<1x8xf32> to vector<64x8xf32>
    %5 = arith.addf %2, %4 : vector<64x8xf32>
    %c0_5 = arith.constant 0 : index
    %c0_6 = arith.constant 0 : index
    %6 = vector.load %arg4[%c0_5, %c0_6] : memref<64x8xf32, #tpu.memory_space<vmem>>, vector<64x8xf32>
    %7 = arith.addf %5, %6 : vector<64x8xf32>
    %c0_7 = arith.constant 0 : index
    %c0_8 = arith.constant 0 : index
    %8 = vector.load %arg5[%c0_7, %c0_8] : memref<64x8xf32, #tpu.memory_space<vmem>>, vector<64x8xf32>
    tpu.vector_store %arg5[%c0_7, %c0_8], %7 {strides = array<i32>} : memref<64x8xf32, #tpu.memory_space<vmem>>, vector<64x8xf32>,
    return
  }
  func.func @transform_0(%arg0: i32) -> (i32, i32) {
    %c0_i32 = arith.constant 0 : i32
    %c0_i32_0 = arith.constant 0 : i32
    return %arg0, %c0_i32 : i32, i32
  }
  func.func @transform_1(%arg0: i32) -> (i32, i32) {
    %c0_i32 = arith.constant 0 : i32
    %c0_i32_0 = arith.constant 0 : i32
    %c0_i32_1 = arith.constant 0 : i32
    return %c0_i32, %c0_i32_0 : i32, i32
  }
  func.func @transform_2(%arg0: i32) -> (i32, i32) {
    %c0_i32 = arith.constant 0 : i32
    %c0_i32_0 = arith.constant 0 : i32
    %c0_i32_1 = arith.constant 0 : i32
    return %c0_i32, %c0_i32_0 : i32, i32
  }
  func.func @transform_3(%arg0: i32) -> (i32, i32) {
    %c0_i32 = arith.constant 0 : i32
    %c0_i32_0 = arith.constant 0 : i32
    return %arg0, %c0_i32 : i32, i32
  }
  func.func @transform_4(%arg0: i32) -> (i32, i32) {
    %c0_i32 = arith.constant 0 : i32
    %c0_i32_0 = arith.constant 0 : i32
    return %arg0, %c0_i32 : i32, i32
  }
}

</mosaic_0001>

<bundles_post_ra>
// kernel: dblock_forward.5
= control target key start
LH: loop header
LB: loop body
LE: loop exit
PB: predicated region body
PF: predicated region fallthrough
CT: control target
= control target key end

     0   :  { %s521_s15 = smov 0   ;;  %s565_s0 = inlined_call_operand.vmem [shape: bf16[128,4], index: 0, kind: input, shape index: {}]   ;;  %s566_s1 = inlined_call_operand.vmem [shape: bf16[4,8], index: 1, kind: input, shape index: {}]   ;;  %s567_s2 = inlined_call_operand.vmem [shape: f32[1,8], index: 2, kind: input, shape index: {}]   ;;  %s568_s3 = inlined_call_operand.vmem [shape: f32[128,8], index: 3, kind: input, shape index: {}]   ;;  %s569_s4 = inlined_call_operand.vmem [shape: f32[128,8], index: 4, kind: output, shape index: {}]  }
   0x1 LB: > { %s435_s16 = sadd.s32 4294967295, %s494_s15   ;;  %p439_p0 = scmp.ge.s32.totalorder %s494_s15, 1  ;;  %s494_s15 = sphi %s521_s15, %s14_s15  }
   0x2   : > { %p174_p1 = scmp.lt.s32.totalorder %s494_s15, 3 }
   0x4   : > { %p175_p2 = pnand %p439_p0, %p174_p1 }
   0x5   : > { %v232_v0 = vld [vmem:[%s566_s1] sm:$0x3] (!%p175_p2)  ;;  %vm273_vm0 = vcmask (!%p175_p2), 1041408   ;;  %s440_s19 = sshll.u32 (!%p175_p2), %s435_s16, 3  ;;  %vm260_vm1 = vcmask (!%p175_p2), 31744   ;;  %vm358_vm2 = vcmask (!%p175_p2), 64512  }
   0x6   : > { %178 = sbr.rel (%p175_p2) target bundleno = 238 (0xee), region = 36  ;;  %474 = vmatprep.subr.msk.bf16.mxu0 (!%p175_p2), %vm273_vm0, %v232_v0  ;;  %475 = vmatprep.subr.msk.bf16.mxu1 (!%p175_p2), %vm273_vm0, %v232_v0  ;;  %v275_v1 = vsel (!%p175_p2), %vm273_vm0, %v232_v0, 0  ;;  %p206_p3 = scmp.lt.s32.totalorder (!%p175_p2), %s440_s19, 15  ;;  %v446_v6 = vld [vmem:[%s567_s2] ss:$0 sm:$0xff] (!%p175_p2) }
   0x7   : > { %463 = vmatpush3.bf16.msra.mxu0 (!%p175_p2), %v275_v1  ;;  %473 = vmatpush3.bf16.msra.mxu1 (!%p175_p2), %v275_v1 }
   0xd   : > { %s571_s19 = smov (!%p206_p3, %s440_s19), 15 }
   0xe   : > { %s441_s20 = sshll.u32 %s571_s19, 2  ;;  %s443_s24 = sshll.u32 %s571_s19, 3 }
   0xf   : > { %s209_s23 = scalar_lea.vmem %s565_s0, %s441_s20  ;;  %s215_s27 = scalar_lea.vmem %s568_s3, %s443_s24 }
  0x10   : > { %v484_v2 = vld [vmem:[%s209_s23] sm:$0xff]   ;;  %v485_v3 = vld [vmem:[%s209_s23 + $0x10] sm:$0xff]   ;;  %v486_v4 = vld [vmem:[%s209_s23 + $0x8] sm:$0xff]   ;;  %s544_s6 = scalar_lea.vmem %s569_s4, %s443_s24 }
  0x11   : > { %464 = vmatprep.mubr.msk.bf16.mxu0 %vm260_vm1, %v484_v2  ;;  %468 = vmatprep.mubr.msk.bf16.mxu1 %vm260_vm1, %v485_v3  ;;  %v487_v5 = vld [vmem:[%s209_s23 + $0x18] sm:$0xff]   ;;  %v344_v8 = vld [vmem:[%s215_s27 + $0x10] sm:$0xff]  ;;  %v342_v13 = vld [vmem:[%s215_s27] sm:$0xff] }
  0x12   : > { %465 = vmatmul.mubr.msk.bf16.vlgmr.msra.gmra.mrb[0].mxu0 %vm260_vm1, %v486_v4  ;;  %469 = vmatmul.mubr.msk.bf16.vlgmr.msra.gmra.mrb[0].mxu1 %vm260_vm1, %v487_v5  ;;  %v348_v11 = vld [vmem:[%s215_s27 + $0x30] sm:$0xff]  ;;  %v346_v17 = vld [vmem:[%s215_s27 + $0x20] sm:$0xff]  ;;  %v345_v19 = vld [vmem:[%s215_s27 + $0x18] sm:$0xff] }
  0x13   : > { %v349_v24 = vld [vmem:[%s215_s27 + $0x38] sm:$0xff]  ;;  %v343_v26 = vld [vmem:[%s215_s27 + $0x8] sm:$0xff] }
  0x14   : > { %v347_v32 = vld [vmem:[%s215_s27 + $0x28] sm:$0xff] }
  0xe5   : > { %v466_v7 = vpop.f32.mrb[0].mxu0  ;;  %v470_v10 = vpop.f32.mrb[0].mxu1 }
  0xe6   : > { %v320_v9 = vadd.f32 %v466_v7, %v446_v6  ;;  %v311_v12 = vpop.f32.mrb[1].mxu0  ;;  %v336_v14 = vadd.f32 %v470_v10, %v446_v6  ;;  %v327_v16 = vpop.f32.mrb[1].mxu1 }
  0xe7   : > { %v312_v15 = vadd.f32 %v446_v6, %v311_v12  ;;  %v467_v18 = vpop.f32.mrb[2].mxu0  ;;  %v328_v21 = vadd.f32 %v446_v6, %v327_v16  ;;  %v471_v23 = vpop.f32.mrb[2].mxu1 }
  0xe8   : > { %v352_v20 = vadd.f32 %v344_v8, %v320_v9  ;;  %v323_v22 = vadd.f32 %v467_v18, %v446_v6  ;;  %v314_v25 = vpop.f32.mrb[3].mxu0  ;;  %v356_v27 = vadd.f32 %v348_v11, %v336_v14  ;;  %v339_v29 = vadd.f32 %v471_v23, %v446_v6  ;;  %v330_v31 = vpop.f32.mrb[3].mxu1 }
  0xe9   : > { %v350_v28 = vadd.f32 %v342_v13, %v312_v15  ;;  %v315_v30 = vadd.f32 %v446_v6, %v314_v25  ;;  %v354_v33 = vadd.f32 %v346_v17, %v328_v21  ;;  %v331_v35 = vadd.f32 %v446_v6, %v330_v31 }
  0xea   : > { %361 = vst.msk [vmem:[%s544_s6 + $0x10] sm:$0xff] %vm358_vm2, %v352_v20  ;;  %v353_v34 = vadd.f32 %v345_v19, %v323_v22  ;;  %365 = vst.msk [vmem:[%s544_s6 + $0x30] sm:$0xff] %vm358_vm2, %v356_v27  ;;  %v357_v36 = vadd.f32 %v349_v24, %v339_v29 }
  0xeb   : > { %359 = vst.msk [vmem:[%s544_s6] sm:$0xff] %vm358_vm2, %v350_v28  ;;  %v351_v37 = vadd.f32 %v343_v26, %v315_v30  ;;  %363 = vst.msk [vmem:[%s544_s6 + $0x20] sm:$0xff] %vm358_vm2, %v354_v33  ;;  %v355_v38 = vadd.f32 %v347_v32, %v331_v35 }
  0xec   : > { %362 = vst.msk [vmem:[%s544_s6 + $0x18] sm:$0xff] %vm358_vm2, %v353_v34  ;;  %366 = vst.msk [vmem:[%s544_s6 + $0x38] sm:$0xff] %vm358_vm2, %v357_v36 }
  0xed   : > { %360 = vst.msk [vmem:[%s544_s6 + $0x8] sm:$0xff] %vm358_vm2, %v351_v37  ;;  %364 = vst.msk [vmem:[%s544_s6 + $0x28] sm:$0xff] %vm358_vm2, %v355_v38 }
  0xee PF: > { %s14_s15 = sadd.s32 1, %s494_s15  }
  0xef   : > { %p11_p4 = scmp.ge.s32.totalorder %s14_s15, 4  }
  0xf1   :  { %13 = sbr.rel (!%p11_p4) target bundleno = 1 (0x1), region = 69 }

// kernel: dblock_forward.4
= control target key start
LH: loop header
LB: loop body
LE: loop exit
PB: predicated region body
PF: predicated region fallthrough
CT: control target
= control target key end

     0   :  { %s4291_s12 = smov 0   ;;  %s4993_s0 = inlined_call_operand.vmem [shape: f32[2,18,18,8], index: 0, kind: input, shape index: {}]   ;;  %s4994_s1 = inlined_call_operand.vmem [shape: bf16[9,8,8], index: 1, kind: input, shape index: {}]   ;;  %s4995_s2 = inlined_call_operand.vmem [shape: f32[1,8], index: 2, kind: input, shape index: {}]   ;;  %s4996_s3 = inlined_call_operand.vmem [shape: f32[2,16,16,8], index: 3, kind: output, shape index: {}]  }
   0x1 LB: > { %s3171_s13 = sadd.s32 4294967295, %s4269_s12   ;;  %p3175_p0 = scmp.ge.s32.totalorder %s4269_s12, 1  ;;  %s4269_s12 = sphi %s4291_s12, %s13_s12  }
   0x2   : > { %p137_p1 = scmp.lt.s32.totalorder %s4269_s12, 3 }
   0x4   : > { %p138_p2 = pnand %p3175_p0, %p137_p1 }
   0x5   : > { %v3179_v0 = vld [vmem:[%s4994_s1 + $0x4] sm:$0xf] (!%p138_p2)  ;;  %vm384_vm0 = vcmask (!%p138_p2), 1043456   ;;  %v4305_v1 = vld [vmem:[%s4994_s1 + $0x10] sm:$0xf] (!%p138_p2)  ;;  %p161_p3 = scmp.lt.s32.totalorder (!%p138_p2), %s3171_s13, 1 }
   0x6   : > { %141 = sbr.rel (%p138_p2) target bundleno = 524 (0x20c), region = 32  ;;  %4244 = vmatprep.subr.msk.bf16.mxu1 (!%p138_p2), %vm384_vm0, %v3179_v0  ;;  %4248 = vmatprep.subr.msk.bf16.mxu0 (!%p138_p2), %vm384_vm0, %v4305_v1  ;;  %v386_v2 = vsel (!%p138_p2), %vm384_vm0, %v3179_v0, 0  ;;  %v4313_v3 = vsel (!%p138_p2), %vm384_vm0, %v4305_v1, 0  ;;  %v252_v4 = vld [vmem:[%s4994_s1] sm:$0xf] (!%p138_p2)  ;;  %vm335_vm1 = vcmask (!%p138_p2), 64512  }
   0x7   : > { %3681 = vmatpush3.bf16.msra.mxu1 (!%p138_p2), %v386_v2  ;;  %3817 = vmatpush3.bf16.msra.mxu0 (!%p138_p2), %v4313_v3  ;;  %v3359_v5 = vld [vmem:[%s4994_s1 + $0x14] sm:$0xf] (!%p138_p2)  ;;  %v598_v24 = vsel (!%p138_p2), %vm384_vm0, %v252_v4, 0  ;;  %v4356_v32 = vld [vmem:[%s4994_s1 + $0x18] sm:$0xf] (!%p138_p2) }
   0x8   : > { %4245 = vmatprep.subr.msk.bf16.mxu1 (!%p138_p2), %vm384_vm0, %v252_v4  ;;  %4250 = vmatprep.subr.msk.bf16.mxu0 (!%p138_p2), %vm384_vm0, %v3359_v5  ;;  %v1871_v28 = vsel (!%p138_p2), %vm384_vm0, %v3359_v5, 0  ;;  %v4363_v35 = vld [vmem:[%s4994_s1 + $0x8] sm:$0xf] (!%p138_p2) }
   0xd   : > { %s4998_s13 = smov (!%p161_p3, %s3171_s13), 1 }
   0xe   : > { %s4254_s22 = smul.u32 432, %s4998_s13  ;;  %s3526_s9 = sshll.u32 %s4998_s13, 8 }
   0xf   : > { %s4892_s16 = scalar_lea.vmem %s4996_s3, %s3526_s9 }
  0x10   : > { %s4330_s25 = scalar_lea.vmem %s4993_s0, %s4254_s22 }
  0x11   : > { %v253_v6 = vld [vmem:[%s4330_s25 + $0x1] sm:$0xff]  ;;  %v254_v7 = vld [vmem:[%s4330_s25 + $0x9] sm:$0xff]  ;;  %v3278_v8 = vld [vmem:[%s4330_s25 + $0x19] sm:$0xff] }
  0x12   : > { %v285_v9 = vmax.f32 %v253_v6, 0.0  ;;  %v286_v10 = vmax.f32 %v254_v7, 0.0  ;;  %v3279_v11 = vld [vmem:[%s4330_s25 + $0x21] sm:$0xff]  ;;  %v1446_v12 = vmax.f32 %v3278_v8, 0.0  ;;  %v3280_v13 = vld [vmem:[%s4330_s25 + $0x31] sm:$0xff]  ;;  %v3281_v14 = vld [vmem:[%s4330_s25 + $0x39] sm:$0xff] }
  0x13   : > { %v1447_v15 = vmax.f32 %v3279_v11, 0.0  ;;  %v1448_v16 = vmax.f32 %v3280_v13, 0.0  ;;  %v1449_v17 = vmax.f32 %v3281_v14, 0.0  ;;  %v3282_v18 = vld [vmem:[%s4330_s25 + $0x49] sm:$0xff]  ;;  %v3283_v19 = vld [vmem:[%s4330_s25 + $0x51] sm:$0xff]  ;;  %v3284_v26 = vld [vmem:[%s4330_s25 + $0x61] sm:$0xff] }
  0x14   : > { %v317_v20 = vpack.c.bf16 %v286_v10, %v285_v9  ;;  %v1450_v21 = vmax.f32 %v3282_v18, 0.0  ;;  %v1451_v22 = vmax.f32 %v3283_v19, 0.0  ;;  %v3285_v27 = vld [vmem:[%s4330_s25 + $0x69] sm:$0xff]  ;;  %v3286_v30 = vld [vmem:[%s4330_s25 + $0x79] sm:$0xff]  ;;  %v3287_v31 = vld [vmem:[%s4330_s25 + $0x81] sm:$0xff]  ;;  %v1452_v33 = vmax.f32 %v3284_v26, 0.0 }
  0x15   : > { %v1478_v23 = vpack.c.bf16 %v1447_v15, %v1446_v12  ;;  %v4341_v25 = vpack.c.bf16 %v1449_v17, %v1448_v16  ;;  %v1453_v34 = vmax.f32 %v3285_v27, 0.0  ;;  %v1454_v36 = vmax.f32 %v3286_v30, 0.0  ;;  %v3288_v40 = vld [vmem:[%s4330_s25 + $0x91] sm:$0xff]  ;;  %v3289_v41 = vld [vmem:[%s4330_s25 + $0x99] sm:$0xff]  ;;  %v3290_v42 = vld [vmem:[%s4330_s25 + $0xa9] sm:$0xff] }
  0x16   : > { %3682 = vmatprep.mubr.msk.bf16.mxu1 %vm335_vm1, %v317_v20  ;;  %v4347_v29 = vpack.c.bf16 %v1451_v22, %v1450_v21  ;;  %v1455_v37 = vmax.f32 %v3287_v31, 0.0  ;;  %v3291_v43 = vld [vmem:[%s4330_s25 + $0xb1] sm:$0xff]  ;;  %v1456_v44 = vmax.f32 %v3288_v40, 0.0  ;;  %v1457_v45 = vmax.f32 %v3289_v41, 0.0  ;;  %v3292_v50 = vld [vmem:[%s4330_s25 + $0xc1] sm:$0xff]  ;;  %v3293_v51 = vld [vmem:[%s4330_s25 + $0xc9] sm:$0xff] }
  0x17   : > { %3818 = vmatprep.mubr.msk.bf16.mxu0 %vm335_vm1, %v1478_v23  ;;  %3683 = vmatmul.mubr.msk.bf16.vlgmr.msra.gmra.mrb[0].mxu1 %vm335_vm1, %v1478_v23  ;;  %v4373_v38 = vpack.c.bf16 %v1453_v34, %v1452_v33  ;;  %v1458_v46 = vmax.f32 %v3290_v42, 0.0  ;;  %v1459_v47 = vmax.f32 %v3291_v43, 0.0  ;;  %v3327_v52 = vld [vmem:[%s4330_s25 + $0x1a] sm:$0xff]  ;;  %v3328_v53 = vld [vmem:[%s4330_s25 + $0x22] sm:$0xff]  ;;  %v1460_v54 = vmax.f32 %v3292_v50, 0.0  ;;  %v3329_v61 = vld [vmem:[%s4330_s25 + $0x32] sm:$0xff] }
  0x18   : > { %3715 = vmatpush3.bf16.msra.mxu1 %v598_v24  ;;  %3819 = vmatmul.mubr.msk.bf16.vlgmr.msra.gmra.mrb[0].mxu0 %vm335_vm1, %v4341_v25  ;;  %v4375_v39 = vpack.c.bf16 %v1455_v37, %v1454_v36  ;;  %v4389_v48 = vpack.c.bf16 %v1457_v45, %v1456_v44  ;;  %v1461_v55 = vmax.f32 %v3293_v51, 0.0  ;;  %v1772_v56 = vmax.f32 %v3327_v52, 0.0  ;;  %v271_v59 = vld [vmem:[%s4330_s25 + $0xd9] sm:$0xff]  ;;  %v272_v60 = vld [vmem:[%s4330_s25 + $0xe1] sm:$0xff]  ;;  %v273_v0 = vld [vmem:[%s4330_s25 + $0xf1] sm:$0xff] }
  0x19   : > { %3851 = vmatpush3.bf16.msra.mxu0 %v1871_v28  ;;  %3686 = vmatprep.mubr.msk.bf16.mxu1 %vm335_vm1, %v4341_v25  ;;  %v4391_v49 = vpack.c.bf16 %v1459_v47, %v1458_v46  ;;  %v1773_v57 = vmax.f32 %v3328_v53, 0.0  ;;  %v3330_v63 = vld [vmem:[%s4330_s25 + $0x3a] sm:$0xff]  ;;  %v3331_v4 = vld [vmem:[%s4330_s25 + $0x4a] sm:$0xff]  ;;  %v3332_v5 = vld [vmem:[%s4330_s25 + $0x52] sm:$0xff]  ;;  %v303_v6 = vmax.f32 %v271_v59, 0.0  ;;  %v304_v7 = vmax.f32 %v272_v60, 0.0 }
  0x1a   : > { %3822 = vmatprep.mubr.msk.bf16.mxu0 %vm335_vm1, %v4347_v29  ;;  %4251 = vmatprep.subr.msk.bf16.mxu0 %vm384_vm0, %v4356_v32  ;;  %v4405_v58 = vpack.c.bf16 %v1461_v55, %v1460_v54  ;;  %v274_v2 = vld [vmem:[%s4330_s25 + $0xf9] sm:$0xff]  ;;  %v1774_v8 = vmax.f32 %v3329_v61, 0.0  ;;  %v1775_v9 = vmax.f32 %v3330_v63, 0.0  ;;  %v305_v10 = vmax.f32 %v273_v0, 0.0  ;;  %v275_v17 = vld [vmem:[%s4330_s25 + $0x109] sm:$0xff]  ;;  %v276_v18 = vld [vmem:[%s4330_s25 + $0x111] sm:$0xff] }
  0x1b   : > { %4246 = vmatprep.subr.msk.bf16.mxu1 %vm384_vm0, %v4363_v35  ;;  %v4410_v62 = vpack.c.bf16 %v1773_v57, %v1772_v56  ;;  %v306_v11 = vmax.f32 %v274_v2, 0.0  ;;  %v1776_v12 = vmax.f32 %v3331_v4, 0.0  ;;  %v1777_v13 = vmax.f32 %v3332_v5, 0.0  ;;  %v3333_v19 = vld [vmem:[%s4330_s25 + $0x62] sm:$0xff]  ;;  %v3334_v21 = vld [vmem:[%s4330_s25 + $0x6a] sm:$0xff]  ;;  %v3335_v26 = vld [vmem:[%s4330_s25 + $0x7a] sm:$0xff] }
  0x1c   : > { %v4425_v14 = vpack.c.bf16 %v304_v7, %v303_v6  ;;  %v4427_v15 = vpack.c.bf16 %v1775_v9, %v1774_v8  ;;  %v277_v22 = vld [vmem:[%s4330_s25 + $0x121] sm:$0xff]  ;;  %v278_v23 = vld [vmem:[%s4330_s25 + $0x129] sm:$0xff]  ;;  %v2198_v24 = vsel %vm384_vm0, %v4356_v32, 0  ;;  %v307_v28 = vmax.f32 %v275_v17, 0.0  ;;  %v4448_v31 = vld [vmem:[%s4994_s1 + $0x1c] sm:$0xf] }
  0x1d   : > { %v4429_v16 = vpack.c.bf16 %v306_v11, %v305_v10  ;;  %v4434_v20 = vpack.c.bf16 %v1777_v13, %v1776_v12  ;;  %v3336_v27 = vld [vmem:[%s4330_s25 + $0x82] sm:$0xff]  ;;  %v308_v30 = vmax.f32 %v276_v18, 0.0  ;;  %v1778_v32 = vmax.f32 %v3333_v19, 0.0  ;;  %v279_v44 = vld [vmem:[%s4330_s25 + $0x139] sm:$0xff]  ;;  %v281_v51 = vld [vmem:[%s4330_s25 + $0x151] sm:$0xff] }
  0x1e   : > { %v1779_v33 = vmax.f32 %v3334_v21, 0.0  ;;  %v309_v34 = vmax.f32 %v277_v22, 0.0  ;;  %v310_v36 = vmax.f32 %v278_v23, 0.0  ;;  %v1780_v37 = vmax.f32 %v3335_v26, 0.0  ;;  %v280_v45 = vld [vmem:[%s4330_s25 + $0x141] sm:$0xff]  ;;  %v3337_v46 = vld [vmem:[%s4330_s25 + $0x92] sm:$0xff] }
  0x1f   : > { %3687 = vmatmul.mubr.msk.bf16.gmra.mrb[4].mxu1 %vm335_vm1, %v4347_v29  ;;  %v1781_v40 = vmax.f32 %v3336_v27, 0.0  ;;  %v4458_v41 = vpack.c.bf16 %v308_v30, %v307_v28  ;;  %v3338_v50 = vld [vmem:[%s4330_s25 + $0x9a] sm:$0xff]  ;;  %v3339_v53 = vld [vmem:[%s4330_s25 + $0xaa] sm:$0xff]  ;;  %v3340_v54 = vld [vmem:[%s4330_s25 + $0xb2] sm:$0xff]  ;;  %v311_v55 = vmax.f32 %v279_v44, 0.0  ;;  %v312_v56 = vmax.f32 %v280_v45, 0.0 }
  0x20   : > { %3823 = vmatmul.mubr.msk.bf16.gmra.mrb[4].mxu0 %vm335_vm1, %v4373_v38  ;;  %3690 = vmatprep.mubr.msk.bf16.mxu1 %vm335_vm1, %v4373_v38  ;;  %v4460_v42 = vpack.c.bf16 %v1779_v33, %v1778_v32  ;;  %v4462_v43 = vpack.c.bf16 %v310_v36, %v309_v34  ;;  %v282_v52 = vld [vmem:[%s4330_s25 + $0x159] sm:$0xff]  ;;  %v1782_v57 = vmax.f32 %v3337_v46, 0.0  ;;  %v1783_v59 = vmax.f32 %v3338_v50, 0.0  ;;  %v283_v6 = vld [vmem:[%s4330_s25 + $0x169] sm:$0xff]  ;;  %v284_v7 = vld [vmem:[%s4330_s25 + $0x171] sm:$0xff] }
  0x21   : > { %3826 = vmatprep.mubr.msk.bf16.mxu0 %vm335_vm1, %v4375_v39  ;;  %v4467_v47 = vpack.c.bf16 %v1781_v40, %v1780_v37  ;;  %v313_v60 = vmax.f32 %v281_v51, 0.0  ;;  %v314_v61 = vmax.f32 %v282_v52, 0.0  ;;  %v1784_v63 = vmax.f32 %v3339_v53, 0.0  ;;  %v3341_v8 = vld [vmem:[%s4330_s25 + $0xc2] sm:$0xff]  ;;  %v3342_v10 = vld [vmem:[%s4330_s25 + $0xca] sm:$0xff]  ;;  %v3343_v13 = vld [vmem:[%s4330_s25 + $0xda] sm:$0xff] }
  0x22   : > { %v1785_v0 = vmax.f32 %v3340_v54, 0.0  ;;  %v4482_v2 = vpack.c.bf16 %v312_v56, %v311_v55  ;;  %v4484_v4 = vpack.c.bf16 %v1783_v59, %v1782_v57  ;;  %v172_v11 = vld [vmem:[%s4330_s25] sm:$0xff]  ;;  %v173_v12 = vld [vmem:[%s4330_s25 + $0x8] sm:$0xff]  ;;  %v315_v18 = vmax.f32 %v283_v6, 0.0  ;;  %v174_v33 = vld [vmem:[%s4330_s25 + $0x18] sm:$0xff] }
  0x23   : > { %v4486_v5 = vpack.c.bf16 %v314_v61, %v313_v60  ;;  %v3344_v17 = vld [vmem:[%s4330_s25 + $0xe2] sm:$0xff]  ;;  %v316_v19 = vmax.f32 %v284_v7, 0.0  ;;  %v1786_v21 = vmax.f32 %v3341_v8, 0.0  ;;  %v1787_v22 = vmax.f32 %v3342_v10, 0.0  ;;  %v3345_v37 = vld [vmem:[%s4330_s25 + $0xf2] sm:$0xff]  ;;  %v3346_v40 = vld [vmem:[%s4330_s25 + $0xfa] sm:$0xff] }
  0x24   : > { %v4491_v9 = vpack.c.bf16 %v1785_v0, %v1784_v63  ;;  %v204_v23 = vmax.f32 %v172_v11, 0.0  ;;  %v1788_v26 = vmax.f32 %v3343_v13, 0.0  ;;  %v1789_v27 = vmax.f32 %v3344_v17, 0.0  ;;  %v175_v34 = vld [vmem:[%s4330_s25 + $0x20] sm:$0xff]  ;;  %v176_v44 = vld [vmem:[%s4330_s25 + $0x30] sm:$0xff]  ;;  %v177_v45 = vld [vmem:[%s4330_s25 + $0x38] sm:$0xff] }
  0x25   : > { %v4506_v28 = vpack.c.bf16 %v316_v19, %v315_v18  ;;  %v4508_v30 = vpack.c.bf16 %v1787_v22, %v1786_v21  ;;  %v3347_v46 = vld [vmem:[%s4330_s25 + $0x10a] sm:$0xff]  ;;  %v3348_v50 = vld [vmem:[%s4330_s25 + $0x112] sm:$0xff]  ;;  %v206_v51 = vmax.f32 %v174_v33, 0.0  ;;  %v207_v52 = vmax.f32 %v175_v34, 0.0  ;;  %v3349_v6 = vld [vmem:[%s4330_s25 + $0x122] sm:$0xff] }
  0x26   : > { %v4512_v36 = vpack.c.bf16 %v1789_v27, %v1788_v26  ;;  %v1790_v53 = vmax.f32 %v3345_v37, 0.0  ;;  %v1791_v54 = vmax.f32 %v3346_v40, 0.0  ;;  %v208_v55 = vmax.f32 %v176_v44, 0.0  ;;  %v178_v63 = vld [vmem:[%s4330_s25 + $0x48] sm:$0xff]  ;;  %v179_v0 = vld [vmem:[%s4330_s25 + $0x50] sm:$0xff]  ;;  %v3351_v17 = vld [vmem:[%s4330_s25 + $0x13a] sm:$0xff] }
  0x27   : > { %3691 = vmatmul.mubr.msk.bf16.gmra.mrb[8].mxu1 %vm335_vm1, %v4375_v39  ;;  %v209_v56 = vmax.f32 %v177_v45, 0.0  ;;  %v1792_v57 = vmax.f32 %v3347_v46, 0.0  ;;  %v1793_v59 = vmax.f32 %v3348_v50, 0.0  ;;  %v4527_v60 = vpack.c.bf16 %v207_v52, %v206_v51  ;;  %v3350_v11 = vld [vmem:[%s4330_s25 + $0x12a] sm:$0xff]  ;;  %v3352_v18 = vld [vmem:[%s4330_s25 + $0x142] sm:$0xff]  ;;  %v182_v40 = vld [vmem:[%s4330_s25 + $0x78] sm:$0xff] }
  0x28   : > { %3827 = vmatmul.mubr.msk.bf16.gmra.mrb[8].mxu0 %vm335_vm1, %v4389_v48  ;;  %3694 = vmatprep.mubr.msk.bf16.mxu1 %vm335_vm1, %v4389_v48  ;;  %v4529_v61 = vpack.c.bf16 %v1791_v54, %v1790_v53  ;;  %v892_v7 = vsel %vm384_vm0, %v4363_v35, 0  ;;  %v181_v13 = vld [vmem:[%s4330_s25 + $0x68] sm:$0xff]  ;;  %v210_v19 = vmax.f32 %v178_v63, 0.0  ;;  %v211_v21 = vmax.f32 %v179_v0, 0.0  ;;  %v183_v44 = vld [vmem:[%s4330_s25 + $0x80] sm:$0xff]  ;;  %v3353_v45 = vld [vmem:[%s4330_s25 + $0x152] sm:$0xff] }
  0x29   : > { %3830 = vmatprep.mubr.msk.bf16.mxu0 %vm335_vm1, %v4391_v49  ;;  %v4536_v8 = vpack.c.bf16 %v209_v56, %v208_v55  ;;  %v4538_v10 = vpack.c.bf16 %v1793_v59, %v1792_v57  ;;  %v4550_v22 = vld [vmem:[%s4994_s1 + $0xc] sm:$0xf]  ;;  %v1794_v35 = vmax.f32 %v3349_v6, 0.0  ;;  %v213_v26 = vmax.f32 %v181_v13, 0.0  ;;  %v3354_v50 = vld [vmem:[%s4330_s25 + $0x15a] sm:$0xff]  ;;  %v184_v51 = vld [vmem:[%s4330_s25 + $0x90] sm:$0xff] }
  0x2a   : > { %v1796_v27 = vmax.f32 %v3351_v17, 0.0  ;;  %v4560_v33 = vpack.c.bf16 %v211_v21, %v210_v19  ;;  %v185_v52 = vld [vmem:[%s4330_s25 + $0x98] sm:$0xff]  ;;  %v3355_v53 = vld [vmem:[%s4330_s25 + $0x16a] sm:$0xff]  ;;  %v214_v55 = vmax.f32 %v182_v40, 0.0  ;;  %v215_v56 = vmax.f32 %v183_v44, 0.0  ;;  %v3357_v19 = vld [vmem:[%s4330_s25 + $0x182] sm:$0xff] }
  0x2b   : > { %v3356_v54 = vld [vmem:[%s4330_s25 + $0x172] sm:$0xff]  ;;  %v1798_v57 = vmax.f32 %v3353_v45, 0.0  ;;  %v1799_v59 = vmax.f32 %v3354_v50, 0.0  ;;  %v216_v63 = vmax.f32 %v184_v51, 0.0  ;;  %v217_v0 = vmax.f32 %v185_v52, 0.0  ;;  %v186_v17 = vld [vmem:[%s4330_s25 + $0xa8] sm:$0xff] }
  0x2c   : > { %v1800_v6 = vmax.f32 %v3355_v53, 0.0  ;;  %v190_v53 = vld [vmem:[%s4330_s25 + $0xd8] sm:$0xff] }
  0x2d   : > { %v4588_v13 = vpack.c.bf16 %v217_v0, %v216_v63 }
  0x2f   : > { %3695 = vmatmul.mubr.msk.bf16.gmra.mrb[12].mxu1 %vm335_vm1, %v4391_v49 }
  0x30   : > { %3831 = vmatmul.mubr.msk.bf16.gmra.mrb[12].mxu0 %vm335_vm1, %v4405_v58  ;;  %3698 = vmatprep.mubr.msk.bf16.mxu1 %vm335_vm1, %v4405_v58 }
  0x31   : > { %3852 = vmatprep.mubr.msk.bf16.mxu0 %vm335_vm1, %v4410_v62 }
  0x37   : > { %3699 = vmatmul.mubr.msk.bf16.gmra.mrb[16].mxu1 %vm335_vm1, %v4425_v14 }
  0x38   : > { %3853 = vmatmul.mubr.msk.bf16.vlgmr.msra.gmra.mrb[0].mxu0 %vm335_vm1, %v4427_v15  ;;  %3702 = vmatprep.mubr.msk.bf16.mxu1 %vm335_vm1, %v4429_v16 }
  0x39   : > { %3885 = vmatpush3.bf16.msra.mxu0 %v2198_v24  ;;  %3856 = vmatprep.mubr.msk.bf16.mxu0 %vm335_vm1, %v4434_v20  ;;  %v205_v24 = vmax.f32 %v173_v12, 0.0  ;;  %v180_v12 = vld [vmem:[%s4330_s25 + $0x60] sm:$0xff] }
  0x3a   : > { %4252 = vmatprep.subr.msk.bf16.mxu0 %vm384_vm0, %v4448_v31 }
  0x3b   : > { %v236_v32 = vpack.c.bf16 %v205_v24, %v204_v23  ;;  %v1795_v23 = vmax.f32 %v3350_v11, 0.0  ;;  %v212_v24 = vmax.f32 %v180_v12, 0.0  ;;  %v4584_v11 = vpack.c.bf16 %v215_v56, %v214_v55  ;;  %v192_v55 = vld [vmem:[%s4330_s25 + $0xf0] sm:$0xff]  ;;  %v193_v56 = vld [vmem:[%s4330_s25 + $0xf8] sm:$0xff] }
  0x3c   : > { %v4586_v12 = vpack.c.bf16 %v1799_v59, %v1798_v57  ;;  %v222_v57 = vmax.f32 %v190_v53, 0.0  ;;  %v224_v63 = vmax.f32 %v192_v55, 0.0  ;;  %v225_v0 = vmax.f32 %v193_v56, 0.0  ;;  %v200_v53 = vld [vmem:[%s4330_s25 + $0x150] sm:$0xff] }
  0x3d   : > { %v4562_v34 = vpack.c.bf16 %v1795_v23, %v1794_v35  ;;  %v4564_v37 = vpack.c.bf16 %v213_v26, %v212_v24  ;;  %v3358_v35 = vld [vmem:[%s4330_s25 + $0x18a] sm:$0xff]  ;;  %v188_v23 = vld [vmem:[%s4330_s25 + $0xc0] sm:$0xff]  ;;  %v218_v26 = vmax.f32 %v186_v17, 0.0 }
  0x3e   : > { %v189_v24 = vld [vmem:[%s4330_s25 + $0xc8] sm:$0xff]  ;;  %v1803_v40 = vmax.f32 %v3358_v35, 0.0  ;;  %v220_v44 = vmax.f32 %v188_v23, 0.0  ;;  %v2524_v23 = vsel %vm384_vm0, %v4448_v31, 0 }
  0x3f   : > { %3703 = vmatmul.mubr.msk.bf16.gmra.mrb[20].mxu1 %vm335_vm1, %v4458_v41  ;;  %v221_v45 = vmax.f32 %v189_v24, 0.0  ;;  %v194_v17 = vld [vmem:[%s4330_s25 + $0x108] sm:$0xff] }
  0x40   : > { %3857 = vmatmul.mubr.msk.bf16.gmra.mrb[4].mxu0 %vm335_vm1, %v4460_v42  ;;  %3706 = vmatprep.mubr.msk.bf16.mxu1 %vm335_vm1, %v4462_v43  ;;  %v197_v35 = vld [vmem:[%s4330_s25 + $0x128] sm:$0xff]  ;;  %v226_v24 = vmax.f32 %v194_v17, 0.0 }
  0x41   : > { %3860 = vmatprep.mubr.msk.bf16.mxu0 %vm335_vm1, %v4467_v47  ;;  %v4608_v52 = vpack.c.bf16 %v221_v45, %v220_v44  ;;  %v229_v31 = vmax.f32 %v197_v35, 0.0  ;;  %v198_v45 = vld [vmem:[%s4330_s25 + $0x138] sm:$0xff]  ;;  %v202_v17 = vld [vmem:[%s4330_s25 + $0x168] sm:$0xff] }
  0x42   : > { %v230_v55 = vmax.f32 %v198_v45, 0.0  ;;  %v762_v35 = vld [vmem:[%s4330_s25 + $0xa] sm:$0xff] }
  0x47   : > { %3707 = vmatmul.mubr.msk.bf16.gmra.mrb[24].mxu1 %vm335_vm1, %v4482_v2 }
  0x48   : > { %3861 = vmatmul.mubr.msk.bf16.gmra.mrb[8].mxu0 %vm335_vm1, %v4484_v4  ;;  %3710 = vmatprep.mubr.msk.bf16.mxu1 %vm335_vm1, %v4486_v5 }
  0x49   : > { %3864 = vmatprep.mubr.msk.bf16.mxu0 %vm335_vm1, %v4491_v9 }
  0x4f   : > { %3711 = vmatmul.mubr.msk.bf16.gmra.mrb[28].mxu1 %vm335_vm1, %v4506_v28 }
  0x50   : > { %3865 = vmatmul.mubr.msk.bf16.gmra.mrb[12].mxu0 %vm335_vm1, %v4508_v30  ;;  %3716 = vmatprep.mubr.msk.bf16.mxu1 %vm335_vm1, %v236_v32  ;;  %v1797_v32 = vmax.f32 %v3352_v18, 0.0  ;;  %v187_v18 = vld [vmem:[%s4330_s25 + $0xb0] sm:$0xff] }
  0x51   : > { %3868 = vmatprep.mubr.msk.bf16.mxu0 %vm335_vm1, %v4512_v36 }
  0x52   : > { %v4569_v46 = vpack.c.bf16 %v1797_v32, %v1796_v27  ;;  %v219_v27 = vmax.f32 %v187_v18, 0.0  ;;  %v1802_v32 = vmax.f32 %v3357_v19, 0.0  ;;  %v195_v18 = vld [vmem:[%s4330_s25 + $0x110] sm:$0xff]  ;;  %v196_v19 = vld [vmem:[%s4330_s25 + $0x120] sm:$0xff] }
  0x54   : > { %v4606_v50 = vpack.c.bf16 %v219_v27, %v218_v26  ;;  %v1819_v51 = vpack.c.bf16 %v1803_v40, %v1802_v32  ;;  %v227_v26 = vmax.f32 %v195_v18, 0.0  ;;  %v4636_v27 = vld [vmem:[%s4994_s1 + $0x20] sm:$0xf]  ;;  %v228_v32 = vmax.f32 %v196_v19, 0.0  ;;  %v203_v18 = vld [vmem:[%s4330_s25 + $0x170] sm:$0xff] }
  0x55   : > { %v761_v19 = vld [vmem:[%s4330_s25 + $0x2] sm:$0xff] }
  0x56   : > { %v4646_v40 = vpack.c.bf16 %v227_v26, %v226_v24  ;;  %v4648_v44 = vpack.c.bf16 %v229_v31, %v228_v32  ;;  %v235_v24 = vmax.f32 %v203_v18, 0.0  ;;  %v793_v26 = vmax.f32 %v761_v19, 0.0 }
  0x57   : > { %3717 = vmatmul.mubr.msk.bf16.vlgmr.msra.gmra.mrb[0].mxu1 %vm335_vm1, %v4527_v60  ;;  %v794_v32 = vmax.f32 %v762_v35, 0.0 }
  0x58   : > { %3749 = vmatpush3.bf16.msra.mxu1 %v892_v7  ;;  %3869 = vmatmul.mubr.msk.bf16.gmra.mrb[16].mxu0 %vm335_vm1, %v4529_v61  ;;  %v1801_v7 = vmax.f32 %v3356_v54, 0.0  ;;  %v191_v54 = vld [vmem:[%s4330_s25 + $0xe0] sm:$0xff] }
  0x59   : > { %3720 = vmatprep.mubr.msk.bf16.mxu1 %vm335_vm1, %v4536_v8  ;;  %3872 = vmatprep.mubr.msk.bf16.mxu0 %vm335_vm1, %v4538_v10  ;;  %v223_v59 = vmax.f32 %v191_v54, 0.0  ;;  %v201_v54 = vld [vmem:[%s4330_s25 + $0x158] sm:$0xff]  ;;  %v825_v45 = vpack.c.bf16 %v794_v32, %v793_v26  ;;  %v3489_v32 = vld [vmem:[%s4330_s25 + $0xe2] sm:$0xff] }
  0x5a   : > { %4247 = vmatprep.subr.msk.bf16.mxu1 %vm384_vm0, %v4550_v22  ;;  %v4593_v21 = vpack.c.bf16 %v1801_v7, %v1800_v6  ;;  %v4623_v7 = vpack.c.bf16 %v225_v0, %v224_v63 }
  0x5b   : > { %v4621_v6 = vpack.c.bf16 %v223_v59, %v222_v57  ;;  %v232_v57 = vmax.f32 %v200_v53, 0.0  ;;  %v233_v59 = vmax.f32 %v201_v54, 0.0  ;;  %v3404_v53 = vld [vmem:[%s4330_s25 + $0x180] sm:$0xff] }
  0x5d   : > { %v4664_v0 = vpack.c.bf16 %v233_v59, %v232_v57  ;;  %v3484_v57 = vld [vmem:[%s4330_s25 + $0xaa] sm:$0xff]  ;;  %v3485_v59 = vld [vmem:[%s4330_s25 + $0xb2] sm:$0xff] }
  0x5e   : > { %v2762_v18 = vmax.f32 %v3485_v59, 0.0  ;;  %v3304_v59 = vld [vmem:[%s4330_s25 + $0x151] sm:$0xff] }
  0x5f   : > { %3721 = vmatmul.mubr.msk.bf16.gmra.mrb[4].mxu1 %vm335_vm1, %v4560_v33 }
  0x60   : > { %3873 = vmatmul.mubr.msk.bf16.gmra.mrb[20].mxu0 %vm335_vm1, %v4562_v34  ;;  %3724 = vmatprep.mubr.msk.bf16.mxu1 %vm335_vm1, %v4564_v37 }
  0x61   : > { %3876 = vmatprep.mubr.msk.bf16.mxu0 %vm335_vm1, %v4569_v46 }
  0x67   : > { %3725 = vmatmul.mubr.msk.bf16.gmra.mrb[8].mxu1 %vm335_vm1, %v4584_v11 }
  0x68   : > { %3877 = vmatmul.mubr.msk.bf16.gmra.mrb[24].mxu0 %vm335_vm1, %v4586_v12  ;;  %3728 = vmatprep.mubr.msk.bf16.mxu1 %vm335_vm1, %v4588_v13 }
  0x69   : > { %3880 = vmatprep.mubr.msk.bf16.mxu0 %vm335_vm1, %v4593_v21 }
  0x6f   : > { %3729 = vmatmul.mubr.msk.bf16.gmra.mrb[12].mxu1 %vm335_vm1, %v4606_v50 }
  0x70   : > { %3881 = vmatmul.mubr.msk.bf16.gmra.mrb[28].mxu0 %vm335_vm1, %v1819_v51  ;;  %3732 = vmatprep.mubr.msk.bf16.mxu1 %vm335_vm1, %v4608_v52  ;;  %v199_v51 = vld [vmem:[%s4330_s25 + $0x140] sm:$0xff] }
  0x71   : > { %3886 = vmatprep.mubr.msk.bf16.mxu0 %vm335_vm1, %v4536_v8  ;;  %v231_v56 = vmax.f32 %v199_v51, 0.0  ;;  %v1219_v51 = vsel %vm384_vm0, %v4550_v22, 0  ;;  %v3405_v22 = vld [vmem:[%s4330_s25 + $0x188] sm:$0xff] }
  0x73   : > { %v4662_v63 = vpack.c.bf16 %v231_v56, %v230_v55  ;;  %v3406_v55 = vld [vmem:[%s4330_s25 + $0x198] sm:$0xff] }
  0x77   : > { %3733 = vmatmul.mubr.msk.bf16.gmra.mrb[16].mxu1 %vm335_vm1, %v4621_v6 }
  0x78   : > { %3887 = vmatmul.mubr.msk.bf16.vlgmr.msra.gmra.mrb[0].mxu0 %vm335_vm1, %v4560_v33  ;;  %3736 = vmatprep.mubr.msk.bf16.mxu1 %vm335_vm1, %v4623_v7 }
  0x79   : > { %3919 = vmatpush3.bf16.msra.mxu0 %v2524_v23  ;;  %3890 = vmatprep.mubr.msk.bf16.mxu0 %vm335_vm1, %v4564_v37  ;;  %v234_v23 = vmax.f32 %v202_v17, 0.0  ;;  %v3487_v17 = vld [vmem:[%s4330_s25 + $0xca] sm:$0xff] }
  0x7a   : > { %4253 = vmatprep.subr.msk.bf16.mxu0 %vm384_vm0, %v4636_v27  ;;  %v2764_v35 = vmax.f32 %v3487_v17, 0.0  ;;  %v3500_v17 = vld [vmem:[%s4330_s25 + $0x16a] sm:$0xff] }
  0x7b   : > { %v4678_v31 = vpack.c.bf16 %v235_v24, %v234_v23  ;;  %v3488_v24 = vld [vmem:[%s4330_s25 + $0xda] sm:$0xff] }
  0x7f   : > { %3737 = vmatmul.mubr.msk.bf16.gmra.mrb[20].mxu1 %vm335_vm1, %v4646_v40 }
  0x80   : > { %3891 = vmatmul.mubr.msk.bf16.gmra.mrb[4].mxu0 %vm335_vm1, %v4584_v11  ;;  %3740 = vmatprep.mubr.msk.bf16.mxu1 %vm335_vm1, %v4648_v44 }
  0x81   : > { %3894 = vmatprep.mubr.msk.bf16.mxu0 %vm335_vm1, %v4588_v13 }
  0x87   : > { %3741 = vmatmul.mubr.msk.bf16.gmra.mrb[24].mxu1 %vm335_vm1, %v4662_v63 }
  0x88   : > { %3895 = vmatmul.mubr.msk.bf16.gmra.mrb[8].mxu0 %vm335_vm1, %v4606_v50  ;;  %3744 = vmatprep.mubr.msk.bf16.mxu1 %vm335_vm1, %v4664_v0 }
  0x89   : > { %3898 = vmatprep.mubr.msk.bf16.mxu0 %vm335_vm1, %v4608_v52 }
  0x8f   : > { %3745 = vmatmul.mubr.msk.bf16.gmra.mrb[28].mxu1 %vm335_vm1, %v4678_v31 }
  0x90   : > { %3899 = vmatmul.mubr.msk.bf16.gmra.mrb[12].mxu0 %vm335_vm1, %v4621_v6  ;;  %3750 = vmatprep.mubr.msk.bf16.mxu1 %vm335_vm1, %v825_v45  ;;  %v3294_v45 = vld [vmem:[%s4330_s25 + $0xd9] sm:$0xff] }
  0x91   : > { %3902 = vmatprep.mubr.msk.bf16.mxu0 %vm335_vm1, %v4623_v7 }
  0x97   : > { %3751 = vmatmul.mubr.msk.bf16.vlgmr.msra.gmra.mrb[0].mxu1 %vm335_vm1, %v4410_v62  ;;  %v2127_v62 = vmax.f32 %v3404_v53, 0.0  ;;  %v3491_v53 = vld [vmem:[%s4330_s25 + $0xfa] sm:$0xff] }
  0x98   : > { %3783 = vmatpush3.bf16.msra.mxu1 %v1219_v51  ;;  %3903 = vmatmul.mubr.msk.bf16.gmra.mrb[16].mxu0 %vm335_vm1, %v4646_v40  ;;  %v3295_v51 = vld [vmem:[%s4330_s25 + $0xe1] sm:$0xff] }
  0x99   : > { %3754 = vmatprep.mubr.msk.bf16.mxu1 %vm335_vm1, %v4427_v15  ;;  %3906 = vmatprep.mubr.msk.bf16.mxu0 %vm335_vm1, %v4648_v44  ;;  %v2128_v15 = vmax.f32 %v3405_v22, 0.0  ;;  %v2766_v22 = vmax.f32 %v3489_v32, 0.0 }
  0x9a   : > { %4249 = vmatprep.subr.msk.bf16.mxu1 %vm384_vm0, %v4305_v1  ;;  %v3407_v1 = vld [vmem:[%s4330_s25 + $0x1a0] sm:$0xff] }
  0x9b   : > { %v4709_v54 = vpack.c.bf16 %v2128_v15, %v2127_v62  ;;  %v1462_v62 = vmax.f32 %v3294_v45, 0.0  ;;  %v1463_v15 = vmax.f32 %v3295_v51, 0.0  ;;  %v2777_v45 = vmax.f32 %v3500_v17, 0.0 }
  0x9f   : > { %3755 = vmatmul.mubr.msk.bf16.gmra.mrb[4].mxu1 %vm335_vm1, %v4434_v20  ;;  %v2129_v20 = vmax.f32 %v3406_v55, 0.0 }
  0xa0   : > { %3907 = vmatmul.mubr.msk.bf16.gmra.mrb[20].mxu0 %vm335_vm1, %v4662_v63  ;;  %3758 = vmatprep.mubr.msk.bf16.mxu1 %vm335_vm1, %v4460_v42  ;;  %v2130_v42 = vmax.f32 %v3407_v1, 0.0  ;;  %v2768_v1 = vmax.f32 %v3491_v53, 0.0 }
  0xa1   : > { %3910 = vmatprep.mubr.msk.bf16.mxu0 %vm335_vm1, %v4664_v0 }
  0xa2   : > { %v2146_v56 = vpack.c.bf16 %v2130_v42, %v2129_v20  ;;  %v3296_v42 = vld [vmem:[%s4330_s25 + $0xf1] sm:$0xff] }
  0xa7   : > { %3759 = vmatmul.mubr.msk.bf16.gmra.mrb[8].mxu1 %vm335_vm1, %v4467_v47  ;;  %v2850_v47 = vsel %vm384_vm0, %v4636_v27, 0 }
  0xa8   : > { %3911 = vmatmul.mubr.msk.bf16.gmra.mrb[24].mxu0 %vm335_vm1, %v4678_v31  ;;  %3762 = vmatprep.mubr.msk.bf16.mxu1 %vm335_vm1, %v4484_v4 }
  0xa9   : > { %3914 = vmatprep.mubr.msk.bf16.mxu0 %vm335_vm1, %v4709_v54 }
  0xaf   : > { %3763 = vmatmul.mubr.msk.bf16.gmra.mrb[12].mxu1 %vm335_vm1, %v4491_v9  ;;  %v3476_v9 = vld [vmem:[%s4330_s25 + $0x4a] sm:$0xff] }
  0xb0   : > { %3915 = vmatmul.mubr.msk.bf16.gmra.mrb[28].mxu0 %vm335_vm1, %v2146_v56  ;;  %3766 = vmatprep.mubr.msk.bf16.mxu1 %vm335_vm1, %v4508_v30  ;;  %v3477_v30 = vld [vmem:[%s4330_s25 + $0x52] sm:$0xff] }
  0xb1   : > { %3920 = vmatprep.mubr.msk.bf16.mxu0 %vm335_vm1, %v4341_v25  ;;  %v3453_v25 = vld [vmem:[%s4330_s25 + $0x181] sm:$0xff]  ;;  %v3297_v56 = vld [vmem:[%s4330_s25 + $0xf9] sm:$0xff] }
  0xb7   : > { %3767 = vmatmul.mubr.msk.bf16.gmra.mrb[16].mxu1 %vm335_vm1, %v4512_v36  ;;  %v3478_v36 = vld [vmem:[%s4330_s25 + $0x62] sm:$0xff] }
  0xb8   : > { %3921 = vmatmul.mubr.msk.bf16.vlgmr.msra.gmra.mrb[0].mxu0 %vm335_vm1, %v4347_v29  ;;  %3770 = vmatprep.mubr.msk.bf16.mxu1 %vm335_vm1, %v4529_v61  ;;  %v3454_v29 = vld [vmem:[%s4330_s25 + $0x189] sm:$0xff]  ;;  %v2754_v61 = vmax.f32 %v3477_v30, 0.0  ;;  %v3300_v30 = vld [vmem:[%s4330_s25 + $0x121] sm:$0xff] }
  0xb9   : > { %3953 = vmatpush3.bf16.msra.mxu0 %v2850_v47  ;;  %3924 = vmatprep.mubr.msk.bf16.mxu0 %vm335_vm1, %v4373_v38  ;;  %v2454_v38 = vmax.f32 %v3454_v29, 0.0  ;;  %v3492_v47 = vld [vmem:[%s4330_s25 + $0x10a] sm:$0xff]  ;;  %v3493_v29 = vld [vmem:[%s4330_s25 + $0x112] sm:$0xff] }
  0xbf   : > { %3771 = vmatmul.mubr.msk.bf16.gmra.mrb[20].mxu1 %vm335_vm1, %v4538_v10 }
  0xc0   : > { %3925 = vmatmul.mubr.msk.bf16.gmra.mrb[4].mxu0 %vm335_vm1, %v4375_v39  ;;  %3774 = vmatprep.mubr.msk.bf16.mxu1 %vm335_vm1, %v4562_v34 }
  0xc1   : > { %3928 = vmatprep.mubr.msk.bf16.mxu0 %vm335_vm1, %v4389_v48  ;;  %v3455_v48 = vld [vmem:[%s4330_s25 + $0x199] sm:$0xff] }
  0xc7   : > { %3775 = vmatmul.mubr.msk.bf16.gmra.mrb[24].mxu1 %vm335_vm1, %v4569_v46  ;;  %v3481_v46 = vld [vmem:[%s4330_s25 + $0x82] sm:$0xff] }
  0xc8   : > { %3929 = vmatmul.mubr.msk.bf16.gmra.mrb[8].mxu0 %vm335_vm1, %v4391_v49  ;;  %3778 = vmatprep.mubr.msk.bf16.mxu1 %vm335_vm1, %v4586_v12  ;;  %v3456_v49 = vld [vmem:[%s4330_s25 + $0x1a1] sm:$0xff] }
  0xc9   : > { %3932 = vmatprep.mubr.msk.bf16.mxu0 %vm335_vm1, %v4405_v58  ;;  %v3474_v58 = vld [vmem:[%s4330_s25 + $0x32] sm:$0xff]  ;;  %v3483_v12 = vld [vmem:[%s4330_s25 + $0x9a] sm:$0xff] }
  0xcf   : > { %3779 = vmatmul.mubr.msk.bf16.gmra.mrb[28].mxu1 %vm335_vm1, %v4593_v21  ;;  %v2758_v21 = vmax.f32 %v3481_v46, 0.0 }
  0xd0   : > { %3933 = vmatmul.mubr.msk.bf16.gmra.mrb[12].mxu0 %vm335_vm1, %v4425_v14  ;;  %3784 = vmatprep.mubr.msk.bf16.mxu1 %vm335_vm1, %v4527_v60  ;;  %v3475_v14 = vld [vmem:[%s4330_s25 + $0x3a] sm:$0xff]  ;;  %v2753_v60 = vmax.f32 %v3476_v9, 0.0 }
  0xd1   : > { %3936 = vmatprep.mubr.msk.bf16.mxu0 %vm335_vm1, %v4429_v16  ;;  %v2455_v16 = vmax.f32 %v3455_v48, 0.0  ;;  %v3495_v48 = vld [vmem:[%s4330_s25 + $0x12a] sm:$0xff] }
  0xd7   : > { %3785 = vmatmul.mubr.msk.bf16.vlgmr.msra.gmra.mrb[0].mxu1 %vm335_vm1, %v4536_v8  ;;  %v2755_v8 = vmax.f32 %v3478_v36, 0.0  ;;  %v3301_v36 = vld [vmem:[%s4330_s25 + $0x129] sm:$0xff] }
  0xd8   : > { %3987 = vmatpush3.bf16.msra.mxu1 %v4313_v3  ;;  %3937 = vmatmul.mubr.msk.bf16.gmra.mrb[16].mxu0 %vm335_vm1, %v4458_v41  ;;  %v2453_v3 = vmax.f32 %v3453_v25, 0.0  ;;  %v2456_v41 = vmax.f32 %v3456_v49, 0.0  ;;  %v1464_v49 = vmax.f32 %v3296_v42, 0.0  ;;  %v1469_v46 = vmax.f32 %v3301_v36, 0.0 }
  0xd9   : > { %3788 = vmatprep.mubr.msk.bf16.mxu1 %vm335_vm1, %v4560_v33  ;;  %3940 = vmatprep.mubr.msk.bf16.mxu0 %vm335_vm1, %v4462_v43  ;;  %v2751_v43 = vmax.f32 %v3474_v58, 0.0  ;;  %v2784_v33 = vpack.c.bf16 %v2754_v61, %v2753_v60  ;;  %v1465_v58 = vmax.f32 %v3297_v56, 0.0  ;;  %v3497_v61 = vld [vmem:[%s4330_s25 + $0x142] sm:$0xff] }
  0xda   : > { %v4781_v39 = vpack.c.bf16 %v2454_v38, %v2453_v3  ;;  %v2472_v4 = vpack.c.bf16 %v2456_v41, %v2455_v16  ;;  %v3298_v3 = vld [vmem:[%s4330_s25 + $0x109] sm:$0xff]  ;;  %v2770_v16 = vmax.f32 %v3493_v29, 0.0 }
  0xdb   : > { %v3494_v38 = vld [vmem:[%s4330_s25 + $0x122] sm:$0xff]  ;;  %v1466_v41 = vmax.f32 %v3298_v3, 0.0 }
  0xdf   : > { %3789 = vmatmul.mubr.msk.bf16.gmra.mrb[4].mxu1 %vm335_vm1, %v4564_v37  ;;  %v3480_v37 = vld [vmem:[%s4330_s25 + $0x7a] sm:$0xff] }
  0xe0   : > { %3941 = vmatmul.mubr.msk.bf16.gmra.mrb[20].mxu0 %vm335_vm1, %v4482_v2  ;;  %3792 = vmatprep.mubr.msk.bf16.mxu1 %vm335_vm1, %v4584_v11  ;;  %v2752_v2 = vmax.f32 %v3475_v14, 0.0  ;;  %v3482_v11 = vld [vmem:[%s4330_s25 + $0x92] sm:$0xff]  ;;  %v2769_v14 = vmax.f32 %v3492_v47, 0.0 }
  0xe1   : > { %3944 = vmatprep.mubr.msk.bf16.mxu0 %vm335_vm1, %v4486_v5 }
  0xe2   : > { %v2783_v5 = vpack.c.bf16 %v2752_v2, %v2751_v43  ;;  %v2772_v2 = vmax.f32 %v3495_v48, 0.0 }
  0xe7   : > { %3793 = vmatmul.mubr.msk.bf16.gmra.mrb[8].mxu1 %vm335_vm1, %v4588_v13  ;;  %v2757_v13 = vmax.f32 %v3480_v37, 0.0  ;;  %v1468_v37 = vmax.f32 %v3300_v30, 0.0 }
  0xe8   : > { %3945 = vmatmul.mubr.msk.bf16.gmra.mrb[24].mxu0 %vm335_vm1, %v4506_v28  ;;  %3796 = vmatprep.mubr.msk.bf16.mxu1 %vm335_vm1, %v4606_v50  ;;  %v3479_v28 = vld [vmem:[%s4330_s25 + $0x6a] sm:$0xff]  ;;  %v2759_v50 = vmax.f32 %v3482_v11, 0.0 }
  0xe9   : > { %3948 = vmatprep.mubr.msk.bf16.mxu0 %vm335_vm1, %v4781_v39  ;;  %v2756_v10 = vmax.f32 %v3479_v28, 0.0  ;;  %v3496_v28 = vld [vmem:[%s4330_s25 + $0x13a] sm:$0xff] }
  0xea   : > { %v2773_v11 = vmax.f32 %v3496_v28, 0.0 }
  0xeb   : > { %v2785_v34 = vpack.c.bf16 %v2756_v10, %v2755_v8  ;;  %v3302_v8 = vld [vmem:[%s4330_s25 + $0x139] sm:$0xff]  ;;  %v3303_v10 = vld [vmem:[%s4330_s25 + $0x141] sm:$0xff] }
  0xef   : > { %3797 = vmatmul.mubr.msk.bf16.gmra.mrb[12].mxu1 %vm335_vm1, %v4608_v52  ;;  %v2760_v52 = vmax.f32 %v3483_v12, 0.0  ;;  %v2774_v12 = vmax.f32 %v3497_v61, 0.0 }
  0xf0   : > { %3949 = vmatmul.mubr.msk.bf16.gmra.mrb[28].mxu0 %vm335_vm1, %v2472_v4  ;;  %3800 = vmatprep.mubr.msk.bf16.mxu1 %vm335_vm1, %v4621_v6  ;;  %v2786_v6 = vpack.c.bf16 %v2758_v21, %v2757_v13  ;;  %v1487_v4 = vpack.c.bf16 %v1465_v58, %v1464_v49  ;;  %v1470_v13 = vmax.f32 %v3302_v8, 0.0  ;;  %v1471_v21 = vmax.f32 %v3303_v10, 0.0 }
  0xf1   : > { %3954 = vmatprep.mubr.msk.bf16.mxu0 %vm335_vm1, %v2783_v5  ;;  %v2787_v27 = vpack.c.bf16 %v2760_v52, %v2759_v50  ;;  %v2792_v5 = vpack.c.bf16 %v2770_v16, %v2769_v14 }
  0xf7   : > { %3801 = vmatmul.mubr.msk.bf16.gmra.mrb[16].mxu1 %vm335_vm1, %v4623_v7  ;;  %v3486_v7 = vld [vmem:[%s4330_s25 + $0xc2] sm:$0xff] }
  0xf8   : > { %3955 = vmatmul.mubr.msk.bf16.vlgmr.msra.gmra.mrb[0].mxu0 %vm335_vm1, %v2784_v33  ;;  %3804 = vmatprep.mubr.msk.bf16.mxu1 %vm335_vm1, %v4646_v40  ;;  %v2761_v40 = vmax.f32 %v3484_v57, 0.0  ;;  %v2763_v19 = vmax.f32 %v3486_v7, 0.0  ;;  %v3498_v33 = vld [vmem:[%s4330_s25 + $0x152] sm:$0xff]  ;;  %v1490_v57 = vpack.c.bf16 %v1471_v21, %v1470_v13 }
  0xf9   : > { %3958 = vmatprep.mubr.msk.bf16.mxu0 %vm335_vm1, %v2785_v34  ;;  %v3499_v34 = vld [vmem:[%s4330_s25 + $0x15a] sm:$0xff]  ;;  %v2775_v50 = vmax.f32 %v3498_v33, 0.0 }
  0xfa   : > { %v2788_v23 = vpack.c.bf16 %v2762_v18, %v2761_v40  ;;  %v2789_v26 = vpack.c.bf16 %v2764_v35, %v2763_v19  ;;  %v2776_v52 = vmax.f32 %v3499_v34, 0.0  ;;  %v3305_v7 = vld [vmem:[%s4330_s25 + $0x159] sm:$0xff]  ;;  %v3306_v19 = vld [vmem:[%s4330_s25 + $0x169] sm:$0xff]  ;;  %v3307_v35 = vld [vmem:[%s4330_s25 + $0x171] sm:$0xff] }
  0xfb   : > { %v3501_v18 = vld [vmem:[%s4330_s25 + $0x172] sm:$0xff]  ;;  %v1473_v32 = vmax.f32 %v3305_v7, 0.0  ;;  %v1475_v53 = vmax.f32 %v3307_v35, 0.0 }
  0xfc   : > { %v2795_v40 = vpack.c.bf16 %v2776_v52, %v2775_v50  ;;  %v2778_v51 = vmax.f32 %v3501_v18, 0.0 }
  0xff   : > { %3805 = vmatmul.mubr.msk.bf16.gmra.mrb[20].mxu1 %vm335_vm1, %v4648_v44  ;;  %v3490_v44 = vld [vmem:[%s4330_s25 + $0xf2] sm:$0xff] }
 0x100   : > { %3959 = vmatmul.mubr.msk.bf16.gmra.mrb[4].mxu0 %vm335_vm1, %v2786_v6  ;;  %3808 = vmatprep.mubr.msk.bf16.mxu1 %vm335_vm1, %v4662_v63  ;;  %v2765_v63 = vmax.f32 %v3488_v24, 0.0  ;;  %v2767_v55 = vmax.f32 %v3490_v44, 0.0  ;;  %v1489_v6 = vpack.c.bf16 %v1469_v46, %v1468_v37  ;;  %v3503_v24 = vld [vmem:[%s4330_s25 + $0x18a] sm:$0xff]  ;;  %v1474_v44 = vmax.f32 %v3306_v19, 0.0 }
 0x101   : > { %3962 = vmatprep.mubr.msk.bf16.mxu0 %vm335_vm1, %v2787_v27  ;;  %v2794_v27 = vpack.c.bf16 %v2774_v12, %v2773_v11 }
 0x102   : > { %v2790_v20 = vpack.c.bf16 %v2766_v22, %v2765_v63  ;;  %v2791_v25 = vpack.c.bf16 %v2768_v1, %v2767_v55  ;;  %v2780_v22 = vmax.f32 %v3503_v24, 0.0  ;;  %v1492_v55 = vpack.c.bf16 %v1475_v53, %v1474_v44 }
 0x107   : > { %3809 = vmatmul.mubr.msk.bf16.gmra.mrb[24].mxu1 %vm335_vm1, %v4664_v0  ;;  %v1486_v0 = vpack.c.bf16 %v1463_v15, %v1462_v62  ;;  %v2796_v15 = vpack.c.bf16 %v2778_v51, %v2777_v45 }
 0x108   : > { %3963 = vmatmul.mubr.msk.bf16.gmra.mrb[8].mxu0 %vm335_vm1, %v2788_v23  ;;  %3812 = vmatprep.mubr.msk.bf16.mxu1 %vm335_vm1, %v4678_v31  ;;  %v3299_v31 = vld [vmem:[%s4330_s25 + $0x111] sm:$0xff]  ;;  %v3502_v23 = vld [vmem:[%s4330_s25 + $0x182] sm:$0xff] }
 0x109   : > { %3966 = vmatprep.mubr.msk.bf16.mxu0 %vm335_vm1, %v2789_v26  ;;  %v1467_v43 = vmax.f32 %v3299_v31, 0.0  ;;  %v1472_v26 = vmax.f32 %v3304_v59, 0.0  ;;  %v2779_v63 = vmax.f32 %v3502_v23, 0.0 }
 0x10b   : > { %v1488_v9 = vpack.c.bf16 %v1467_v43, %v1466_v41  ;;  %v1491_v62 = vpack.c.bf16 %v1473_v32, %v1472_v26  ;;  %v2797_v1 = vpack.c.bf16 %v2780_v22, %v2779_v63 }
 0x10f   : > { %3813 = vmatmul.mubr.msk.bf16.gmra.mrb[28].mxu1 %vm335_vm1, %v4709_v54  ;;  %v2771_v54 = vmax.f32 %v3494_v38, 0.0 }
 0x110   : > { %3967 = vmatmul.mubr.msk.bf16.gmra.mrb[12].mxu0 %vm335_vm1, %v2790_v20  ;;  %3834 = vmatprep.mubr.msk.bf16.mxu1 %vm335_vm1, %v1486_v0  ;;  %v3504_v20 = vld [vmem:[%s4330_s25 + $0x19a] sm:$0xff]  ;;  %v3505_v0 = vld [vmem:[%s4330_s25 + $0x1a2] sm:$0xff] }
 0x111   : > { %3970 = vmatprep.mubr.msk.bf16.mxu0 %vm335_vm1, %v2791_v25  ;;  %v2793_v60 = vpack.c.bf16 %v2772_v2, %v2771_v54  ;;  %v2781_v42 = vmax.f32 %v3504_v20, 0.0  ;;  %v2782_v56 = vmax.f32 %v3505_v0, 0.0 }
 0x113   : > { %v2798_v47 = vpack.c.bf16 %v2782_v56, %v2781_v42 }
 0x117   : > { %3835 = vmatmul.mubr.msk.bf16.vlgmr.msra.gmra.mrb[16].mxu1 %vm335_vm1, %v1487_v4 }
 0x118   : > { %3971 = vmatmul.mubr.msk.bf16.gmra.mrb[16].mxu0 %vm335_vm1, %v2792_v5  ;;  %3838 = vmatprep.mubr.msk.bf16.mxu1 %vm335_vm1, %v1488_v9  ;;  %v4887_v9 = vld [vmem:[%s4995_s2] ss:$0 sm:$0xff] }
 0x119   : > { %3974 = vmatprep.mubr.msk.bf16.mxu0 %vm335_vm1, %v2793_v60 }
 0x11f   : > { %3839 = vmatmul.mubr.msk.bf16.gmra.mrb[20].mxu1 %vm335_vm1, %v1489_v6 }
 0x120   : > { %3975 = vmatmul.mubr.msk.bf16.gmra.mrb[20].mxu0 %vm335_vm1, %v2794_v27  ;;  %3842 = vmatprep.mubr.msk.bf16.mxu1 %vm335_vm1, %v1490_v57 }
 0x121   : > { %3978 = vmatprep.mubr.msk.bf16.mxu0 %vm335_vm1, %v2795_v40 }
 0x127   : > { %3843 = vmatmul.mubr.msk.bf16.gmra.mrb[24].mxu1 %vm335_vm1, %v1491_v62 }
 0x128   : > { %3979 = vmatmul.mubr.msk.bf16.gmra.mrb[24].mxu0 %vm335_vm1, %v2796_v15  ;;  %3846 = vmatprep.mubr.msk.bf16.mxu1 %vm335_vm1, %v1492_v55 }
 0x129   : > { %3982 = vmatprep.mubr.msk.bf16.mxu0 %vm335_vm1, %v2797_v1 }
 0x12f   : > { %3847 = vmatmul.mubr.msk.bf16.gmra.mrb[28].mxu1 %vm335_vm1, %v4781_v39 }
 0x130   : > { %3983 = vmatmul.mubr.msk.bf16.gmra.mrb[28].mxu0 %vm335_vm1, %v2798_v47 }
 0x1aa   : > { %v3786_v25 = vpop.f32.mrb[0].mxu1 }
 0x1ab   : > { %v1255_v29 = vpop.f32.mrb[1].mxu1 }
 0x1ac   : > { %v3787_v3 = vpop.f32.mrb[2].mxu1 }
 0x1ad   : > { %v1258_v31 = vpop.f32.mrb[3].mxu1 }
 0x1b2   : > { %v3790_v38 = vpop.f32.mrb[4].mxu1 }
 0x1b3   : > { %v1271_v48 = vpop.f32.mrb[5].mxu1 }
 0x1b4   : > { %v3791_v49 = vpop.f32.mrb[6].mxu1 }
 0x1b5   : > { %v1274_v58 = vpop.f32.mrb[7].mxu1 }
 0x1ba   : > { %v3794_v14 = vpop.f32.mrb[8].mxu1 }
 0x1bb   : > { %v1287_v16 = vpop.f32.mrb[9].mxu1 }
 0x1bc   : > { %v3795_v41 = vpop.f32.mrb[10].mxu1 }
 0x1bd   : > { %v1290_v43 = vpop.f32.mrb[11].mxu1 }
 0x1c2   : > { %v3798_v54 = vpop.f32.mrb[12].mxu1 }
 0x1c3   : > { %v1303_v2 = vpop.f32.mrb[13].mxu1 }
 0x1c4   : > { %v3799_v4 = vpop.f32.mrb[14].mxu1 }
 0x1c5   : > { %v1306_v5 = vpop.f32.mrb[15].mxu1 }
 0x1cb   : > { %v3956_v39 = vpop.f32.mrb[0].mxu0 }
 0x1cc   : > { %v3988_v30 = vadd.f32 %v3956_v39, %v3786_v25  ;;  %v2886_v36 = vpop.f32.mrb[1].mxu0 }
 0x1cd   : > { %v3989_v28 = vadd.f32 %v2886_v36, %v1255_v29  ;;  %v3957_v60 = vpop.f32.mrb[2].mxu0 }
 0x1ce   : > { %v3054_v61 = vadd.f32 %v3988_v30, %v4887_v9  ;;  %v3990_v8 = vadd.f32 %v3957_v60, %v3787_v3  ;;  %v2889_v10 = vpop.f32.mrb[3].mxu0 }
 0x1cf   : > { %v3052_v33 = vadd.f32 %v3989_v28, %v4887_v9  ;;  %v3991_v34 = vadd.f32 %v2889_v10, %v1258_v31 }
 0x1d0   : > { %3086 = vst.msk [vmem:[%s4892_s16 + $0x10] sm:$0xff] %vm335_vm1, %v3054_v61  ;;  %v3055_v37 = vadd.f32 %v3990_v8, %v4887_v9 }
 0x1d1   : > { %3084 = vst.msk [vmem:[%s4892_s16] sm:$0xff] %vm335_vm1, %v3052_v33  ;;  %v3053_v46 = vadd.f32 %v3991_v34, %v4887_v9 }
 0x1d2   : > { %3087 = vst.msk [vmem:[%s4892_s16 + $0x18] sm:$0xff] %vm335_vm1, %v3055_v37 }
 0x1d3   : > { %3085 = vst.msk [vmem:[%s4892_s16 + $0x8] sm:$0xff] %vm335_vm1, %v3053_v46  ;;  %v3960_v11 = vpop.f32.mrb[4].mxu0 }
 0x1d4   : > { %v3992_v12 = vadd.f32 %v3960_v11, %v3790_v38  ;;  %v2902_v13 = vpop.f32.mrb[5].mxu0 }
 0x1d5   : > { %v3993_v21 = vadd.f32 %v2902_v13, %v1271_v48  ;;  %v3961_v50 = vpop.f32.mrb[6].mxu0 }
 0x1d6   : > { %v3058_v52 = vadd.f32 %v3992_v12, %v4887_v9  ;;  %v3994_v6 = vadd.f32 %v3961_v50, %v3791_v49  ;;  %v2905_v27 = vpop.f32.mrb[7].mxu0 }
 0x1d7   : > { %v3056_v57 = vadd.f32 %v3993_v21, %v4887_v9  ;;  %v3995_v59 = vadd.f32 %v2905_v27, %v1274_v58 }
 0x1d8   : > { %3090 = vst.msk [vmem:[%s4892_s16 + $0x30] sm:$0xff] %vm335_vm1, %v3058_v52  ;;  %v3059_v7 = vadd.f32 %v3994_v6, %v4887_v9 }
 0x1d9   : > { %3088 = vst.msk [vmem:[%s4892_s16 + $0x20] sm:$0xff] %vm335_vm1, %v3056_v57  ;;  %v3057_v17 = vadd.f32 %v3995_v59, %v4887_v9 }
 0x1da   : > { %3091 = vst.msk [vmem:[%s4892_s16 + $0x38] sm:$0xff] %vm335_vm1, %v3059_v7 }
 0x1db   : > { %3089 = vst.msk [vmem:[%s4892_s16 + $0x28] sm:$0xff] %vm335_vm1, %v3057_v17  ;;  %v3964_v40 = vpop.f32.mrb[8].mxu0 }
 0x1dc   : > { %v3996_v18 = vadd.f32 %v3964_v40, %v3794_v14  ;;  %v2918_v19 = vpop.f32.mrb[9].mxu0 }
 0x1dd   : > { %v3997_v35 = vadd.f32 %v2918_v19, %v1287_v16  ;;  %v3965_v23 = vpop.f32.mrb[10].mxu0 }
 0x1de   : > { %v3062_v24 = vadd.f32 %v3996_v18, %v4887_v9  ;;  %v3998_v26 = vadd.f32 %v3965_v23, %v3795_v41  ;;  %v2921_v32 = vpop.f32.mrb[11].mxu0 }
 0x1df   : > { %v3060_v45 = vadd.f32 %v3997_v35, %v4887_v9  ;;  %v3999_v51 = vadd.f32 %v2921_v32, %v1290_v43 }
 0x1e0   : > { %3094 = vst.msk [vmem:[%s4892_s16 + $0x50] sm:$0xff] %vm335_vm1, %v3062_v24  ;;  %v3063_v44 = vadd.f32 %v3998_v26, %v4887_v9 }
 0x1e1   : > { %3092 = vst.msk [vmem:[%s4892_s16 + $0x40] sm:$0xff] %vm335_vm1, %v3060_v45  ;;  %v3061_v53 = vadd.f32 %v3999_v51, %v4887_v9 }
 0x1e2   : > { %3095 = vst.msk [vmem:[%s4892_s16 + $0x58] sm:$0xff] %vm335_vm1, %v3063_v44 }
 0x1e3   : > { %3093 = vst.msk [vmem:[%s4892_s16 + $0x48] sm:$0xff] %vm335_vm1, %v3061_v53  ;;  %v3968_v63 = vpop.f32.mrb[12].mxu0 }
 0x1e4   : > { %v4000_v22 = vadd.f32 %v3968_v63, %v3798_v54  ;;  %v2934_v62 = vpop.f32.mrb[13].mxu0 }
 0x1e5   : > { %v4001_v15 = vadd.f32 %v2934_v62, %v1303_v2  ;;  %v3969_v55 = vpop.f32.mrb[14].mxu0 }
 0x1e6   : > { %v3066_v1 = vadd.f32 %v4000_v22, %v4887_v9  ;;  %v4002_v20 = vadd.f32 %v3969_v55, %v3799_v4  ;;  %v2937_v0 = vpop.f32.mrb[15].mxu0 }
 0x1e7   : > { %v3064_v42 = vadd.f32 %v4001_v15, %v4887_v9  ;;  %v4003_v56 = vadd.f32 %v2937_v0, %v1306_v5 }
 0x1e8   : > { %3098 = vst.msk [vmem:[%s4892_s16 + $0x70] sm:$0xff] %vm335_vm1, %v3066_v1  ;;  %v3067_v47 = vadd.f32 %v4002_v20, %v4887_v9 }
 0x1e9   : > { %3096 = vst.msk [vmem:[%s4892_s16 + $0x60] sm:$0xff] %vm335_vm1, %v3064_v42  ;;  %v3065_v25 = vadd.f32 %v4003_v56, %v4887_v9 }
 0x1ea   : > { %3099 = vst.msk [vmem:[%s4892_s16 + $0x78] sm:$0xff] %vm335_vm1, %v3067_v47  ;;  %v3836_v29 = vpop.f32.mrb[16].mxu1 }
 0x1eb   : > { %3097 = vst.msk [vmem:[%s4892_s16 + $0x68] sm:$0xff] %vm335_vm1, %v3065_v25  ;;  %v3972_v3 = vpop.f32.mrb[16].mxu0  ;;  %v1645_v31 = vpop.f32.mrb[17].mxu1 }
 0x1ec   : > { %v4004_v38 = vadd.f32 %v3972_v3, %v3836_v29  ;;  %v2950_v48 = vpop.f32.mrb[17].mxu0  ;;  %v3837_v49 = vpop.f32.mrb[18].mxu1 }
 0x1ed   : > { %v4005_v58 = vadd.f32 %v2950_v48, %v1645_v31  ;;  %v3973_v14 = vpop.f32.mrb[18].mxu0  ;;  %v1648_v16 = vpop.f32.mrb[19].mxu1 }
 0x1ee   : > { %v3070_v41 = vadd.f32 %v4004_v38, %v4887_v9  ;;  %v4006_v43 = vadd.f32 %v3973_v14, %v3837_v49  ;;  %v2953_v54 = vpop.f32.mrb[19].mxu0 }
 0x1ef   : > { %v3068_v2 = vadd.f32 %v4005_v58, %v4887_v9  ;;  %v4007_v4 = vadd.f32 %v2953_v54, %v1648_v16 }
 0x1f0   : > { %3102 = vst.msk [vmem:[%s4892_s16 + $0x90] sm:$0xff] %vm335_vm1, %v3070_v41  ;;  %v3071_v5 = vadd.f32 %v4006_v43, %v4887_v9 }
 0x1f1   : > { %3100 = vst.msk [vmem:[%s4892_s16 + $0x80] sm:$0xff] %vm335_vm1, %v3068_v2  ;;  %v3069_v39 = vadd.f32 %v4007_v4, %v4887_v9 }
 0x1f2   : > { %3103 = vst.msk [vmem:[%s4892_s16 + $0x98] sm:$0xff] %vm335_vm1, %v3071_v5  ;;  %v3840_v30 = vpop.f32.mrb[20].mxu1 }
 0x1f3   : > { %3101 = vst.msk [vmem:[%s4892_s16 + $0x88] sm:$0xff] %vm335_vm1, %v3069_v39  ;;  %v3976_v36 = vpop.f32.mrb[20].mxu0  ;;  %v1661_v28 = vpop.f32.mrb[21].mxu1 }
 0x1f4   : > { %v4008_v60 = vadd.f32 %v3976_v36, %v3840_v30  ;;  %v2966_v61 = vpop.f32.mrb[21].mxu0  ;;  %v3841_v8 = vpop.f32.mrb[22].mxu1 }
 0x1f5   : > { %v4009_v10 = vadd.f32 %v2966_v61, %v1661_v28  ;;  %v3977_v33 = vpop.f32.mrb[22].mxu0  ;;  %v1664_v34 = vpop.f32.mrb[23].mxu1 }
 0x1f6   : > { %v3074_v37 = vadd.f32 %v4008_v60, %v4887_v9  ;;  %v4010_v46 = vadd.f32 %v3977_v33, %v3841_v8  ;;  %v2969_v11 = vpop.f32.mrb[23].mxu0 }
 0x1f7   : > { %v3072_v12 = vadd.f32 %v4009_v10, %v4887_v9  ;;  %v4011_v13 = vadd.f32 %v2969_v11, %v1664_v34 }
 0x1f8   : > { %3106 = vst.msk [vmem:[%s4892_s16 + $0xb0] sm:$0xff] %vm335_vm1, %v3074_v37  ;;  %v3075_v21 = vadd.f32 %v4010_v46, %v4887_v9 }
 0x1f9   : > { %3104 = vst.msk [vmem:[%s4892_s16 + $0xa0] sm:$0xff] %vm335_vm1, %v3072_v12  ;;  %v3073_v50 = vadd.f32 %v4011_v13, %v4887_v9 }
 0x1fa   : > { %3107 = vst.msk [vmem:[%s4892_s16 + $0xb8] sm:$0xff] %vm335_vm1, %v3075_v21  ;;  %v3844_v52 = vpop.f32.mrb[24].mxu1 }
 0x1fb   : > { %3105 = vst.msk [vmem:[%s4892_s16 + $0xa8] sm:$0xff] %vm335_vm1, %v3073_v50  ;;  %v3980_v6 = vpop.f32.mrb[24].mxu0  ;;  %v1677_v27 = vpop.f32.mrb[25].mxu1 }
 0x1fc   : > { %v4012_v57 = vadd.f32 %v3980_v6, %v3844_v52  ;;  %v2982_v59 = vpop.f32.mrb[25].mxu0  ;;  %v3845_v7 = vpop.f32.mrb[26].mxu1 }
 0x1fd   : > { %v4013_v17 = vadd.f32 %v2982_v59, %v1677_v27  ;;  %v3981_v40 = vpop.f32.mrb[26].mxu0  ;;  %v1680_v18 = vpop.f32.mrb[27].mxu1 }
 0x1fe   : > { %v3078_v19 = vadd.f32 %v4012_v57, %v4887_v9  ;;  %v4014_v35 = vadd.f32 %v3981_v40, %v3845_v7  ;;  %v2985_v23 = vpop.f32.mrb[27].mxu0 }
 0x1ff   : > { %v3076_v24 = vadd.f32 %v4013_v17, %v4887_v9  ;;  %v4015_v26 = vadd.f32 %v2985_v23, %v1680_v18 }
 0x200   : > { %3110 = vst.msk [vmem:[%s4892_s16 + $0xd0] sm:$0xff] %vm335_vm1, %v3078_v19  ;;  %v3079_v32 = vadd.f32 %v4014_v35, %v4887_v9 }
 0x201   : > { %3108 = vst.msk [vmem:[%s4892_s16 + $0xc0] sm:$0xff] %vm335_vm1, %v3076_v24  ;;  %v3077_v45 = vadd.f32 %v4015_v26, %v4887_v9 }
 0x202   : > { %3111 = vst.msk [vmem:[%s4892_s16 + $0xd8] sm:$0xff] %vm335_vm1, %v3079_v32  ;;  %v3848_v51 = vpop.f32.mrb[28].mxu1 }
 0x203   : > { %3109 = vst.msk [vmem:[%s4892_s16 + $0xc8] sm:$0xff] %vm335_vm1, %v3077_v45  ;;  %v3984_v44 = vpop.f32.mrb[28].mxu0  ;;  %v1693_v53 = vpop.f32.mrb[29].mxu1 }
 0x204   : > { %v4016_v63 = vadd.f32 %v3984_v44, %v3848_v51  ;;  %v2998_v22 = vpop.f32.mrb[29].mxu0  ;;  %v3849_v62 = vpop.f32.mrb[30].mxu1 }
 0x205   : > { %v4017_v15 = vadd.f32 %v2998_v22, %v1693_v53  ;;  %v3985_v55 = vpop.f32.mrb[30].mxu0  ;;  %v1696_v1 = vpop.f32.mrb[31].mxu1 }
 0x206   : > { %v3082_v20 = vadd.f32 %v4016_v63, %v4887_v9  ;;  %v4018_v0 = vadd.f32 %v3985_v55, %v3849_v62  ;;  %v3001_v42 = vpop.f32.mrb[31].mxu0 }
 0x207   : > { %v3080_v56 = vadd.f32 %v4017_v15, %v4887_v9  ;;  %v4019_v47 = vadd.f32 %v3001_v42, %v1696_v1 }
 0x208   : > { %3114 = vst.msk [vmem:[%s4892_s16 + $0xf0] sm:$0xff] %vm335_vm1, %v3082_v20  ;;  %v3083_v25 = vadd.f32 %v4018_v0, %v4887_v9 }
 0x209   : > { %3112 = vst.msk [vmem:[%s4892_s16 + $0xe0] sm:$0xff] %vm335_vm1, %v3080_v56  ;;  %v3081_v29 = vadd.f32 %v4019_v47, %v4887_v9 }
 0x20a   : > { %3115 = vst.msk [vmem:[%s4892_s16 + $0xf8] sm:$0xff] %vm335_vm1, %v3083_v25 }
 0x20b   : > { %3113 = vst.msk [vmem:[%s4892_s16 + $0xe8] sm:$0xff] %vm335_vm1, %v3081_v29 }
 0x20c PF: > { %s13_s12 = sadd.s32 1, %s4269_s12  }
 0x20d   : > { %p10_p4 = scmp.ge.s32.totalorder %s13_s12, 4  }
 0x20f   :  { %12 = sbr.rel (!%p10_p4) target bundleno = 1 (0x1), region = 72 }

// kernel: dblock_forward.3
= control target key start
LH: loop header
LB: loop body
LE: loop exit
PB: predicated region body
PF: predicated region fallthrough
CT: control target
= control target key end

     0   :  { %s4292_s12 = smov 0   ;;  %s4994_s0 = inlined_call_operand.vmem [shape: f32[2,18,18,4], index: 0, kind: input, shape index: {}]   ;;  %s4995_s1 = inlined_call_operand.vmem [shape: bf16[9,4,8], index: 1, kind: input, shape index: {}]   ;;  %s4996_s2 = inlined_call_operand.vmem [shape: f32[1,8], index: 2, kind: input, shape index: {}]   ;;  %s4997_s3 = inlined_call_operand.vmem [shape: f32[2,16,16,8], index: 3, kind: output, shape index: {}]  }
   0x1 LB: > { %s3172_s13 = sadd.s32 4294967295, %s4270_s12   ;;  %p3176_p0 = scmp.ge.s32.totalorder %s4270_s12, 1  ;;  %s4270_s12 = sphi %s4292_s12, %s13_s12  }
   0x2   : > { %p137_p1 = scmp.lt.s32.totalorder %s4270_s12, 3 }
   0x4   : > { %p138_p2 = pnand %p3176_p0, %p137_p1 }
   0x5   : > { %v3180_v0 = vld [vmem:[%s4995_s1 + $0x2] sm:$0x3] (!%p138_p2)  ;;  %vm384_vm0 = vcmask (!%p138_p2), 1041408   ;;  %v4306_v1 = vld [vmem:[%s4995_s1 + $0x8] sm:$0x3] (!%p138_p2)  ;;  %p161_p3 = scmp.lt.s32.totalorder (!%p138_p2), %s3172_s13, 1 }
   0x6   : > { %141 = sbr.rel (%p138_p2) target bundleno = 524 (0x20c), region = 32  ;;  %4245 = vmatprep.subr.msk.bf16.mxu1 (!%p138_p2), %vm384_vm0, %v3180_v0  ;;  %4249 = vmatprep.subr.msk.bf16.mxu0 (!%p138_p2), %vm384_vm0, %v4306_v1  ;;  %v386_v2 = vsel (!%p138_p2), %vm384_vm0, %v3180_v0, 0  ;;  %v4314_v3 = vsel (!%p138_p2), %vm384_vm0, %v4306_v1, 0  ;;  %v252_v4 = vld [vmem:[%s4995_s1] sm:$0x3] (!%p138_p2)  ;;  %vm335_vm1 = vcmask (!%p138_p2), 31744  }
   0x7   : > { %3682 = vmatpush3.bf16.msra.mxu1 (!%p138_p2), %v386_v2  ;;  %3818 = vmatpush3.bf16.msra.mxu0 (!%p138_p2), %v4314_v3  ;;  %v3360_v5 = vld [vmem:[%s4995_s1 + $0xa] sm:$0x3] (!%p138_p2)  ;;  %v598_v24 = vsel (!%p138_p2), %vm384_vm0, %v252_v4, 0  ;;  %v4357_v32 = vld [vmem:[%s4995_s1 + $0xc] sm:$0x3] (!%p138_p2)  ;;  %vm3084_vm2 = vcmask (!%p138_p2), 64512  }
   0x8   : > { %4246 = vmatprep.subr.msk.bf16.mxu1 (!%p138_p2), %vm384_vm0, %v252_v4  ;;  %4251 = vmatprep.subr.msk.bf16.mxu0 (!%p138_p2), %vm384_vm0, %v3360_v5  ;;  %v1871_v28 = vsel (!%p138_p2), %vm384_vm0, %v3360_v5, 0  ;;  %v4364_v35 = vld [vmem:[%s4995_s1 + $0x4] sm:$0x3] (!%p138_p2) }
   0xd   : > { %s4999_s13 = smov (!%p161_p3, %s3172_s13), 1 }
   0xe   : > { %s4255_s22 = smul.u32 432, %s4999_s13  ;;  %s3527_s9 = sshll.u32 %s4999_s13, 8 }
   0xf   : > { %s4893_s16 = scalar_lea.vmem %s4997_s3, %s3527_s9 }
  0x10   : > { %s4331_s25 = scalar_lea.vmem %s4994_s0, %s4255_s22 }
  0x11   : > { %v253_v6 = vld [vmem:[%s4331_s25 + $0x1] sm:$0xff]  ;;  %v254_v7 = vld [vmem:[%s4331_s25 + $0x9] sm:$0xff]  ;;  %v3279_v8 = vld [vmem:[%s4331_s25 + $0x19] sm:$0xff] }
  0x12   : > { %v285_v9 = vmax.f32 %v253_v6, 0.0  ;;  %v286_v10 = vmax.f32 %v254_v7, 0.0  ;;  %v3280_v11 = vld [vmem:[%s4331_s25 + $0x21] sm:$0xff]  ;;  %v1446_v12 = vmax.f32 %v3279_v8, 0.0  ;;  %v3281_v13 = vld [vmem:[%s4331_s25 + $0x31] sm:$0xff]  ;;  %v3282_v14 = vld [vmem:[%s4331_s25 + $0x39] sm:$0xff] }
  0x13   : > { %v1447_v15 = vmax.f32 %v3280_v11, 0.0  ;;  %v1448_v16 = vmax.f32 %v3281_v13, 0.0  ;;  %v1449_v17 = vmax.f32 %v3282_v14, 0.0  ;;  %v3283_v18 = vld [vmem:[%s4331_s25 + $0x49] sm:$0xff]  ;;  %v3284_v19 = vld [vmem:[%s4331_s25 + $0x51] sm:$0xff]  ;;  %v3285_v26 = vld [vmem:[%s4331_s25 + $0x61] sm:$0xff] }
  0x14   : > { %v317_v20 = vpack.c.bf16 %v286_v10, %v285_v9  ;;  %v1450_v21 = vmax.f32 %v3283_v18, 0.0  ;;  %v1451_v22 = vmax.f32 %v3284_v19, 0.0  ;;  %v3286_v27 = vld [vmem:[%s4331_s25 + $0x69] sm:$0xff]  ;;  %v3287_v30 = vld [vmem:[%s4331_s25 + $0x79] sm:$0xff]  ;;  %v3288_v31 = vld [vmem:[%s4331_s25 + $0x81] sm:$0xff]  ;;  %v1452_v33 = vmax.f32 %v3285_v26, 0.0 }
  0x15   : > { %v1478_v23 = vpack.c.bf16 %v1447_v15, %v1446_v12  ;;  %v4342_v25 = vpack.c.bf16 %v1449_v17, %v1448_v16  ;;  %v1453_v34 = vmax.f32 %v3286_v27, 0.0  ;;  %v1454_v36 = vmax.f32 %v3287_v30, 0.0  ;;  %v3289_v40 = vld [vmem:[%s4331_s25 + $0x91] sm:$0xff]  ;;  %v3290_v41 = vld [vmem:[%s4331_s25 + $0x99] sm:$0xff]  ;;  %v3291_v42 = vld [vmem:[%s4331_s25 + $0xa9] sm:$0xff] }
  0x16   : > { %3683 = vmatprep.mubr.msk.bf16.mxu1 %vm335_vm1, %v317_v20  ;;  %v4348_v29 = vpack.c.bf16 %v1451_v22, %v1450_v21  ;;  %v1455_v37 = vmax.f32 %v3288_v31, 0.0  ;;  %v3292_v43 = vld [vmem:[%s4331_s25 + $0xb1] sm:$0xff]  ;;  %v1456_v44 = vmax.f32 %v3289_v40, 0.0  ;;  %v1457_v45 = vmax.f32 %v3290_v41, 0.0  ;;  %v3293_v50 = vld [vmem:[%s4331_s25 + $0xc1] sm:$0xff]  ;;  %v3294_v51 = vld [vmem:[%s4331_s25 + $0xc9] sm:$0xff] }
  0x17   : > { %3819 = vmatprep.mubr.msk.bf16.mxu0 %vm335_vm1, %v1478_v23  ;;  %3684 = vmatmul.mubr.msk.bf16.vlgmr.msra.gmra.mrb[0].mxu1 %vm335_vm1, %v1478_v23  ;;  %v4374_v38 = vpack.c.bf16 %v1453_v34, %v1452_v33  ;;  %v1458_v46 = vmax.f32 %v3291_v42, 0.0  ;;  %v1459_v47 = vmax.f32 %v3292_v43, 0.0  ;;  %v3328_v52 = vld [vmem:[%s4331_s25 + $0x1a] sm:$0xff]  ;;  %v3329_v53 = vld [vmem:[%s4331_s25 + $0x22] sm:$0xff]  ;;  %v1460_v54 = vmax.f32 %v3293_v50, 0.0  ;;  %v3330_v61 = vld [vmem:[%s4331_s25 + $0x32] sm:$0xff] }
  0x18   : > { %3716 = vmatpush3.bf16.msra.mxu1 %v598_v24  ;;  %3820 = vmatmul.mubr.msk.bf16.vlgmr.msra.gmra.mrb[0].mxu0 %vm335_vm1, %v4342_v25  ;;  %v4376_v39 = vpack.c.bf16 %v1455_v37, %v1454_v36  ;;  %v4390_v48 = vpack.c.bf16 %v1457_v45, %v1456_v44  ;;  %v1461_v55 = vmax.f32 %v3294_v51, 0.0  ;;  %v1772_v56 = vmax.f32 %v3328_v52, 0.0  ;;  %v271_v59 = vld [vmem:[%s4331_s25 + $0xd9] sm:$0xff]  ;;  %v272_v60 = vld [vmem:[%s4331_s25 + $0xe1] sm:$0xff]  ;;  %v273_v0 = vld [vmem:[%s4331_s25 + $0xf1] sm:$0xff] }
  0x19   : > { %3852 = vmatpush3.bf16.msra.mxu0 %v1871_v28  ;;  %3687 = vmatprep.mubr.msk.bf16.mxu1 %vm335_vm1, %v4342_v25  ;;  %v4392_v49 = vpack.c.bf16 %v1459_v47, %v1458_v46  ;;  %v1773_v57 = vmax.f32 %v3329_v53, 0.0  ;;  %v3331_v63 = vld [vmem:[%s4331_s25 + $0x3a] sm:$0xff]  ;;  %v3332_v4 = vld [vmem:[%s4331_s25 + $0x4a] sm:$0xff]  ;;  %v3333_v5 = vld [vmem:[%s4331_s25 + $0x52] sm:$0xff]  ;;  %v303_v6 = vmax.f32 %v271_v59, 0.0  ;;  %v304_v7 = vmax.f32 %v272_v60, 0.0 }
  0x1a   : > { %3823 = vmatprep.mubr.msk.bf16.mxu0 %vm335_vm1, %v4348_v29  ;;  %4252 = vmatprep.subr.msk.bf16.mxu0 %vm384_vm0, %v4357_v32  ;;  %v4406_v58 = vpack.c.bf16 %v1461_v55, %v1460_v54  ;;  %v274_v2 = vld [vmem:[%s4331_s25 + $0xf9] sm:$0xff]  ;;  %v1774_v8 = vmax.f32 %v3330_v61, 0.0  ;;  %v1775_v9 = vmax.f32 %v3331_v63, 0.0  ;;  %v305_v10 = vmax.f32 %v273_v0, 0.0  ;;  %v275_v17 = vld [vmem:[%s4331_s25 + $0x109] sm:$0xff]  ;;  %v276_v18 = vld [vmem:[%s4331_s25 + $0x111] sm:$0xff] }
  0x1b   : > { %4247 = vmatprep.subr.msk.bf16.mxu1 %vm384_vm0, %v4364_v35  ;;  %v4411_v62 = vpack.c.bf16 %v1773_v57, %v1772_v56  ;;  %v306_v11 = vmax.f32 %v274_v2, 0.0  ;;  %v1776_v12 = vmax.f32 %v3332_v4, 0.0  ;;  %v1777_v13 = vmax.f32 %v3333_v5, 0.0  ;;  %v3334_v19 = vld [vmem:[%s4331_s25 + $0x62] sm:$0xff]  ;;  %v3335_v21 = vld [vmem:[%s4331_s25 + $0x6a] sm:$0xff]  ;;  %v3336_v26 = vld [vmem:[%s4331_s25 + $0x7a] sm:$0xff] }
  0x1c   : > { %v4426_v14 = vpack.c.bf16 %v304_v7, %v303_v6  ;;  %v4428_v15 = vpack.c.bf16 %v1775_v9, %v1774_v8  ;;  %v277_v22 = vld [vmem:[%s4331_s25 + $0x121] sm:$0xff]  ;;  %v278_v23 = vld [vmem:[%s4331_s25 + $0x129] sm:$0xff]  ;;  %v2198_v24 = vsel %vm384_vm0, %v4357_v32, 0  ;;  %v307_v28 = vmax.f32 %v275_v17, 0.0  ;;  %v279_v44 = vld [vmem:[%s4331_s25 + $0x139] sm:$0xff] }
  0x1d   : > { %v4430_v16 = vpack.c.bf16 %v306_v11, %v305_v10  ;;  %v4435_v20 = vpack.c.bf16 %v1777_v13, %v1776_v12  ;;  %v3337_v27 = vld [vmem:[%s4331_s25 + $0x82] sm:$0xff]  ;;  %v308_v30 = vmax.f32 %v276_v18, 0.0  ;;  %v4449_v31 = vld [vmem:[%s4995_s1 + $0xe] sm:$0x3]  ;;  %v1778_v32 = vmax.f32 %v3334_v19, 0.0  ;;  %v3338_v46 = vld [vmem:[%s4331_s25 + $0x92] sm:$0xff] }
  0x1e   : > { %v1779_v33 = vmax.f32 %v3335_v21, 0.0  ;;  %v309_v34 = vmax.f32 %v277_v22, 0.0  ;;  %v310_v36 = vmax.f32 %v278_v23, 0.0  ;;  %v1780_v37 = vmax.f32 %v3336_v26, 0.0  ;;  %v280_v45 = vld [vmem:[%s4331_s25 + $0x141] sm:$0xff]  ;;  %v281_v51 = vld [vmem:[%s4331_s25 + $0x151] sm:$0xff] }
  0x1f   : > { %3688 = vmatmul.mubr.msk.bf16.gmra.mrb[4].mxu1 %vm335_vm1, %v4348_v29  ;;  %v1781_v40 = vmax.f32 %v3337_v27, 0.0  ;;  %v4459_v41 = vpack.c.bf16 %v308_v30, %v307_v28  ;;  %v3339_v50 = vld [vmem:[%s4331_s25 + $0x9a] sm:$0xff]  ;;  %v3340_v53 = vld [vmem:[%s4331_s25 + $0xaa] sm:$0xff]  ;;  %v3341_v54 = vld [vmem:[%s4331_s25 + $0xb2] sm:$0xff]  ;;  %v311_v55 = vmax.f32 %v279_v44, 0.0  ;;  %v312_v56 = vmax.f32 %v280_v45, 0.0 }
  0x20   : > { %3824 = vmatmul.mubr.msk.bf16.gmra.mrb[4].mxu0 %vm335_vm1, %v4374_v38  ;;  %3691 = vmatprep.mubr.msk.bf16.mxu1 %vm335_vm1, %v4374_v38  ;;  %v4461_v42 = vpack.c.bf16 %v1779_v33, %v1778_v32  ;;  %v4463_v43 = vpack.c.bf16 %v310_v36, %v309_v34  ;;  %v282_v52 = vld [vmem:[%s4331_s25 + $0x159] sm:$0xff]  ;;  %v1782_v57 = vmax.f32 %v3338_v46, 0.0  ;;  %v1783_v59 = vmax.f32 %v3339_v50, 0.0  ;;  %v283_v6 = vld [vmem:[%s4331_s25 + $0x169] sm:$0xff]  ;;  %v284_v7 = vld [vmem:[%s4331_s25 + $0x171] sm:$0xff] }
  0x21   : > { %3827 = vmatprep.mubr.msk.bf16.mxu0 %vm335_vm1, %v4376_v39  ;;  %v4468_v47 = vpack.c.bf16 %v1781_v40, %v1780_v37  ;;  %v313_v60 = vmax.f32 %v281_v51, 0.0  ;;  %v314_v61 = vmax.f32 %v282_v52, 0.0  ;;  %v1784_v63 = vmax.f32 %v3340_v53, 0.0  ;;  %v3342_v8 = vld [vmem:[%s4331_s25 + $0xc2] sm:$0xff]  ;;  %v3343_v10 = vld [vmem:[%s4331_s25 + $0xca] sm:$0xff]  ;;  %v3344_v13 = vld [vmem:[%s4331_s25 + $0xda] sm:$0xff] }
  0x22   : > { %v1785_v0 = vmax.f32 %v3341_v54, 0.0  ;;  %v4483_v2 = vpack.c.bf16 %v312_v56, %v311_v55  ;;  %v4485_v4 = vpack.c.bf16 %v1783_v59, %v1782_v57  ;;  %v172_v11 = vld [vmem:[%s4331_s25] sm:$0xff]  ;;  %v173_v12 = vld [vmem:[%s4331_s25 + $0x8] sm:$0xff]  ;;  %v315_v18 = vmax.f32 %v283_v6, 0.0  ;;  %v174_v33 = vld [vmem:[%s4331_s25 + $0x18] sm:$0xff] }
  0x23   : > { %v4487_v5 = vpack.c.bf16 %v314_v61, %v313_v60  ;;  %v3345_v17 = vld [vmem:[%s4331_s25 + $0xe2] sm:$0xff]  ;;  %v316_v19 = vmax.f32 %v284_v7, 0.0  ;;  %v1786_v21 = vmax.f32 %v3342_v8, 0.0  ;;  %v1787_v22 = vmax.f32 %v3343_v10, 0.0  ;;  %v3346_v37 = vld [vmem:[%s4331_s25 + $0xf2] sm:$0xff]  ;;  %v3347_v40 = vld [vmem:[%s4331_s25 + $0xfa] sm:$0xff] }
  0x24   : > { %v4492_v9 = vpack.c.bf16 %v1785_v0, %v1784_v63  ;;  %v204_v23 = vmax.f32 %v172_v11, 0.0  ;;  %v1788_v26 = vmax.f32 %v3344_v13, 0.0  ;;  %v1789_v27 = vmax.f32 %v3345_v17, 0.0  ;;  %v175_v34 = vld [vmem:[%s4331_s25 + $0x20] sm:$0xff]  ;;  %v176_v44 = vld [vmem:[%s4331_s25 + $0x30] sm:$0xff]  ;;  %v177_v45 = vld [vmem:[%s4331_s25 + $0x38] sm:$0xff] }
  0x25   : > { %v4507_v28 = vpack.c.bf16 %v316_v19, %v315_v18  ;;  %v4509_v30 = vpack.c.bf16 %v1787_v22, %v1786_v21  ;;  %v3348_v46 = vld [vmem:[%s4331_s25 + $0x10a] sm:$0xff]  ;;  %v3349_v50 = vld [vmem:[%s4331_s25 + $0x112] sm:$0xff]  ;;  %v206_v51 = vmax.f32 %v174_v33, 0.0  ;;  %v207_v52 = vmax.f32 %v175_v34, 0.0  ;;  %v3350_v6 = vld [vmem:[%s4331_s25 + $0x122] sm:$0xff] }
  0x26   : > { %v4513_v36 = vpack.c.bf16 %v1789_v27, %v1788_v26  ;;  %v1790_v53 = vmax.f32 %v3346_v37, 0.0  ;;  %v1791_v54 = vmax.f32 %v3347_v40, 0.0  ;;  %v208_v55 = vmax.f32 %v176_v44, 0.0  ;;  %v178_v63 = vld [vmem:[%s4331_s25 + $0x48] sm:$0xff]  ;;  %v179_v0 = vld [vmem:[%s4331_s25 + $0x50] sm:$0xff]  ;;  %v3352_v17 = vld [vmem:[%s4331_s25 + $0x13a] sm:$0xff] }
  0x27   : > { %3692 = vmatmul.mubr.msk.bf16.gmra.mrb[8].mxu1 %vm335_vm1, %v4376_v39  ;;  %v209_v56 = vmax.f32 %v177_v45, 0.0  ;;  %v1792_v57 = vmax.f32 %v3348_v46, 0.0  ;;  %v1793_v59 = vmax.f32 %v3349_v50, 0.0  ;;  %v4528_v60 = vpack.c.bf16 %v207_v52, %v206_v51  ;;  %v3351_v11 = vld [vmem:[%s4331_s25 + $0x12a] sm:$0xff]  ;;  %v3353_v18 = vld [vmem:[%s4331_s25 + $0x142] sm:$0xff]  ;;  %v182_v40 = vld [vmem:[%s4331_s25 + $0x78] sm:$0xff] }
  0x28   : > { %3828 = vmatmul.mubr.msk.bf16.gmra.mrb[8].mxu0 %vm335_vm1, %v4390_v48  ;;  %3695 = vmatprep.mubr.msk.bf16.mxu1 %vm335_vm1, %v4390_v48  ;;  %v4530_v61 = vpack.c.bf16 %v1791_v54, %v1790_v53  ;;  %v892_v7 = vsel %vm384_vm0, %v4364_v35, 0  ;;  %v181_v13 = vld [vmem:[%s4331_s25 + $0x68] sm:$0xff]  ;;  %v210_v19 = vmax.f32 %v178_v63, 0.0  ;;  %v211_v21 = vmax.f32 %v179_v0, 0.0  ;;  %v4551_v22 = vld [vmem:[%s4995_s1 + $0x6] sm:$0x3] }
  0x29   : > { %3831 = vmatprep.mubr.msk.bf16.mxu0 %vm335_vm1, %v4392_v49  ;;  %v4537_v8 = vpack.c.bf16 %v209_v56, %v208_v55  ;;  %v4539_v10 = vpack.c.bf16 %v1793_v59, %v1792_v57  ;;  %v1794_v35 = vmax.f32 %v3350_v6, 0.0  ;;  %v213_v26 = vmax.f32 %v181_v13, 0.0  ;;  %v183_v44 = vld [vmem:[%s4331_s25 + $0x80] sm:$0xff]  ;;  %v3354_v45 = vld [vmem:[%s4331_s25 + $0x152] sm:$0xff]  ;;  %v3356_v53 = vld [vmem:[%s4331_s25 + $0x16a] sm:$0xff] }
  0x2a   : > { %v1796_v27 = vmax.f32 %v3352_v17, 0.0  ;;  %v4561_v33 = vpack.c.bf16 %v211_v21, %v210_v19  ;;  %v3355_v50 = vld [vmem:[%s4331_s25 + $0x15a] sm:$0xff]  ;;  %v184_v51 = vld [vmem:[%s4331_s25 + $0x90] sm:$0xff]  ;;  %v214_v55 = vmax.f32 %v182_v40, 0.0  ;;  %v215_v56 = vmax.f32 %v183_v44, 0.0  ;;  %v186_v17 = vld [vmem:[%s4331_s25 + $0xa8] sm:$0xff] }
  0x2b   : > { %v185_v52 = vld [vmem:[%s4331_s25 + $0x98] sm:$0xff]  ;;  %v1798_v57 = vmax.f32 %v3354_v45, 0.0  ;;  %v1799_v59 = vmax.f32 %v3355_v50, 0.0  ;;  %v216_v63 = vmax.f32 %v184_v51, 0.0  ;;  %v1800_v6 = vmax.f32 %v3356_v53, 0.0  ;;  %v3358_v19 = vld [vmem:[%s4331_s25 + $0x182] sm:$0xff] }
  0x2c   : > { %v3357_v54 = vld [vmem:[%s4331_s25 + $0x172] sm:$0xff]  ;;  %v217_v0 = vmax.f32 %v185_v52, 0.0 }
  0x2d   : > { %v190_v53 = vld [vmem:[%s4331_s25 + $0xd8] sm:$0xff] }
  0x2e   : > { %v4589_v13 = vpack.c.bf16 %v217_v0, %v216_v63 }
  0x2f   : > { %3696 = vmatmul.mubr.msk.bf16.gmra.mrb[12].mxu1 %vm335_vm1, %v4392_v49 }
  0x30   : > { %3832 = vmatmul.mubr.msk.bf16.gmra.mrb[12].mxu0 %vm335_vm1, %v4406_v58  ;;  %3699 = vmatprep.mubr.msk.bf16.mxu1 %vm335_vm1, %v4406_v58 }
  0x31   : > { %3853 = vmatprep.mubr.msk.bf16.mxu0 %vm335_vm1, %v4411_v62 }
  0x37   : > { %3700 = vmatmul.mubr.msk.bf16.gmra.mrb[16].mxu1 %vm335_vm1, %v4426_v14 }
  0x38   : > { %3854 = vmatmul.mubr.msk.bf16.vlgmr.msra.gmra.mrb[0].mxu0 %vm335_vm1, %v4428_v15  ;;  %3703 = vmatprep.mubr.msk.bf16.mxu1 %vm335_vm1, %v4430_v16 }
  0x39   : > { %3886 = vmatpush3.bf16.msra.mxu0 %v2198_v24  ;;  %3857 = vmatprep.mubr.msk.bf16.mxu0 %vm335_vm1, %v4435_v20  ;;  %v205_v24 = vmax.f32 %v173_v12, 0.0  ;;  %v180_v12 = vld [vmem:[%s4331_s25 + $0x60] sm:$0xff] }
  0x3a   : > { %4253 = vmatprep.subr.msk.bf16.mxu0 %vm384_vm0, %v4449_v31 }
  0x3b   : > { %v236_v32 = vpack.c.bf16 %v205_v24, %v204_v23  ;;  %v1795_v23 = vmax.f32 %v3351_v11, 0.0  ;;  %v212_v24 = vmax.f32 %v180_v12, 0.0  ;;  %v4585_v11 = vpack.c.bf16 %v215_v56, %v214_v55  ;;  %v192_v55 = vld [vmem:[%s4331_s25 + $0xf0] sm:$0xff]  ;;  %v193_v56 = vld [vmem:[%s4331_s25 + $0xf8] sm:$0xff] }
  0x3c   : > { %v4587_v12 = vpack.c.bf16 %v1799_v59, %v1798_v57  ;;  %v222_v57 = vmax.f32 %v190_v53, 0.0  ;;  %v224_v63 = vmax.f32 %v192_v55, 0.0  ;;  %v225_v0 = vmax.f32 %v193_v56, 0.0  ;;  %v200_v53 = vld [vmem:[%s4331_s25 + $0x150] sm:$0xff] }
  0x3d   : > { %v4563_v34 = vpack.c.bf16 %v1795_v23, %v1794_v35  ;;  %v4565_v37 = vpack.c.bf16 %v213_v26, %v212_v24  ;;  %v3359_v35 = vld [vmem:[%s4331_s25 + $0x18a] sm:$0xff]  ;;  %v188_v23 = vld [vmem:[%s4331_s25 + $0xc0] sm:$0xff]  ;;  %v218_v26 = vmax.f32 %v186_v17, 0.0 }
  0x3e   : > { %v189_v24 = vld [vmem:[%s4331_s25 + $0xc8] sm:$0xff]  ;;  %v1803_v40 = vmax.f32 %v3359_v35, 0.0  ;;  %v220_v44 = vmax.f32 %v188_v23, 0.0  ;;  %v2524_v23 = vsel %vm384_vm0, %v4449_v31, 0 }
  0x3f   : > { %3704 = vmatmul.mubr.msk.bf16.gmra.mrb[20].mxu1 %vm335_vm1, %v4459_v41  ;;  %v221_v45 = vmax.f32 %v189_v24, 0.0  ;;  %v194_v17 = vld [vmem:[%s4331_s25 + $0x108] sm:$0xff] }
  0x40   : > { %3858 = vmatmul.mubr.msk.bf16.gmra.mrb[4].mxu0 %vm335_vm1, %v4461_v42  ;;  %3707 = vmatprep.mubr.msk.bf16.mxu1 %vm335_vm1, %v4463_v43  ;;  %v197_v35 = vld [vmem:[%s4331_s25 + $0x128] sm:$0xff]  ;;  %v226_v24 = vmax.f32 %v194_v17, 0.0 }
  0x41   : > { %3861 = vmatprep.mubr.msk.bf16.mxu0 %vm335_vm1, %v4468_v47  ;;  %v4609_v52 = vpack.c.bf16 %v221_v45, %v220_v44  ;;  %v229_v31 = vmax.f32 %v197_v35, 0.0  ;;  %v198_v45 = vld [vmem:[%s4331_s25 + $0x138] sm:$0xff]  ;;  %v202_v17 = vld [vmem:[%s4331_s25 + $0x168] sm:$0xff] }
  0x42   : > { %v230_v55 = vmax.f32 %v198_v45, 0.0  ;;  %v762_v35 = vld [vmem:[%s4331_s25 + $0xa] sm:$0xff] }
  0x47   : > { %3708 = vmatmul.mubr.msk.bf16.gmra.mrb[24].mxu1 %vm335_vm1, %v4483_v2 }
  0x48   : > { %3862 = vmatmul.mubr.msk.bf16.gmra.mrb[8].mxu0 %vm335_vm1, %v4485_v4  ;;  %3711 = vmatprep.mubr.msk.bf16.mxu1 %vm335_vm1, %v4487_v5 }
  0x49   : > { %3865 = vmatprep.mubr.msk.bf16.mxu0 %vm335_vm1, %v4492_v9 }
  0x4f   : > { %3712 = vmatmul.mubr.msk.bf16.gmra.mrb[28].mxu1 %vm335_vm1, %v4507_v28 }
  0x50   : > { %3866 = vmatmul.mubr.msk.bf16.gmra.mrb[12].mxu0 %vm335_vm1, %v4509_v30  ;;  %3717 = vmatprep.mubr.msk.bf16.mxu1 %vm335_vm1, %v236_v32  ;;  %v1797_v32 = vmax.f32 %v3353_v18, 0.0  ;;  %v187_v18 = vld [vmem:[%s4331_s25 + $0xb0] sm:$0xff] }
  0x51   : > { %3869 = vmatprep.mubr.msk.bf16.mxu0 %vm335_vm1, %v4513_v36 }
  0x52   : > { %v4570_v46 = vpack.c.bf16 %v1797_v32, %v1796_v27  ;;  %v219_v27 = vmax.f32 %v187_v18, 0.0  ;;  %v1802_v32 = vmax.f32 %v3358_v19, 0.0  ;;  %v195_v18 = vld [vmem:[%s4331_s25 + $0x110] sm:$0xff]  ;;  %v196_v19 = vld [vmem:[%s4331_s25 + $0x120] sm:$0xff] }
  0x54   : > { %v4607_v50 = vpack.c.bf16 %v219_v27, %v218_v26  ;;  %v1819_v51 = vpack.c.bf16 %v1803_v40, %v1802_v32  ;;  %v227_v26 = vmax.f32 %v195_v18, 0.0  ;;  %v4637_v27 = vld [vmem:[%s4995_s1 + $0x10] sm:$0x3]  ;;  %v228_v32 = vmax.f32 %v196_v19, 0.0  ;;  %v761_v19 = vld [vmem:[%s4331_s25 + $0x2] sm:$0xff] }
  0x55   : > { %v203_v18 = vld [vmem:[%s4331_s25 + $0x170] sm:$0xff] }
  0x56   : > { %v4647_v40 = vpack.c.bf16 %v227_v26, %v226_v24  ;;  %v4649_v44 = vpack.c.bf16 %v229_v31, %v228_v32  ;;  %v235_v24 = vmax.f32 %v203_v18, 0.0  ;;  %v793_v26 = vmax.f32 %v761_v19, 0.0 }
  0x57   : > { %3718 = vmatmul.mubr.msk.bf16.vlgmr.msra.gmra.mrb[0].mxu1 %vm335_vm1, %v4528_v60  ;;  %v794_v32 = vmax.f32 %v762_v35, 0.0 }
  0x58   : > { %3750 = vmatpush3.bf16.msra.mxu1 %v892_v7  ;;  %3870 = vmatmul.mubr.msk.bf16.gmra.mrb[16].mxu0 %vm335_vm1, %v4530_v61  ;;  %v1801_v7 = vmax.f32 %v3357_v54, 0.0  ;;  %v191_v54 = vld [vmem:[%s4331_s25 + $0xe0] sm:$0xff] }
  0x59   : > { %3721 = vmatprep.mubr.msk.bf16.mxu1 %vm335_vm1, %v4537_v8  ;;  %3873 = vmatprep.mubr.msk.bf16.mxu0 %vm335_vm1, %v4539_v10  ;;  %v223_v59 = vmax.f32 %v191_v54, 0.0  ;;  %v201_v54 = vld [vmem:[%s4331_s25 + $0x158] sm:$0xff]  ;;  %v825_v45 = vpack.c.bf16 %v794_v32, %v793_v26  ;;  %v3490_v32 = vld [vmem:[%s4331_s25 + $0xe2] sm:$0xff] }
  0x5a   : > { %4248 = vmatprep.subr.msk.bf16.mxu1 %vm384_vm0, %v4551_v22  ;;  %v4594_v21 = vpack.c.bf16 %v1801_v7, %v1800_v6  ;;  %v4624_v7 = vpack.c.bf16 %v225_v0, %v224_v63 }
  0x5b   : > { %v4622_v6 = vpack.c.bf16 %v223_v59, %v222_v57  ;;  %v232_v57 = vmax.f32 %v200_v53, 0.0  ;;  %v233_v59 = vmax.f32 %v201_v54, 0.0  ;;  %v3405_v53 = vld [vmem:[%s4331_s25 + $0x180] sm:$0xff] }
  0x5d   : > { %v4665_v0 = vpack.c.bf16 %v233_v59, %v232_v57  ;;  %v3485_v57 = vld [vmem:[%s4331_s25 + $0xaa] sm:$0xff]  ;;  %v3486_v59 = vld [vmem:[%s4331_s25 + $0xb2] sm:$0xff] }
  0x5e   : > { %v2762_v18 = vmax.f32 %v3486_v59, 0.0  ;;  %v3305_v59 = vld [vmem:[%s4331_s25 + $0x151] sm:$0xff] }
  0x5f   : > { %3722 = vmatmul.mubr.msk.bf16.gmra.mrb[4].mxu1 %vm335_vm1, %v4561_v33 }
  0x60   : > { %3874 = vmatmul.mubr.msk.bf16.gmra.mrb[20].mxu0 %vm335_vm1, %v4563_v34  ;;  %3725 = vmatprep.mubr.msk.bf16.mxu1 %vm335_vm1, %v4565_v37 }
  0x61   : > { %3877 = vmatprep.mubr.msk.bf16.mxu0 %vm335_vm1, %v4570_v46 }
  0x67   : > { %3726 = vmatmul.mubr.msk.bf16.gmra.mrb[8].mxu1 %vm335_vm1, %v4585_v11 }
  0x68   : > { %3878 = vmatmul.mubr.msk.bf16.gmra.mrb[24].mxu0 %vm335_vm1, %v4587_v12  ;;  %3729 = vmatprep.mubr.msk.bf16.mxu1 %vm335_vm1, %v4589_v13 }
  0x69   : > { %3881 = vmatprep.mubr.msk.bf16.mxu0 %vm335_vm1, %v4594_v21 }
  0x6f   : > { %3730 = vmatmul.mubr.msk.bf16.gmra.mrb[12].mxu1 %vm335_vm1, %v4607_v50 }
  0x70   : > { %3882 = vmatmul.mubr.msk.bf16.gmra.mrb[28].mxu0 %vm335_vm1, %v1819_v51  ;;  %3733 = vmatprep.mubr.msk.bf16.mxu1 %vm335_vm1, %v4609_v52  ;;  %v199_v51 = vld [vmem:[%s4331_s25 + $0x140] sm:$0xff] }
  0x71   : > { %3887 = vmatprep.mubr.msk.bf16.mxu0 %vm335_vm1, %v4537_v8  ;;  %v231_v56 = vmax.f32 %v199_v51, 0.0  ;;  %v1219_v51 = vsel %vm384_vm0, %v4551_v22, 0  ;;  %v3406_v22 = vld [vmem:[%s4331_s25 + $0x188] sm:$0xff] }
  0x73   : > { %v4663_v63 = vpack.c.bf16 %v231_v56, %v230_v55  ;;  %v3407_v55 = vld [vmem:[%s4331_s25 + $0x198] sm:$0xff] }
  0x77   : > { %3734 = vmatmul.mubr.msk.bf16.gmra.mrb[16].mxu1 %vm335_vm1, %v4622_v6 }
  0x78   : > { %3888 = vmatmul.mubr.msk.bf16.vlgmr.msra.gmra.mrb[0].mxu0 %vm335_vm1, %v4561_v33  ;;  %3737 = vmatprep.mubr.msk.bf16.mxu1 %vm335_vm1, %v4624_v7 }
  0x79   : > { %3920 = vmatpush3.bf16.msra.mxu0 %v2524_v23  ;;  %3891 = vmatprep.mubr.msk.bf16.mxu0 %vm335_vm1, %v4565_v37  ;;  %v234_v23 = vmax.f32 %v202_v17, 0.0  ;;  %v3488_v17 = vld [vmem:[%s4331_s25 + $0xca] sm:$0xff] }
  0x7a   : > { %4254 = vmatprep.subr.msk.bf16.mxu0 %vm384_vm0, %v4637_v27  ;;  %v2764_v35 = vmax.f32 %v3488_v17, 0.0  ;;  %v3501_v17 = vld [vmem:[%s4331_s25 + $0x16a] sm:$0xff] }
  0x7b   : > { %v4679_v31 = vpack.c.bf16 %v235_v24, %v234_v23  ;;  %v3489_v24 = vld [vmem:[%s4331_s25 + $0xda] sm:$0xff] }
  0x7f   : > { %3738 = vmatmul.mubr.msk.bf16.gmra.mrb[20].mxu1 %vm335_vm1, %v4647_v40 }
  0x80   : > { %3892 = vmatmul.mubr.msk.bf16.gmra.mrb[4].mxu0 %vm335_vm1, %v4585_v11  ;;  %3741 = vmatprep.mubr.msk.bf16.mxu1 %vm335_vm1, %v4649_v44 }
  0x81   : > { %3895 = vmatprep.mubr.msk.bf16.mxu0 %vm335_vm1, %v4589_v13 }
  0x87   : > { %3742 = vmatmul.mubr.msk.bf16.gmra.mrb[24].mxu1 %vm335_vm1, %v4663_v63 }
  0x88   : > { %3896 = vmatmul.mubr.msk.bf16.gmra.mrb[8].mxu0 %vm335_vm1, %v4607_v50  ;;  %3745 = vmatprep.mubr.msk.bf16.mxu1 %vm335_vm1, %v4665_v0 }
  0x89   : > { %3899 = vmatprep.mubr.msk.bf16.mxu0 %vm335_vm1, %v4609_v52 }
  0x8f   : > { %3746 = vmatmul.mubr.msk.bf16.gmra.mrb[28].mxu1 %vm335_vm1, %v4679_v31 }
  0x90   : > { %3900 = vmatmul.mubr.msk.bf16.gmra.mrb[12].mxu0 %vm335_vm1, %v4622_v6  ;;  %3751 = vmatprep.mubr.msk.bf16.mxu1 %vm335_vm1, %v825_v45  ;;  %v3295_v45 = vld [vmem:[%s4331_s25 + $0xd9] sm:$0xff] }
  0x91   : > { %3903 = vmatprep.mubr.msk.bf16.mxu0 %vm335_vm1, %v4624_v7 }
  0x97   : > { %3752 = vmatmul.mubr.msk.bf16.vlgmr.msra.gmra.mrb[0].mxu1 %vm335_vm1, %v4411_v62  ;;  %v2127_v62 = vmax.f32 %v3405_v53, 0.0  ;;  %v3492_v53 = vld [vmem:[%s4331_s25 + $0xfa] sm:$0xff] }
  0x98   : > { %3784 = vmatpush3.bf16.msra.mxu1 %v1219_v51  ;;  %3904 = vmatmul.mubr.msk.bf16.gmra.mrb[16].mxu0 %vm335_vm1, %v4647_v40  ;;  %v3296_v51 = vld [vmem:[%s4331_s25 + $0xe1] sm:$0xff] }
  0x99   : > { %3755 = vmatprep.mubr.msk.bf16.mxu1 %vm335_vm1, %v4428_v15  ;;  %3907 = vmatprep.mubr.msk.bf16.mxu0 %vm335_vm1, %v4649_v44  ;;  %v2128_v15 = vmax.f32 %v3406_v22, 0.0  ;;  %v2766_v22 = vmax.f32 %v3490_v32, 0.0 }
  0x9a   : > { %4250 = vmatprep.subr.msk.bf16.mxu1 %vm384_vm0, %v4306_v1  ;;  %v3408_v1 = vld [vmem:[%s4331_s25 + $0x1a0] sm:$0xff] }
  0x9b   : > { %v4710_v54 = vpack.c.bf16 %v2128_v15, %v2127_v62  ;;  %v1462_v62 = vmax.f32 %v3295_v45, 0.0  ;;  %v1463_v15 = vmax.f32 %v3296_v51, 0.0  ;;  %v2777_v45 = vmax.f32 %v3501_v17, 0.0 }
  0x9f   : > { %3756 = vmatmul.mubr.msk.bf16.gmra.mrb[4].mxu1 %vm335_vm1, %v4435_v20  ;;  %v2129_v20 = vmax.f32 %v3407_v55, 0.0 }
  0xa0   : > { %3908 = vmatmul.mubr.msk.bf16.gmra.mrb[20].mxu0 %vm335_vm1, %v4663_v63  ;;  %3759 = vmatprep.mubr.msk.bf16.mxu1 %vm335_vm1, %v4461_v42  ;;  %v2130_v42 = vmax.f32 %v3408_v1, 0.0  ;;  %v2768_v1 = vmax.f32 %v3492_v53, 0.0 }
  0xa1   : > { %3911 = vmatprep.mubr.msk.bf16.mxu0 %vm335_vm1, %v4665_v0 }
  0xa2   : > { %v2146_v56 = vpack.c.bf16 %v2130_v42, %v2129_v20  ;;  %v3297_v42 = vld [vmem:[%s4331_s25 + $0xf1] sm:$0xff] }
  0xa7   : > { %3760 = vmatmul.mubr.msk.bf16.gmra.mrb[8].mxu1 %vm335_vm1, %v4468_v47  ;;  %v2850_v47 = vsel %vm384_vm0, %v4637_v27, 0 }
  0xa8   : > { %3912 = vmatmul.mubr.msk.bf16.gmra.mrb[24].mxu0 %vm335_vm1, %v4679_v31  ;;  %3763 = vmatprep.mubr.msk.bf16.mxu1 %vm335_vm1, %v4485_v4 }
  0xa9   : > { %3915 = vmatprep.mubr.msk.bf16.mxu0 %vm335_vm1, %v4710_v54 }
  0xaf   : > { %3764 = vmatmul.mubr.msk.bf16.gmra.mrb[12].mxu1 %vm335_vm1, %v4492_v9  ;;  %v3477_v9 = vld [vmem:[%s4331_s25 + $0x4a] sm:$0xff] }
  0xb0   : > { %3916 = vmatmul.mubr.msk.bf16.gmra.mrb[28].mxu0 %vm335_vm1, %v2146_v56  ;;  %3767 = vmatprep.mubr.msk.bf16.mxu1 %vm335_vm1, %v4509_v30  ;;  %v3478_v30 = vld [vmem:[%s4331_s25 + $0x52] sm:$0xff] }
  0xb1   : > { %3921 = vmatprep.mubr.msk.bf16.mxu0 %vm335_vm1, %v4342_v25  ;;  %v3454_v25 = vld [vmem:[%s4331_s25 + $0x181] sm:$0xff]  ;;  %v3298_v56 = vld [vmem:[%s4331_s25 + $0xf9] sm:$0xff] }
  0xb7   : > { %3768 = vmatmul.mubr.msk.bf16.gmra.mrb[16].mxu1 %vm335_vm1, %v4513_v36  ;;  %v3479_v36 = vld [vmem:[%s4331_s25 + $0x62] sm:$0xff] }
  0xb8   : > { %3922 = vmatmul.mubr.msk.bf16.vlgmr.msra.gmra.mrb[0].mxu0 %vm335_vm1, %v4348_v29  ;;  %3771 = vmatprep.mubr.msk.bf16.mxu1 %vm335_vm1, %v4530_v61  ;;  %v3455_v29 = vld [vmem:[%s4331_s25 + $0x189] sm:$0xff]  ;;  %v2754_v61 = vmax.f32 %v3478_v30, 0.0  ;;  %v3301_v30 = vld [vmem:[%s4331_s25 + $0x121] sm:$0xff] }
  0xb9   : > { %3954 = vmatpush3.bf16.msra.mxu0 %v2850_v47  ;;  %3925 = vmatprep.mubr.msk.bf16.mxu0 %vm335_vm1, %v4374_v38  ;;  %v2454_v38 = vmax.f32 %v3455_v29, 0.0  ;;  %v3493_v47 = vld [vmem:[%s4331_s25 + $0x10a] sm:$0xff]  ;;  %v3494_v29 = vld [vmem:[%s4331_s25 + $0x112] sm:$0xff] }
  0xbf   : > { %3772 = vmatmul.mubr.msk.bf16.gmra.mrb[20].mxu1 %vm335_vm1, %v4539_v10 }
  0xc0   : > { %3926 = vmatmul.mubr.msk.bf16.gmra.mrb[4].mxu0 %vm335_vm1, %v4376_v39  ;;  %3775 = vmatprep.mubr.msk.bf16.mxu1 %vm335_vm1, %v4563_v34 }
  0xc1   : > { %3929 = vmatprep.mubr.msk.bf16.mxu0 %vm335_vm1, %v4390_v48  ;;  %v3456_v48 = vld [vmem:[%s4331_s25 + $0x199] sm:$0xff] }
  0xc7   : > { %3776 = vmatmul.mubr.msk.bf16.gmra.mrb[24].mxu1 %vm335_vm1, %v4570_v46  ;;  %v3482_v46 = vld [vmem:[%s4331_s25 + $0x82] sm:$0xff] }
  0xc8   : > { %3930 = vmatmul.mubr.msk.bf16.gmra.mrb[8].mxu0 %vm335_vm1, %v4392_v49  ;;  %3779 = vmatprep.mubr.msk.bf16.mxu1 %vm335_vm1, %v4587_v12  ;;  %v3457_v49 = vld [vmem:[%s4331_s25 + $0x1a1] sm:$0xff] }
  0xc9   : > { %3933 = vmatprep.mubr.msk.bf16.mxu0 %vm335_vm1, %v4406_v58  ;;  %v3475_v58 = vld [vmem:[%s4331_s25 + $0x32] sm:$0xff]  ;;  %v3484_v12 = vld [vmem:[%s4331_s25 + $0x9a] sm:$0xff] }
  0xcf   : > { %3780 = vmatmul.mubr.msk.bf16.gmra.mrb[28].mxu1 %vm335_vm1, %v4594_v21  ;;  %v2758_v21 = vmax.f32 %v3482_v46, 0.0 }
  0xd0   : > { %3934 = vmatmul.mubr.msk.bf16.gmra.mrb[12].mxu0 %vm335_vm1, %v4426_v14  ;;  %3785 = vmatprep.mubr.msk.bf16.mxu1 %vm335_vm1, %v4528_v60  ;;  %v3476_v14 = vld [vmem:[%s4331_s25 + $0x3a] sm:$0xff]  ;;  %v2753_v60 = vmax.f32 %v3477_v9, 0.0 }
  0xd1   : > { %3937 = vmatprep.mubr.msk.bf16.mxu0 %vm335_vm1, %v4430_v16  ;;  %v2455_v16 = vmax.f32 %v3456_v48, 0.0  ;;  %v3496_v48 = vld [vmem:[%s4331_s25 + $0x12a] sm:$0xff] }
  0xd7   : > { %3786 = vmatmul.mubr.msk.bf16.vlgmr.msra.gmra.mrb[0].mxu1 %vm335_vm1, %v4537_v8  ;;  %v2755_v8 = vmax.f32 %v3479_v36, 0.0  ;;  %v3302_v36 = vld [vmem:[%s4331_s25 + $0x129] sm:$0xff] }
  0xd8   : > { %3988 = vmatpush3.bf16.msra.mxu1 %v4314_v3  ;;  %3938 = vmatmul.mubr.msk.bf16.gmra.mrb[16].mxu0 %vm335_vm1, %v4459_v41  ;;  %v2453_v3 = vmax.f32 %v3454_v25, 0.0  ;;  %v2456_v41 = vmax.f32 %v3457_v49, 0.0  ;;  %v1464_v49 = vmax.f32 %v3297_v42, 0.0  ;;  %v1469_v46 = vmax.f32 %v3302_v36, 0.0 }
  0xd9   : > { %3789 = vmatprep.mubr.msk.bf16.mxu1 %vm335_vm1, %v4561_v33  ;;  %3941 = vmatprep.mubr.msk.bf16.mxu0 %vm335_vm1, %v4463_v43  ;;  %v2751_v43 = vmax.f32 %v3475_v58, 0.0  ;;  %v2784_v33 = vpack.c.bf16 %v2754_v61, %v2753_v60  ;;  %v1465_v58 = vmax.f32 %v3298_v56, 0.0  ;;  %v3498_v61 = vld [vmem:[%s4331_s25 + $0x142] sm:$0xff] }
  0xda   : > { %v4782_v39 = vpack.c.bf16 %v2454_v38, %v2453_v3  ;;  %v2472_v4 = vpack.c.bf16 %v2456_v41, %v2455_v16  ;;  %v3299_v3 = vld [vmem:[%s4331_s25 + $0x109] sm:$0xff]  ;;  %v2770_v16 = vmax.f32 %v3494_v29, 0.0 }
  0xdb   : > { %v3495_v38 = vld [vmem:[%s4331_s25 + $0x122] sm:$0xff]  ;;  %v1466_v41 = vmax.f32 %v3299_v3, 0.0 }
  0xdf   : > { %3790 = vmatmul.mubr.msk.bf16.gmra.mrb[4].mxu1 %vm335_vm1, %v4565_v37  ;;  %v3481_v37 = vld [vmem:[%s4331_s25 + $0x7a] sm:$0xff] }
  0xe0   : > { %3942 = vmatmul.mubr.msk.bf16.gmra.mrb[20].mxu0 %vm335_vm1, %v4483_v2  ;;  %3793 = vmatprep.mubr.msk.bf16.mxu1 %vm335_vm1, %v4585_v11  ;;  %v2752_v2 = vmax.f32 %v3476_v14, 0.0  ;;  %v3483_v11 = vld [vmem:[%s4331_s25 + $0x92] sm:$0xff]  ;;  %v2769_v14 = vmax.f32 %v3493_v47, 0.0 }
  0xe1   : > { %3945 = vmatprep.mubr.msk.bf16.mxu0 %vm335_vm1, %v4487_v5 }
  0xe2   : > { %v2783_v5 = vpack.c.bf16 %v2752_v2, %v2751_v43  ;;  %v2772_v2 = vmax.f32 %v3496_v48, 0.0 }
  0xe7   : > { %3794 = vmatmul.mubr.msk.bf16.gmra.mrb[8].mxu1 %vm335_vm1, %v4589_v13  ;;  %v2757_v13 = vmax.f32 %v3481_v37, 0.0  ;;  %v1468_v37 = vmax.f32 %v3301_v30, 0.0 }
  0xe8   : > { %3946 = vmatmul.mubr.msk.bf16.gmra.mrb[24].mxu0 %vm335_vm1, %v4507_v28  ;;  %3797 = vmatprep.mubr.msk.bf16.mxu1 %vm335_vm1, %v4607_v50  ;;  %v3480_v28 = vld [vmem:[%s4331_s25 + $0x6a] sm:$0xff]  ;;  %v2759_v50 = vmax.f32 %v3483_v11, 0.0 }
  0xe9   : > { %3949 = vmatprep.mubr.msk.bf16.mxu0 %vm335_vm1, %v4782_v39  ;;  %v2756_v10 = vmax.f32 %v3480_v28, 0.0  ;;  %v3497_v28 = vld [vmem:[%s4331_s25 + $0x13a] sm:$0xff] }
  0xea   : > { %v2773_v11 = vmax.f32 %v3497_v28, 0.0 }
  0xeb   : > { %v2785_v34 = vpack.c.bf16 %v2756_v10, %v2755_v8  ;;  %v3303_v8 = vld [vmem:[%s4331_s25 + $0x139] sm:$0xff]  ;;  %v3304_v10 = vld [vmem:[%s4331_s25 + $0x141] sm:$0xff] }
  0xef   : > { %3798 = vmatmul.mubr.msk.bf16.gmra.mrb[12].mxu1 %vm335_vm1, %v4609_v52  ;;  %v2760_v52 = vmax.f32 %v3484_v12, 0.0  ;;  %v2774_v12 = vmax.f32 %v3498_v61, 0.0 }
  0xf0   : > { %3950 = vmatmul.mubr.msk.bf16.gmra.mrb[28].mxu0 %vm335_vm1, %v2472_v4  ;;  %3801 = vmatprep.mubr.msk.bf16.mxu1 %vm335_vm1, %v4622_v6  ;;  %v2786_v6 = vpack.c.bf16 %v2758_v21, %v2757_v13  ;;  %v1487_v4 = vpack.c.bf16 %v1465_v58, %v1464_v49  ;;  %v1470_v13 = vmax.f32 %v3303_v8, 0.0  ;;  %v1471_v21 = vmax.f32 %v3304_v10, 0.0 }
  0xf1   : > { %3955 = vmatprep.mubr.msk.bf16.mxu0 %vm335_vm1, %v2783_v5  ;;  %v2787_v27 = vpack.c.bf16 %v2760_v52, %v2759_v50  ;;  %v2792_v5 = vpack.c.bf16 %v2770_v16, %v2769_v14 }
  0xf7   : > { %3802 = vmatmul.mubr.msk.bf16.gmra.mrb[16].mxu1 %vm335_vm1, %v4624_v7  ;;  %v3487_v7 = vld [vmem:[%s4331_s25 + $0xc2] sm:$0xff] }
  0xf8   : > { %3956 = vmatmul.mubr.msk.bf16.vlgmr.msra.gmra.mrb[0].mxu0 %vm335_vm1, %v2784_v33  ;;  %3805 = vmatprep.mubr.msk.bf16.mxu1 %vm335_vm1, %v4647_v40  ;;  %v2761_v40 = vmax.f32 %v3485_v57, 0.0  ;;  %v2763_v19 = vmax.f32 %v3487_v7, 0.0  ;;  %v3499_v33 = vld [vmem:[%s4331_s25 + $0x152] sm:$0xff]  ;;  %v1490_v57 = vpack.c.bf16 %v1471_v21, %v1470_v13 }
  0xf9   : > { %3959 = vmatprep.mubr.msk.bf16.mxu0 %vm335_vm1, %v2785_v34  ;;  %v3500_v34 = vld [vmem:[%s4331_s25 + $0x15a] sm:$0xff]  ;;  %v2775_v50 = vmax.f32 %v3499_v33, 0.0 }
  0xfa   : > { %v2788_v23 = vpack.c.bf16 %v2762_v18, %v2761_v40  ;;  %v2789_v26 = vpack.c.bf16 %v2764_v35, %v2763_v19  ;;  %v2776_v52 = vmax.f32 %v3500_v34, 0.0  ;;  %v3306_v7 = vld [vmem:[%s4331_s25 + $0x159] sm:$0xff]  ;;  %v3307_v19 = vld [vmem:[%s4331_s25 + $0x169] sm:$0xff]  ;;  %v3308_v35 = vld [vmem:[%s4331_s25 + $0x171] sm:$0xff] }
  0xfb   : > { %v3502_v18 = vld [vmem:[%s4331_s25 + $0x172] sm:$0xff]  ;;  %v1473_v32 = vmax.f32 %v3306_v7, 0.0  ;;  %v1475_v53 = vmax.f32 %v3308_v35, 0.0 }
  0xfc   : > { %v2795_v40 = vpack.c.bf16 %v2776_v52, %v2775_v50  ;;  %v2778_v51 = vmax.f32 %v3502_v18, 0.0 }
  0xff   : > { %3806 = vmatmul.mubr.msk.bf16.gmra.mrb[20].mxu1 %vm335_vm1, %v4649_v44  ;;  %v3491_v44 = vld [vmem:[%s4331_s25 + $0xf2] sm:$0xff] }
 0x100   : > { %3960 = vmatmul.mubr.msk.bf16.gmra.mrb[4].mxu0 %vm335_vm1, %v2786_v6  ;;  %3809 = vmatprep.mubr.msk.bf16.mxu1 %vm335_vm1, %v4663_v63  ;;  %v2765_v63 = vmax.f32 %v3489_v24, 0.0  ;;  %v2767_v55 = vmax.f32 %v3491_v44, 0.0  ;;  %v1489_v6 = vpack.c.bf16 %v1469_v46, %v1468_v37  ;;  %v3504_v24 = vld [vmem:[%s4331_s25 + $0x18a] sm:$0xff]  ;;  %v1474_v44 = vmax.f32 %v3307_v19, 0.0 }
 0x101   : > { %3963 = vmatprep.mubr.msk.bf16.mxu0 %vm335_vm1, %v2787_v27  ;;  %v2794_v27 = vpack.c.bf16 %v2774_v12, %v2773_v11 }
 0x102   : > { %v2790_v20 = vpack.c.bf16 %v2766_v22, %v2765_v63  ;;  %v2791_v25 = vpack.c.bf16 %v2768_v1, %v2767_v55  ;;  %v2780_v22 = vmax.f32 %v3504_v24, 0.0  ;;  %v1492_v55 = vpack.c.bf16 %v1475_v53, %v1474_v44 }
 0x107   : > { %3810 = vmatmul.mubr.msk.bf16.gmra.mrb[24].mxu1 %vm335_vm1, %v4665_v0  ;;  %v1486_v0 = vpack.c.bf16 %v1463_v15, %v1462_v62  ;;  %v2796_v15 = vpack.c.bf16 %v2778_v51, %v2777_v45 }
 0x108   : > { %3964 = vmatmul.mubr.msk.bf16.gmra.mrb[8].mxu0 %vm335_vm1, %v2788_v23  ;;  %3813 = vmatprep.mubr.msk.bf16.mxu1 %vm335_vm1, %v4679_v31  ;;  %v3300_v31 = vld [vmem:[%s4331_s25 + $0x111] sm:$0xff]  ;;  %v3503_v23 = vld [vmem:[%s4331_s25 + $0x182] sm:$0xff] }
 0x109   : > { %3967 = vmatprep.mubr.msk.bf16.mxu0 %vm335_vm1, %v2789_v26  ;;  %v1467_v43 = vmax.f32 %v3300_v31, 0.0  ;;  %v1472_v26 = vmax.f32 %v3305_v59, 0.0  ;;  %v2779_v63 = vmax.f32 %v3503_v23, 0.0 }
 0x10b   : > { %v1488_v9 = vpack.c.bf16 %v1467_v43, %v1466_v41  ;;  %v1491_v62 = vpack.c.bf16 %v1473_v32, %v1472_v26  ;;  %v2797_v1 = vpack.c.bf16 %v2780_v22, %v2779_v63 }
 0x10f   : > { %3814 = vmatmul.mubr.msk.bf16.gmra.mrb[28].mxu1 %vm335_vm1, %v4710_v54  ;;  %v2771_v54 = vmax.f32 %v3495_v38, 0.0 }
 0x110   : > { %3968 = vmatmul.mubr.msk.bf16.gmra.mrb[12].mxu0 %vm335_vm1, %v2790_v20  ;;  %3835 = vmatprep.mubr.msk.bf16.mxu1 %vm335_vm1, %v1486_v0  ;;  %v3505_v20 = vld [vmem:[%s4331_s25 + $0x19a] sm:$0xff]  ;;  %v3506_v0 = vld [vmem:[%s4331_s25 + $0x1a2] sm:$0xff] }
 0x111   : > { %3971 = vmatprep.mubr.msk.bf16.mxu0 %vm335_vm1, %v2791_v25  ;;  %v2793_v60 = vpack.c.bf16 %v2772_v2, %v2771_v54  ;;  %v2781_v42 = vmax.f32 %v3505_v20, 0.0  ;;  %v2782_v56 = vmax.f32 %v3506_v0, 0.0 }
 0x113   : > { %v2798_v47 = vpack.c.bf16 %v2782_v56, %v2781_v42 }
 0x117   : > { %3836 = vmatmul.mubr.msk.bf16.vlgmr.msra.gmra.mrb[16].mxu1 %vm335_vm1, %v1487_v4 }
 0x118   : > { %3972 = vmatmul.mubr.msk.bf16.gmra.mrb[16].mxu0 %vm335_vm1, %v2792_v5  ;;  %3839 = vmatprep.mubr.msk.bf16.mxu1 %vm335_vm1, %v1488_v9  ;;  %v4888_v9 = vld [vmem:[%s4996_s2] ss:$0 sm:$0xff] }
 0x119   : > { %3975 = vmatprep.mubr.msk.bf16.mxu0 %vm335_vm1, %v2793_v60 }
 0x11f   : > { %3840 = vmatmul.mubr.msk.bf16.gmra.mrb[20].mxu1 %vm335_vm1, %v1489_v6 }
 0x120   : > { %3976 = vmatmul.mubr.msk.bf16.gmra.mrb[20].mxu0 %vm335_vm1, %v2794_v27  ;;  %3843 = vmatprep.mubr.msk.bf16.mxu1 %vm335_vm1, %v1490_v57 }
 0x121   : > { %3979 = vmatprep.mubr.msk.bf16.mxu0 %vm335_vm1, %v2795_v40 }
 0x127   : > { %3844 = vmatmul.mubr.msk.bf16.gmra.mrb[24].mxu1 %vm335_vm1, %v1491_v62 }
 0x128   : > { %3980 = vmatmul.mubr.msk.bf16.gmra.mrb[24].mxu0 %vm335_vm1, %v2796_v15  ;;  %3847 = vmatprep.mubr.msk.bf16.mxu1 %vm335_vm1, %v1492_v55 }
 0x129   : > { %3983 = vmatprep.mubr.msk.bf16.mxu0 %vm335_vm1, %v2797_v1 }
 0x12f   : > { %3848 = vmatmul.mubr.msk.bf16.gmra.mrb[28].mxu1 %vm335_vm1, %v4782_v39 }
 0x130   : > { %3984 = vmatmul.mubr.msk.bf16.gmra.mrb[28].mxu0 %vm335_vm1, %v2798_v47 }
 0x1aa   : > { %v3787_v25 = vpop.f32.mrb[0].mxu1 }
 0x1ab   : > { %v1255_v29 = vpop.f32.mrb[1].mxu1 }
 0x1ac   : > { %v3788_v3 = vpop.f32.mrb[2].mxu1 }
 0x1ad   : > { %v1258_v31 = vpop.f32.mrb[3].mxu1 }
 0x1b2   : > { %v3791_v38 = vpop.f32.mrb[4].mxu1 }
 0x1b3   : > { %v1271_v48 = vpop.f32.mrb[5].mxu1 }
 0x1b4   : > { %v3792_v49 = vpop.f32.mrb[6].mxu1 }
 0x1b5   : > { %v1274_v58 = vpop.f32.mrb[7].mxu1 }
 0x1ba   : > { %v3795_v14 = vpop.f32.mrb[8].mxu1 }
 0x1bb   : > { %v1287_v16 = vpop.f32.mrb[9].mxu1 }
 0x1bc   : > { %v3796_v41 = vpop.f32.mrb[10].mxu1 }
 0x1bd   : > { %v1290_v43 = vpop.f32.mrb[11].mxu1 }
 0x1c2   : > { %v3799_v54 = vpop.f32.mrb[12].mxu1 }
 0x1c3   : > { %v1303_v2 = vpop.f32.mrb[13].mxu1 }
 0x1c4   : > { %v3800_v4 = vpop.f32.mrb[14].mxu1 }
 0x1c5   : > { %v1306_v5 = vpop.f32.mrb[15].mxu1 }
 0x1cb   : > { %v3957_v39 = vpop.f32.mrb[0].mxu0 }
 0x1cc   : > { %v3989_v30 = vadd.f32 %v3957_v39, %v3787_v25  ;;  %v2886_v36 = vpop.f32.mrb[1].mxu0 }
 0x1cd   : > { %v3990_v28 = vadd.f32 %v2886_v36, %v1255_v29  ;;  %v3958_v60 = vpop.f32.mrb[2].mxu0 }
 0x1ce   : > { %v3054_v61 = vadd.f32 %v3989_v30, %v4888_v9  ;;  %v3991_v8 = vadd.f32 %v3958_v60, %v3788_v3  ;;  %v2889_v10 = vpop.f32.mrb[3].mxu0 }
 0x1cf   : > { %v3052_v33 = vadd.f32 %v3990_v28, %v4888_v9  ;;  %v3992_v34 = vadd.f32 %v2889_v10, %v1258_v31 }
 0x1d0   : > { %3087 = vst.msk [vmem:[%s4893_s16 + $0x10] sm:$0xff] %vm3084_vm2, %v3054_v61  ;;  %v3055_v37 = vadd.f32 %v3991_v8, %v4888_v9 }
 0x1d1   : > { %3085 = vst.msk [vmem:[%s4893_s16] sm:$0xff] %vm3084_vm2, %v3052_v33  ;;  %v3053_v46 = vadd.f32 %v3992_v34, %v4888_v9 }
 0x1d2   : > { %3088 = vst.msk [vmem:[%s4893_s16 + $0x18] sm:$0xff] %vm3084_vm2, %v3055_v37 }
 0x1d3   : > { %3086 = vst.msk [vmem:[%s4893_s16 + $0x8] sm:$0xff] %vm3084_vm2, %v3053_v46  ;;  %v3961_v11 = vpop.f32.mrb[4].mxu0 }
 0x1d4   : > { %v3993_v12 = vadd.f32 %v3961_v11, %v3791_v38  ;;  %v2902_v13 = vpop.f32.mrb[5].mxu0 }
 0x1d5   : > { %v3994_v21 = vadd.f32 %v2902_v13, %v1271_v48  ;;  %v3962_v50 = vpop.f32.mrb[6].mxu0 }
 0x1d6   : > { %v3058_v52 = vadd.f32 %v3993_v12, %v4888_v9  ;;  %v3995_v6 = vadd.f32 %v3962_v50, %v3792_v49  ;;  %v2905_v27 = vpop.f32.mrb[7].mxu0 }
 0x1d7   : > { %v3056_v57 = vadd.f32 %v3994_v21, %v4888_v9  ;;  %v3996_v59 = vadd.f32 %v2905_v27, %v1274_v58 }
 0x1d8   : > { %3091 = vst.msk [vmem:[%s4893_s16 + $0x30] sm:$0xff] %vm3084_vm2, %v3058_v52  ;;  %v3059_v7 = vadd.f32 %v3995_v6, %v4888_v9 }
 0x1d9   : > { %3089 = vst.msk [vmem:[%s4893_s16 + $0x20] sm:$0xff] %vm3084_vm2, %v3056_v57  ;;  %v3057_v17 = vadd.f32 %v3996_v59, %v4888_v9 }
 0x1da   : > { %3092 = vst.msk [vmem:[%s4893_s16 + $0x38] sm:$0xff] %vm3084_vm2, %v3059_v7 }
 0x1db   : > { %3090 = vst.msk [vmem:[%s4893_s16 + $0x28] sm:$0xff] %vm3084_vm2, %v3057_v17  ;;  %v3965_v40 = vpop.f32.mrb[8].mxu0 }
 0x1dc   : > { %v3997_v18 = vadd.f32 %v3965_v40, %v3795_v14  ;;  %v2918_v19 = vpop.f32.mrb[9].mxu0 }
 0x1dd   : > { %v3998_v35 = vadd.f32 %v2918_v19, %v1287_v16  ;;  %v3966_v23 = vpop.f32.mrb[10].mxu0 }
 0x1de   : > { %v3062_v24 = vadd.f32 %v3997_v18, %v4888_v9  ;;  %v3999_v26 = vadd.f32 %v3966_v23, %v3796_v41  ;;  %v2921_v32 = vpop.f32.mrb[11].mxu0 }
 0x1df   : > { %v3060_v45 = vadd.f32 %v3998_v35, %v4888_v9  ;;  %v4000_v51 = vadd.f32 %v2921_v32, %v1290_v43 }
 0x1e0   : > { %3095 = vst.msk [vmem:[%s4893_s16 + $0x50] sm:$0xff] %vm3084_vm2, %v3062_v24  ;;  %v3063_v44 = vadd.f32 %v3999_v26, %v4888_v9 }
 0x1e1   : > { %3093 = vst.msk [vmem:[%s4893_s16 + $0x40] sm:$0xff] %vm3084_vm2, %v3060_v45  ;;  %v3061_v53 = vadd.f32 %v4000_v51, %v4888_v9 }
 0x1e2   : > { %3096 = vst.msk [vmem:[%s4893_s16 + $0x58] sm:$0xff] %vm3084_vm2, %v3063_v44 }
 0x1e3   : > { %3094 = vst.msk [vmem:[%s4893_s16 + $0x48] sm:$0xff] %vm3084_vm2, %v3061_v53  ;;  %v3969_v63 = vpop.f32.mrb[12].mxu0 }
 0x1e4   : > { %v4001_v22 = vadd.f32 %v3969_v63, %v3799_v54  ;;  %v2934_v62 = vpop.f32.mrb[13].mxu0 }
 0x1e5   : > { %v4002_v15 = vadd.f32 %v2934_v62, %v1303_v2  ;;  %v3970_v55 = vpop.f32.mrb[14].mxu0 }
 0x1e6   : > { %v3066_v1 = vadd.f32 %v4001_v22, %v4888_v9  ;;  %v4003_v20 = vadd.f32 %v3970_v55, %v3800_v4  ;;  %v2937_v0 = vpop.f32.mrb[15].mxu0 }
 0x1e7   : > { %v3064_v42 = vadd.f32 %v4002_v15, %v4888_v9  ;;  %v4004_v56 = vadd.f32 %v2937_v0, %v1306_v5 }
 0x1e8   : > { %3099 = vst.msk [vmem:[%s4893_s16 + $0x70] sm:$0xff] %vm3084_vm2, %v3066_v1  ;;  %v3067_v47 = vadd.f32 %v4003_v20, %v4888_v9 }
 0x1e9   : > { %3097 = vst.msk [vmem:[%s4893_s16 + $0x60] sm:$0xff] %vm3084_vm2, %v3064_v42  ;;  %v3065_v25 = vadd.f32 %v4004_v56, %v4888_v9 }
 0x1ea   : > { %3100 = vst.msk [vmem:[%s4893_s16 + $0x78] sm:$0xff] %vm3084_vm2, %v3067_v47  ;;  %v3837_v29 = vpop.f32.mrb[16].mxu1 }
 0x1eb   : > { %3098 = vst.msk [vmem:[%s4893_s16 + $0x68] sm:$0xff] %vm3084_vm2, %v3065_v25  ;;  %v3973_v3 = vpop.f32.mrb[16].mxu0  ;;  %v1645_v31 = vpop.f32.mrb[17].mxu1 }
 0x1ec   : > { %v4005_v38 = vadd.f32 %v3973_v3, %v3837_v29  ;;  %v2950_v48 = vpop.f32.mrb[17].mxu0  ;;  %v3838_v49 = vpop.f32.mrb[18].mxu1 }
 0x1ed   : > { %v4006_v58 = vadd.f32 %v2950_v48, %v1645_v31  ;;  %v3974_v14 = vpop.f32.mrb[18].mxu0  ;;  %v1648_v16 = vpop.f32.mrb[19].mxu1 }
 0x1ee   : > { %v3070_v41 = vadd.f32 %v4005_v38, %v4888_v9  ;;  %v4007_v43 = vadd.f32 %v3974_v14, %v3838_v49  ;;  %v2953_v54 = vpop.f32.mrb[19].mxu0 }
 0x1ef   : > { %v3068_v2 = vadd.f32 %v4006_v58, %v4888_v9  ;;  %v4008_v4 = vadd.f32 %v2953_v54, %v1648_v16 }
 0x1f0   : > { %3103 = vst.msk [vmem:[%s4893_s16 + $0x90] sm:$0xff] %vm3084_vm2, %v3070_v41  ;;  %v3071_v5 = vadd.f32 %v4007_v43, %v4888_v9 }
 0x1f1   : > { %3101 = vst.msk [vmem:[%s4893_s16 + $0x80] sm:$0xff] %vm3084_vm2, %v3068_v2  ;;  %v3069_v39 = vadd.f32 %v4008_v4, %v4888_v9 }
 0x1f2   : > { %3104 = vst.msk [vmem:[%s4893_s16 + $0x98] sm:$0xff] %vm3084_vm2, %v3071_v5  ;;  %v3841_v30 = vpop.f32.mrb[20].mxu1 }
 0x1f3   : > { %3102 = vst.msk [vmem:[%s4893_s16 + $0x88] sm:$0xff] %vm3084_vm2, %v3069_v39  ;;  %v3977_v36 = vpop.f32.mrb[20].mxu0  ;;  %v1661_v28 = vpop.f32.mrb[21].mxu1 }
 0x1f4   : > { %v4009_v60 = vadd.f32 %v3977_v36, %v3841_v30  ;;  %v2966_v61 = vpop.f32.mrb[21].mxu0  ;;  %v3842_v8 = vpop.f32.mrb[22].mxu1 }
 0x1f5   : > { %v4010_v10 = vadd.f32 %v2966_v61, %v1661_v28  ;;  %v3978_v33 = vpop.f32.mrb[22].mxu0  ;;  %v1664_v34 = vpop.f32.mrb[23].mxu1 }
 0x1f6   : > { %v3074_v37 = vadd.f32 %v4009_v60, %v4888_v9  ;;  %v4011_v46 = vadd.f32 %v3978_v33, %v3842_v8  ;;  %v2969_v11 = vpop.f32.mrb[23].mxu0 }
 0x1f7   : > { %v3072_v12 = vadd.f32 %v4010_v10, %v4888_v9  ;;  %v4012_v13 = vadd.f32 %v2969_v11, %v1664_v34 }
 0x1f8   : > { %3107 = vst.msk [vmem:[%s4893_s16 + $0xb0] sm:$0xff] %vm3084_vm2, %v3074_v37  ;;  %v3075_v21 = vadd.f32 %v4011_v46, %v4888_v9 }
 0x1f9   : > { %3105 = vst.msk [vmem:[%s4893_s16 + $0xa0] sm:$0xff] %vm3084_vm2, %v3072_v12  ;;  %v3073_v50 = vadd.f32 %v4012_v13, %v4888_v9 }
 0x1fa   : > { %3108 = vst.msk [vmem:[%s4893_s16 + $0xb8] sm:$0xff] %vm3084_vm2, %v3075_v21  ;;  %v3845_v52 = vpop.f32.mrb[24].mxu1 }
 0x1fb   : > { %3106 = vst.msk [vmem:[%s4893_s16 + $0xa8] sm:$0xff] %vm3084_vm2, %v3073_v50  ;;  %v3981_v6 = vpop.f32.mrb[24].mxu0  ;;  %v1677_v27 = vpop.f32.mrb[25].mxu1 }
 0x1fc   : > { %v4013_v57 = vadd.f32 %v3981_v6, %v3845_v52  ;;  %v2982_v59 = vpop.f32.mrb[25].mxu0  ;;  %v3846_v7 = vpop.f32.mrb[26].mxu1 }
 0x1fd   : > { %v4014_v17 = vadd.f32 %v2982_v59, %v1677_v27  ;;  %v3982_v40 = vpop.f32.mrb[26].mxu0  ;;  %v1680_v18 = vpop.f32.mrb[27].mxu1 }
 0x1fe   : > { %v3078_v19 = vadd.f32 %v4013_v57, %v4888_v9  ;;  %v4015_v35 = vadd.f32 %v3982_v40, %v3846_v7  ;;  %v2985_v23 = vpop.f32.mrb[27].mxu0 }
 0x1ff   : > { %v3076_v24 = vadd.f32 %v4014_v17, %v4888_v9  ;;  %v4016_v26 = vadd.f32 %v2985_v23, %v1680_v18 }
 0x200   : > { %3111 = vst.msk [vmem:[%s4893_s16 + $0xd0] sm:$0xff] %vm3084_vm2, %v3078_v19  ;;  %v3079_v32 = vadd.f32 %v4015_v35, %v4888_v9 }
 0x201   : > { %3109 = vst.msk [vmem:[%s4893_s16 + $0xc0] sm:$0xff] %vm3084_vm2, %v3076_v24  ;;  %v3077_v45 = vadd.f32 %v4016_v26, %v4888_v9 }
 0x202   : > { %3112 = vst.msk [vmem:[%s4893_s16 + $0xd8] sm:$0xff] %vm3084_vm2, %v3079_v32  ;;  %v3849_v51 = vpop.f32.mrb[28].mxu1 }
 0x203   : > { %3110 = vst.msk [vmem:[%s4893_s16 + $0xc8] sm:$0xff] %vm3084_vm2, %v3077_v45  ;;  %v3985_v44 = vpop.f32.mrb[28].mxu0  ;;  %v1693_v53 = vpop.f32.mrb[29].mxu1 }
 0x204   : > { %v4017_v63 = vadd.f32 %v3985_v44, %v3849_v51  ;;  %v2998_v22 = vpop.f32.mrb[29].mxu0  ;;  %v3850_v62 = vpop.f32.mrb[30].mxu1 }
 0x205   : > { %v4018_v15 = vadd.f32 %v2998_v22, %v1693_v53  ;;  %v3986_v55 = vpop.f32.mrb[30].mxu0  ;;  %v1696_v1 = vpop.f32.mrb[31].mxu1 }
 0x206   : > { %v3082_v20 = vadd.f32 %v4017_v63, %v4888_v9  ;;  %v4019_v0 = vadd.f32 %v3986_v55, %v3850_v62  ;;  %v3001_v42 = vpop.f32.mrb[31].mxu0 }
 0x207   : > { %v3080_v56 = vadd.f32 %v4018_v15, %v4888_v9  ;;  %v4020_v47 = vadd.f32 %v3001_v42, %v1696_v1 }
 0x208   : > { %3115 = vst.msk [vmem:[%s4893_s16 + $0xf0] sm:$0xff] %vm3084_vm2, %v3082_v20  ;;  %v3083_v25 = vadd.f32 %v4019_v0, %v4888_v9 }
 0x209   : > { %3113 = vst.msk [vmem:[%s4893_s16 + $0xe0] sm:$0xff] %vm3084_vm2, %v3080_v56  ;;  %v3081_v29 = vadd.f32 %v4020_v47, %v4888_v9 }
 0x20a   : > { %3116 = vst.msk [vmem:[%s4893_s16 + $0xf8] sm:$0xff] %vm3084_vm2, %v3083_v25 }
 0x20b   : > { %3114 = vst.msk [vmem:[%s4893_s16 + $0xe8] sm:$0xff] %vm3084_vm2, %v3081_v29 }
 0x20c PF: > { %s13_s12 = sadd.s32 1, %s4270_s12  }
 0x20d   : > { %p10_p4 = scmp.ge.s32.totalorder %s13_s12, 4  }
 0x20f   :  { %12 = sbr.rel (!%p10_p4) target bundleno = 1 (0x1), region = 72 }

</bundles_post_ra>
